<compile_context>
chip_gen: v7x
topology: tpu7x:2x2x1
jax: 0.10.0
libtpu: 0.0.40
codegen_flags: <defaults>
</compile_context>

<pallas_src>
import jax
import jax.numpy as jnp
from jax.experimental import pallas as pl
from jax.experimental.pallas import tpu as pltpu

# ----------------------------- configuration --------------------------------
STATE_SIZE = 32      # S
GOAL_SIZE = 8        # G
ENSEMBLE_SIZE = 4    # E      (E * S = 128 -> one full lane vreg)
PLAN_HORIZON = 4     # H
N_CANDIDATES = 64    # C
TOP_CANDIDATES = 8   # K
OPT_ITERS = 2
REWARD_SCALE = 1.0
EXPL_SCALE = 1.0


# ------------------------------ Pallas kernel -------------------------------
def _rollout_returns_kernel(state_ref, goals_ref, ws_ref, wg_ref, b_ref,
                            wrs_ref, wrg_ref, out_ref):
    """Fused ensemble rollout + reward + exploration bonus, ensemble-packed.

    Shapes (all VMEM-resident, tiny):
      state  (1, E*S)  tiled current state (block e = state)
      goals  (H, C, G)
      ws     (E*S, E*S) block-diagonal ensemble state weights
      wg     (G, E*S)   packed ensemble goal weights
      b      (1, E*S)   packed bias
      wrs    (1, S)     reward-model state weights (row vector)
      wrg    (1, G)     reward-model goal weights (row vector)
      out    (C, 2)     column 0: sum_t mean_e reward   column 1: bonus
                        bonus = sum_t sum_d Var_e[delta_mean]  (un-scaled)
    """
    H, C, G = goals_ref.shape
    ES = ws_ref.shape[0]
    S = wrs_ref.shape[1]
    E = ES // S
    f32 = jnp.float32
    inv_e = 1.0 / E

    reward_acc = jnp.zeros((C, 1), f32)
    bonus_acc = jnp.zeros((C, 1), f32)

    wrs_row = wrs_ref[...]                         # (1, S)
    wrg_row = wrg_ref[...]                         # (1, G)
    ws_bd = ws_ref[...]                            # (ES, ES)
    wg_pk = wg_ref[...]                            # (G, ES)
    b_pk = b_ref[...]                              # (1, ES)

    # Hoisted reward-model goal projections: only H distinct (C,1) values.
    goal_proj = [jnp.sum(goals_ref[h].astype(f32) * wrg_row,
                         axis=-1, keepdims=True) for h in range(H)]

    # states[0]: current state repeated over (ensemble, candidates), packed.
    s_packed = jnp.broadcast_to(state_ref[...], (C, ES)).astype(f32)

    for t in range(H):                             # static unrolled rollout
        g_t = goals_ref[t].astype(f32)             # (C, G)
        # --- one packed ensemble forward: all E members in one matmul ---
        pre = (jnp.dot(s_packed, ws_bd, preferred_element_type=f32)
               + jnp.dot(g_t, wg_pk, preferred_element_type=f32)
               + b_pk)
        dm = jnp.tanh(pre)                         # (C, E*S) packed delta_mean
        s_packed = s_packed + dm                   # states[t+1], all members

        # --- exploration 'variance' measure:  sum_d Var_e[dm] = E[x^2]-E[x]^2
        if E & (E - 1) == 0:
            # roll-add tree over ensemble blocks (XLU slot, cyclic over lanes)
            z = dm
            shift = S
            while shift < ES:
                z = z + pltpu.roll(z, shift=shift, axis=1)
                shift *= 2
            sum_e = z[:, :S]                       # (C, S): sum over ensemble
        else:
            sum_e = dm[:, 0:S]
            for e in range(1, E):
                sum_e = sum_e + dm[:, e * S:(e + 1) * S]
        bonus_acc = bonus_acc + (
            inv_e * jnp.sum(dm * dm, axis=-1, keepdims=True)
            - (inv_e * inv_e) * jnp.sum(sum_e * sum_e, axis=-1, keepdims=True))

        # --- reward model on (next_state, paired goal): VPU mul + lane reduce
        # Reproduce the reference flatten ordering: state[t+1, e, c] pairs
        # with goals[(t*E + e) % H, c].
        for e in range(E):
            ns_e = s_packed[:, e * S:(e + 1) * S]  # (C, S)
            proj = jnp.sum(ns_e * wrs_row, axis=-1, keepdims=True)
            r = jnp.tanh(proj + goal_proj[(t * E + e) % H])   # (C, 1)
            reward_acc = reward_acc + inv_e * r    # mean over e, sum over t

    out_ref[...] = jnp.concatenate([reward_acc, bonus_acc], axis=1)


def _rollout_returns(state_packed, goals, packed_params):
    """pallas_call wrapper. Returns (rewards (C,), bonus (C,)) un-scaled."""
    ws_bd, wg_pk, b_pk, wr_s, wr_g = packed_params
    H, C, G = goals.shape
    ES = ws_bd.shape[0]
    S = wr_s.shape[1]
    inputs = (state_packed, goals, ws_bd, wg_pk, b_pk, wr_s, wr_g)

    flops = int(2 * H * (C * ES * ES + C * G * ES) + 8 * H * C * ES)
    transcendentals = int(H * C * (ES + ES // S))            # tanh count
    bytes_accessed = int(sum(x.size for x in inputs) * 4 + C * 2 * 4)

    out = pl.pallas_call(
        _rollout_returns_kernel,
        out_shape=jax.ShapeDtypeStruct((C, 2), jnp.float32),
        in_specs=[pl.BlockSpec(memory_space=pltpu.MemorySpace.VMEM)] * len(inputs),
        out_specs=pl.BlockSpec(memory_space=pltpu.MemorySpace.VMEM),
        cost_estimate=pl.CostEstimate(flops=flops,
                                      transcendentals=transcendentals,
                                      bytes_accessed=bytes_accessed),
    )(*inputs)
    return out[:, 0], out[:, 1]


# ------------------------------ toy environment -----------------------------
class _Box:
    def __init__(self, low, high):
        self.low = low
        self.high = high


class _ToyEnv:
    def __init__(self, goal_size):
        self.observation_space = _Box(
            low=-2.0 * jnp.ones((goal_size,), jnp.float32),
            high=2.0 * jnp.ones((goal_size,), jnp.float32),
        )
        self.max_reward_state = 0.5 * jnp.ones((goal_size,), jnp.float32)


# ------------------------------ planner wrapper ------------------------------
class HighLevelPlannerPallas:
    def __init__(self, env, params, goal_size, ensemble_size, plan_horizon,
                 optimisation_iters, n_candidates, top_candidates,
                 reward_scale=1.0, expl_scale=1.0, sample_key=None):
        self.env = env
        self.goal_size = goal_size
        self.ensemble_size = ensemble_size
        self.plan_horizon = plan_horizon
        self.optimisation_iters = optimisation_iters
        self.n_candidates = n_candidates
        self.top_candidates = top_candidates
        self.reward_scale = reward_scale
        self.expl_scale = expl_scale
        self._key = sample_key if sample_key is not None else jax.random.PRNGKey(1)
        self.trial_rewards = []
        self.trial_bonuses = []

        # ---- one-time wrapper-level weight packing (outside the kernel) ----
        w_s, w_g, b, wr_s, wr_g = params
        E, S, _ = w_s.shape
        ES = E * S
        ws_bd = jnp.zeros((ES, ES), jnp.float32)
        for e in range(E):
            ws_bd = ws_bd.at[e * S:(e + 1) * S, e * S:(e + 1) * S].set(w_s[e])
        wg_pk = jnp.transpose(w_g, (1, 0, 2)).reshape(goal_size, ES)
        b_pk = b.reshape(1, ES)
        self._packed = (ws_bd, wg_pk, b_pk, wr_s, wr_g)
        self._state_size = S

        # whole CEM forward fused into one XLA program
        self._plan_jit = jax.jit(self._plan)

    def forward(self, state):
        state = jnp.asarray(state, jnp.float32)                # (S,)
        self._key, sub = jax.random.split(self._key)
        goal, rewards_hist, bonus_hist = self._plan_jit(state, sub)
        for i in range(self.optimisation_iters):
            self.trial_rewards.append(rewards_hist[i])
            self.trial_bonuses.append(bonus_hist[i])
        return goal                                            # (G,)

    def _plan(self, state, key):
        H, C, G = self.plan_horizon, self.n_candidates, self.goal_size
        E, S = self.ensemble_size, self._state_size
        goal_mean = jnp.zeros((H, 1, G), jnp.float32)
        goal_std_dev = jnp.ones((H, 1, G), jnp.float32)
        min_bounds = self.env.observation_space.low
        max_bounds = self.env.observation_space.high
        state_packed = jnp.tile(state, (E,)).reshape(1, E * S)

        rewards_hist, bonus_hist = [], []
        for _ in range(self.optimisation_iters):               # unrolled in jit
            key, sub = jax.random.split(key)
            goals = goal_mean + goal_std_dev * jax.random.normal(
                sub, (H, C, G), jnp.float32)
            goals = jnp.clip(goals, min_bounds, max_bounds)

            # --- Pallas hot path: rollout + reward + exploration measure ---
            rewards_raw, bonus_raw = _rollout_returns(state_packed, goals,
                                                      self._packed)

            # measure applies its own scale; forward scales by expl_scale again
            # (intentional reproduction of the reference's double scaling)
            expl_bonus = (bonus_raw * self.expl_scale) * self.expl_scale
            rewards = rewards_raw * self.reward_scale
            returns = expl_bonus + rewards
            bonus_hist.append(expl_bonus)
            rewards_hist.append(rewards)

            goal_mean, goal_std_dev = self._fit_gaussian(goals, returns)

        return goal_mean[0, 0], jnp.stack(rewards_hist), jnp.stack(bonus_hist)

    def _fit_gaussian(self, goals, returns):
        # TODO(synk): the reference prints debug tensors here; omitted under jit.
        H, G = goals.shape[0], goals.shape[2]
        returns = jnp.where(jnp.isnan(returns), jnp.zeros_like(returns), returns)
        _, topk = jax.lax.top_k(returns, self.top_candidates)
        best_goals = goals[:, topk]                            # (H, K, G)
        goal_mean = best_goals.mean(axis=1, keepdims=True)
        goal_std_dev = best_goals.std(axis=1, keepdims=True)   # unbiased=False

        prior_mean = jnp.broadcast_to(
            self.env.max_reward_state.reshape(1, 1, -1), (H, 1, G))
        prior_var = jnp.ones_like(prior_mean) / 4.0
        likelihood_mean = goal_mean
        likelihood_var = goal_std_dev ** 2
        posterior_var = 1.0 / (1.0 / prior_var + 1.0 / likelihood_var)
        posterior_mean = posterior_var * (prior_mean / prior_var
                                          + likelihood_mean / likelihood_var)
        prior_weight = 0.7
        posterior_mean = (prior_weight * prior_mean
                          + (1.0 - prior_weight) * posterior_mean)
        return posterior_mean, jnp.sqrt(posterior_var)


# ------------------------------ parameter init -------------------------------
def _init_params(key, S, G, E):
    ks = jax.random.split(key, 5)
    w_s = 0.3 * jax.random.normal(ks[0], (E, S, S), jnp.float32) / jnp.sqrt(S * 1.0)
    w_g = 0.3 * jax.random.normal(ks[1], (E, G, S), jnp.float32) / jnp.sqrt(G * 1.0)
    b = 0.01 * jax.random.normal(ks[2], (E, 1, S), jnp.float32)
    wr_s = jax.random.normal(ks[3], (1, S), jnp.float32) / jnp.sqrt(S * 1.0)
    wr_g = jax.random.normal(ks[4], (1, G), jnp.float32) / jnp.sqrt(G * 1.0)
    return (w_s, w_g, b, wr_s, wr_g)


# ----------------------------------- main ------------------------------------
if __name__ == "__main__":
    env = _ToyEnv(GOAL_SIZE)
    params = _init_params(jax.random.PRNGKey(42), STATE_SIZE, GOAL_SIZE,
                          ENSEMBLE_SIZE)

    planner = HighLevelPlannerPallas(
        env=env, params=params,
        goal_size=GOAL_SIZE, ensemble_size=ENSEMBLE_SIZE,
        plan_horizon=PLAN_HORIZON, optimisation_iters=OPT_ITERS,
        n_candidates=N_CANDIDATES, top_candidates=TOP_CANDIDATES,
        reward_scale=REWARD_SCALE, expl_scale=EXPL_SCALE,
        sample_key=jax.random.PRNGKey(1),
    )

    # deterministic example "current state" (what the torch code gets as numpy)
    state = jax.random.normal(jax.random.PRNGKey(0), (STATE_SIZE,), jnp.float32)

    goal = planner.forward(state)
    goal = jax.block_until_ready(goal)
    assert goal.shape == (GOAL_SIZE,)
    assert bool(jnp.all(jnp.isfinite(goal)))
    print("KERNEL_OK")
</pallas_src>

<mosaic_0001>
module attributes {stable_mosaic.version = 11 : i64} {
  func.func @_rollout_returns_kernel(%arg0: memref<1x128xf32, #tpu.memory_space<vmem>>, %arg1: memref<4x64x8xf32, #tpu.memory_space<vmem>>, %arg2: memref<128x128xf32, #tpu.memory_space<vmem>>, %arg3: memref<8x128xf32, #tpu.memory_space<vmem>>, %arg4: memref<1x128xf32, #tpu.memory_space<vmem>>, %arg5: memref<1x32xf32, #tpu.memory_space<vmem>>, %arg6: memref<1x8xf32, #tpu.memory_space<vmem>>, %arg7: memref<64x2xf32, #tpu.memory_space<vmem>>) attributes {dimension_semantics = [], scalar_prefetch = 0 : i64, scratch_operands = 0 : i64, tpu.core_type = #tpu.core_type<tc>} {
    %cst = arith.constant 0.000000e+00 : f32
    %0 = vector.broadcast %cst : f32 to vector<64x1xf32>
    %cst_0 = arith.constant 0.000000e+00 : f32
    %1 = vector.broadcast %cst_0 : f32 to vector<64x1xf32>
    %c0 = arith.constant 0 : index
    %c0_1 = arith.constant 0 : index
    %2 = vector.load %arg5[%c0, %c0_1] : memref<1x32xf32, #tpu.memory_space<vmem>>, vector<1x32xf32>
    %c0_2 = arith.constant 0 : index
    %c0_3 = arith.constant 0 : index
    %3 = vector.load %arg6[%c0_2, %c0_3] : memref<1x8xf32, #tpu.memory_space<vmem>>, vector<1x8xf32>
    %c0_4 = arith.constant 0 : index
    %c0_5 = arith.constant 0 : index
    %4 = vector.load %arg2[%c0_4, %c0_5] : memref<128x128xf32, #tpu.memory_space<vmem>>, vector<128x128xf32>
    %c0_6 = arith.constant 0 : index
    %c0_7 = arith.constant 0 : index
    %5 = vector.load %arg3[%c0_6, %c0_7] : memref<8x128xf32, #tpu.memory_space<vmem>>, vector<8x128xf32>
    %c0_8 = arith.constant 0 : index
    %c0_9 = arith.constant 0 : index
    %6 = vector.load %arg4[%c0_8, %c0_9] : memref<1x128xf32, #tpu.memory_space<vmem>>, vector<1x128xf32>
    %c0_10 = arith.constant 0 : index
    %c0_11 = arith.constant 0 : index
    %c0_12 = arith.constant 0 : index
    %7 = vector.load %arg1[%c0_10, %c0_11, %c0_12] : memref<4x64x8xf32, #tpu.memory_space<vmem>>, vector<1x64x8xf32>
    %8 = vector.shape_cast %7 : vector<1x64x8xf32> to vector<64x8xf32>
    %9 = vector.broadcast %3 : vector<1x8xf32> to vector<64x8xf32>
    %10 = arith.mulf %8, %9 : vector<64x8xf32>
    %cst_13 = arith.constant dense<0.000000e+00> : vector<64xf32>
    %11 = vector.multi_reduction <add>, %10, %cst_13 [1] : vector<64x8xf32> to vector<64xf32>
    %12 = vector.shape_cast %11 : vector<64xf32> to vector<64x1xf32>
    %c1 = arith.constant 1 : index
    %c0_14 = arith.constant 0 : index
    %c0_15 = arith.constant 0 : index
    %13 = vector.load %arg1[%c1, %c0_14, %c0_15] : memref<4x64x8xf32, #tpu.memory_space<vmem>>, vector<1x64x8xf32>
    %14 = vector.shape_cast %13 : vector<1x64x8xf32> to vector<64x8xf32>
    %15 = vector.broadcast %3 : vector<1x8xf32> to vector<64x8xf32>
    %16 = arith.mulf %14, %15 : vector<64x8xf32>
    %cst_16 = arith.constant dense<0.000000e+00> : vector<64xf32>
    %17 = vector.multi_reduction <add>, %16, %cst_16 [1] : vector<64x8xf32> to vector<64xf32>
    %18 = vector.shape_cast %17 : vector<64xf32> to vector<64x1xf32>
    %c2 = arith.constant 2 : index
    %c0_17 = arith.constant 0 : index
    %c0_18 = arith.constant 0 : index
    %19 = vector.load %arg1[%c2, %c0_17, %c0_18] : memref<4x64x8xf32, #tpu.memory_space<vmem>>, vector<1x64x8xf32>
    %20 = vector.shape_cast %19 : vector<1x64x8xf32> to vector<64x8xf32>
    %21 = vector.broadcast %3 : vector<1x8xf32> to vector<64x8xf32>
    %22 = arith.mulf %20, %21 : vector<64x8xf32>
    %cst_19 = arith.constant dense<0.000000e+00> : vector<64xf32>
    %23 = vector.multi_reduction <add>, %22, %cst_19 [1] : vector<64x8xf32> to vector<64xf32>
    %24 = vector.shape_cast %23 : vector<64xf32> to vector<64x1xf32>
    %c3 = arith.constant 3 : index
    %c0_20 = arith.constant 0 : index
    %c0_21 = arith.constant 0 : index
    %25 = vector.load %arg1[%c3, %c0_20, %c0_21] : memref<4x64x8xf32, #tpu.memory_space<vmem>>, vector<1x64x8xf32>
    %26 = vector.shape_cast %25 : vector<1x64x8xf32> to vector<64x8xf32>
    %27 = vector.broadcast %3 : vector<1x8xf32> to vector<64x8xf32>
    %28 = arith.mulf %26, %27 : vector<64x8xf32>
    %cst_22 = arith.constant dense<0.000000e+00> : vector<64xf32>
    %29 = vector.multi_reduction <add>, %28, %cst_22 [1] : vector<64x8xf32> to vector<64xf32>
    %30 = vector.shape_cast %29 : vector<64xf32> to vector<64x1xf32>
    %c0_23 = arith.constant 0 : index
    %c0_24 = arith.constant 0 : index
    %31 = vector.load %arg0[%c0_23, %c0_24] : memref<1x128xf32, #tpu.memory_space<vmem>>, vector<1x128xf32>
    %32 = vector.shape_cast %31 : vector<1x128xf32> to vector<1x128xf32>
    %33 = vector.broadcast %32 : vector<1x128xf32> to vector<64x128xf32>
    %c0_25 = arith.constant 0 : index
    %c0_26 = arith.constant 0 : index
    %c0_27 = arith.constant 0 : index
    %34 = vector.load %arg1[%c0_25, %c0_26, %c0_27] : memref<4x64x8xf32, #tpu.memory_space<vmem>>, vector<1x64x8xf32>
    %35 = vector.shape_cast %34 : vector<1x64x8xf32> to vector<64x8xf32>
    %cst_28 = arith.constant dense<0.000000e+00> : vector<64x128xf32>
    %36 = tpu.matmul %33, %4, %cst_28 {dimension_numbers = #tpu.dot_dimension_numbers<[1], [0], [0], [1], [0, 0, 1, 1], [], []>} : vector<64x128xf32>, vector<128x128xf32>, vector<64x128xf32> -> vector<64x128xf32>
    %cst_29 = arith.constant dense<0.000000e+00> : vector<64x128xf32>
    %37 = tpu.matmul %35, %5, %cst_29 {dimension_numbers = #tpu.dot_dimension_numbers<[1], [0], [0], [1], [0, 0, 1, 1], [], []>} : vector<64x8xf32>, vector<8x128xf32>, vector<64x128xf32> -> vector<64x128xf32>
    %38 = arith.addf %36, %37 : vector<64x128xf32>
    %39 = vector.broadcast %6 : vector<1x128xf32> to vector<64x128xf32>
    %40 = arith.addf %38, %39 : vector<64x128xf32>
    %41 = math.tanh %40 : vector<64x128xf32>
    %42 = arith.addf %33, %41 : vector<64x128xf32>
    %c32_i32 = arith.constant 32 : i32
    %43 = tpu.dynamic_rotate %41 by %c32_i32 dim 1 : vector<64x128xf32>, i32 -> vector<64x128xf32>
    %44 = arith.addf %41, %43 : vector<64x128xf32>
    %c64_i32 = arith.constant 64 : i32
    %45 = tpu.dynamic_rotate %44 by %c64_i32 dim 1 : vector<64x128xf32>, i32 -> vector<64x128xf32>
    %46 = arith.addf %44, %45 : vector<64x128xf32>
    %47 = vector.extract_strided_slice %46 {offsets = [0, 0], sizes = [64, 32], strides = [1, 1]} : vector<64x128xf32> to vector<64x32xf32>
    %48 = arith.mulf %41, %41 : vector<64x128xf32>
    %cst_30 = arith.constant dense<0.000000e+00> : vector<64xf32>
    %49 = vector.multi_reduction <add>, %48, %cst_30 [1] : vector<64x128xf32> to vector<64xf32>
    %50 = vector.shape_cast %49 : vector<64xf32> to vector<64x1xf32>
    %cst_31 = arith.constant 2.500000e-01 : f32
    %51 = vector.broadcast %cst_31 : f32 to vector<64x1xf32>
    %52 = arith.mulf %51, %50 : vector<64x1xf32>
    %53 = arith.mulf %47, %47 : vector<64x32xf32>
    %cst_32 = arith.constant dense<0.000000e+00> : vector<64xf32>
    %54 = vector.multi_reduction <add>, %53, %cst_32 [1] : vector<64x32xf32> to vector<64xf32>
    %55 = vector.shape_cast %54 : vector<64xf32> to vector<64x1xf32>
    %cst_33 = arith.constant 6.250000e-02 : f32
    %56 = vector.broadcast %cst_33 : f32 to vector<64x1xf32>
    %57 = arith.mulf %56, %55 : vector<64x1xf32>
    %58 = arith.subf %52, %57 : vector<64x1xf32>
    %59 = arith.addf %1, %58 : vector<64x1xf32>
    %60 = vector.extract_strided_slice %42 {offsets = [0, 0], sizes = [64, 32], strides = [1, 1]} : vector<64x128xf32> to vector<64x32xf32>
    %61 = vector.broadcast %2 : vector<1x32xf32> to vector<64x32xf32>
    %62 = arith.mulf %60, %61 : vector<64x32xf32>
    %cst_34 = arith.constant dense<0.000000e+00> : vector<64xf32>
    %63 = vector.multi_reduction <add>, %62, %cst_34 [1] : vector<64x32xf32> to vector<64xf32>
    %64 = vector.shape_cast %63 : vector<64xf32> to vector<64x1xf32>
    %65 = arith.addf %64, %12 : vector<64x1xf32>
    %66 = math.tanh %65 : vector<64x1xf32>
    %cst_35 = arith.constant 2.500000e-01 : f32
    %67 = vector.broadcast %cst_35 : f32 to vector<64x1xf32>
    %68 = arith.mulf %67, %66 : vector<64x1xf32>
    %69 = arith.addf %0, %68 : vector<64x1xf32>
    %70 = vector.extract_strided_slice %42 {offsets = [0, 32], sizes = [64, 32], strides = [1, 1]} : vector<64x128xf32> to vector<64x32xf32>
    %71 = vector.broadcast %2 : vector<1x32xf32> to vector<64x32xf32>
    %72 = arith.mulf %70, %71 : vector<64x32xf32>
    %cst_36 = arith.constant dense<0.000000e+00> : vector<64xf32>
    %73 = vector.multi_reduction <add>, %72, %cst_36 [1] : vector<64x32xf32> to vector<64xf32>
    %74 = vector.shape_cast %73 : vector<64xf32> to vector<64x1xf32>
    %75 = arith.addf %74, %18 : vector<64x1xf32>
    %76 = math.tanh %75 : vector<64x1xf32>
    %cst_37 = arith.constant 2.500000e-01 : f32
    %77 = vector.broadcast %cst_37 : f32 to vector<64x1xf32>
    %78 = arith.mulf %77, %76 : vector<64x1xf32>
    %79 = arith.addf %69, %78 : vector<64x1xf32>
    %80 = vector.extract_strided_slice %42 {offsets = [0, 64], sizes = [64, 32], strides = [1, 1]} : vector<64x128xf32> to vector<64x32xf32>
    %81 = vector.broadcast %2 : vector<1x32xf32> to vector<64x32xf32>
    %82 = arith.mulf %80, %81 : vector<64x32xf32>
    %cst_38 = arith.constant dense<0.000000e+00> : vector<64xf32>
    %83 = vector.multi_reduction <add>, %82, %cst_38 [1] : vector<64x32xf32> to vector<64xf32>
    %84 = vector.shape_cast %83 : vector<64xf32> to vector<64x1xf32>
    %85 = arith.addf %84, %24 : vector<64x1xf32>
    %86 = math.tanh %85 : vector<64x1xf32>
    %cst_39 = arith.constant 2.500000e-01 : f32
    %87 = vector.broadcast %cst_39 : f32 to vector<64x1xf32>
    %88 = arith.mulf %87, %86 : vector<64x1xf32>
    %89 = arith.addf %79, %88 : vector<64x1xf32>
    %90 = vector.extract_strided_slice %42 {offsets = [0, 96], sizes = [64, 32], strides = [1, 1]} : vector<64x128xf32> to vector<64x32xf32>
    %91 = vector.broadcast %2 : vector<1x32xf32> to vector<64x32xf32>
    %92 = arith.mulf %90, %91 : vector<64x32xf32>
    %cst_40 = arith.constant dense<0.000000e+00> : vector<64xf32>
    %93 = vector.multi_reduction <add>, %92, %cst_40 [1] : vector<64x32xf32> to vector<64xf32>
    %94 = vector.shape_cast %93 : vector<64xf32> to vector<64x1xf32>
    %95 = arith.addf %94, %30 : vector<64x1xf32>
    %96 = math.tanh %95 : vector<64x1xf32>
    %cst_41 = arith.constant 2.500000e-01 : f32
    %97 = vector.broadcast %cst_41 : f32 to vector<64x1xf32>
    %98 = arith.mulf %97, %96 : vector<64x1xf32>
    %99 = arith.addf %89, %98 : vector<64x1xf32>
    %c1_42 = arith.constant 1 : index
    %c0_43 = arith.constant 0 : index
    %c0_44 = arith.constant 0 : index
    %100 = vector.load %arg1[%c1_42, %c0_43, %c0_44] : memref<4x64x8xf32, #tpu.memory_space<vmem>>, vector<1x64x8xf32>
    %101 = vector.shape_cast %100 : vector<1x64x8xf32> to vector<64x8xf32>
    %cst_45 = arith.constant dense<0.000000e+00> : vector<64x128xf32>
    %102 = tpu.matmul %42, %4, %cst_45 {dimension_numbers = #tpu.dot_dimension_numbers<[1], [0], [0], [1], [0, 0, 1, 1], [], []>} : vector<64x128xf32>, vector<128x128xf32>, vector<64x128xf32> -> vector<64x128xf32>
    %cst_46 = arith.constant dense<0.000000e+00> : vector<64x128xf32>
    %103 = tpu.matmul %101, %5, %cst_46 {dimension_numbers = #tpu.dot_dimension_numbers<[1], [0], [0], [1], [0, 0, 1, 1], [], []>} : vector<64x8xf32>, vector<8x128xf32>, vector<64x128xf32> -> vector<64x128xf32>
    %104 = arith.addf %102, %103 : vector<64x128xf32>
    %105 = vector.broadcast %6 : vector<1x128xf32> to vector<64x128xf32>
    %106 = arith.addf %104, %105 : vector<64x128xf32>
    %107 = math.tanh %106 : vector<64x128xf32>
    %108 = arith.addf %42, %107 : vector<64x128xf32>
    %c32_i32_47 = arith.constant 32 : i32
    %109 = tpu.dynamic_rotate %107 by %c32_i32_47 dim 1 : vector<64x128xf32>, i32 -> vector<64x128xf32>
    %110 = arith.addf %107, %109 : vector<64x128xf32>
    %c64_i32_48 = arith.constant 64 : i32
    %111 = tpu.dynamic_rotate %110 by %c64_i32_48 dim 1 : vector<64x128xf32>, i32 -> vector<64x128xf32>
    %112 = arith.addf %110, %111 : vector<64x128xf32>
    %113 = vector.extract_strided_slice %112 {offsets = [0, 0], sizes = [64, 32], strides = [1, 1]} : vector<64x128xf32> to vector<64x32xf32>
    %114 = arith.mulf %107, %107 : vector<64x128xf32>
    %cst_49 = arith.constant dense<0.000000e+00> : vector<64xf32>
    %115 = vector.multi_reduction <add>, %114, %cst_49 [1] : vector<64x128xf32> to vector<64xf32>
    %116 = vector.shape_cast %115 : vector<64xf32> to vector<64x1xf32>
    %cst_50 = arith.constant 2.500000e-01 : f32
    %117 = vector.broadcast %cst_50 : f32 to vector<64x1xf32>
    %118 = arith.mulf %117, %116 : vector<64x1xf32>
    %119 = arith.mulf %113, %113 : vector<64x32xf32>
    %cst_51 = arith.constant dense<0.000000e+00> : vector<64xf32>
    %120 = vector.multi_reduction <add>, %119, %cst_51 [1] : vector<64x32xf32> to vector<64xf32>
    %121 = vector.shape_cast %120 : vector<64xf32> to vector<64x1xf32>
    %cst_52 = arith.constant 6.250000e-02 : f32
    %122 = vector.broadcast %cst_52 : f32 to vector<64x1xf32>
    %123 = arith.mulf %122, %121 : vector<64x1xf32>
    %124 = arith.subf %118, %123 : vector<64x1xf32>
    %125 = arith.addf %59, %124 : vector<64x1xf32>
    %126 = vector.extract_strided_slice %108 {offsets = [0, 0], sizes = [64, 32], strides = [1, 1]} : vector<64x128xf32> to vector<64x32xf32>
    %127 = vector.broadcast %2 : vector<1x32xf32> to vector<64x32xf32>
    %128 = arith.mulf %126, %127 : vector<64x32xf32>
    %cst_53 = arith.constant dense<0.000000e+00> : vector<64xf32>
    %129 = vector.multi_reduction <add>, %128, %cst_53 [1] : vector<64x32xf32> to vector<64xf32>
    %130 = vector.shape_cast %129 : vector<64xf32> to vector<64x1xf32>
    %131 = arith.addf %130, %12 : vector<64x1xf32>
    %132 = math.tanh %131 : vector<64x1xf32>
    %cst_54 = arith.constant 2.500000e-01 : f32
    %133 = vector.broadcast %cst_54 : f32 to vector<64x1xf32>
    %134 = arith.mulf %133, %132 : vector<64x1xf32>
    %135 = arith.addf %99, %134 : vector<64x1xf32>
    %136 = vector.extract_strided_slice %108 {offsets = [0, 32], sizes = [64, 32], strides = [1, 1]} : vector<64x128xf32> to vector<64x32xf32>
    %137 = vector.broadcast %2 : vector<1x32xf32> to vector<64x32xf32>
    %138 = arith.mulf %136, %137 : vector<64x32xf32>
    %cst_55 = arith.constant dense<0.000000e+00> : vector<64xf32>
    %139 = vector.multi_reduction <add>, %138, %cst_55 [1] : vector<64x32xf32> to vector<64xf32>
    %140 = vector.shape_cast %139 : vector<64xf32> to vector<64x1xf32>
    %141 = arith.addf %140, %18 : vector<64x1xf32>
    %142 = math.tanh %141 : vector<64x1xf32>
    %cst_56 = arith.constant 2.500000e-01 : f32
    %143 = vector.broadcast %cst_56 : f32 to vector<64x1xf32>
    %144 = arith.mulf %143, %142 : vector<64x1xf32>
    %145 = arith.addf %135, %144 : vector<64x1xf32>
    %146 = vector.extract_strided_slice %108 {offsets = [0, 64], sizes = [64, 32], strides = [1, 1]} : vector<64x128xf32> to vector<64x32xf32>
    %147 = vector.broadcast %2 : vector<1x32xf32> to vector<64x32xf32>
    %148 = arith.mulf %146, %147 : vector<64x32xf32>
    %cst_57 = arith.constant dense<0.000000e+00> : vector<64xf32>
    %149 = vector.multi_reduction <add>, %148, %cst_57 [1] : vector<64x32xf32> to vector<64xf32>
    %150 = vector.shape_cast %149 : vector<64xf32> to vector<64x1xf32>
    %151 = arith.addf %150, %24 : vector<64x1xf32>
    %152 = math.tanh %151 : vector<64x1xf32>
    %cst_58 = arith.constant 2.500000e-01 : f32
    %153 = vector.broadcast %cst_58 : f32 to vector<64x1xf32>
    %154 = arith.mulf %153, %152 : vector<64x1xf32>
    %155 = arith.addf %145, %154 : vector<64x1xf32>
    %156 = vector.extract_strided_slice %108 {offsets = [0, 96], sizes = [64, 32], strides = [1, 1]} : vector<64x128xf32> to vector<64x32xf32>
    %157 = vector.broadcast %2 : vector<1x32xf32> to vector<64x32xf32>
    %158 = arith.mulf %156, %157 : vector<64x32xf32>
    %cst_59 = arith.constant dense<0.000000e+00> : vector<64xf32>
    %159 = vector.multi_reduction <add>, %158, %cst_59 [1] : vector<64x32xf32> to vector<64xf32>
    %160 = vector.shape_cast %159 : vector<64xf32> to vector<64x1xf32>
    %161 = arith.addf %160, %30 : vector<64x1xf32>
    %162 = math.tanh %161 : vector<64x1xf32>
    %cst_60 = arith.constant 2.500000e-01 : f32
    %163 = vector.broadcast %cst_60 : f32 to vector<64x1xf32>
    %164 = arith.mulf %163, %162 : vector<64x1xf32>
    %165 = arith.addf %155, %164 : vector<64x1xf32>
    %c2_61 = arith.constant 2 : index
    %c0_62 = arith.constant 0 : index
    %c0_63 = arith.constant 0 : index
    %166 = vector.load %arg1[%c2_61, %c0_62, %c0_63] : memref<4x64x8xf32, #tpu.memory_space<vmem>>, vector<1x64x8xf32>
    %167 = vector.shape_cast %166 : vector<1x64x8xf32> to vector<64x8xf32>
    %cst_64 = arith.constant dense<0.000000e+00> : vector<64x128xf32>
    %168 = tpu.matmul %108, %4, %cst_64 {dimension_numbers = #tpu.dot_dimension_numbers<[1], [0], [0], [1], [0, 0, 1, 1], [], []>} : vector<64x128xf32>, vector<128x128xf32>, vector<64x128xf32> -> vector<64x128xf32>
    %cst_65 = arith.constant dense<0.000000e+00> : vector<64x128xf32>
    %169 = tpu.matmul %167, %5, %cst_65 {dimension_numbers = #tpu.dot_dimension_numbers<[1], [0], [0], [1], [0, 0, 1, 1], [], []>} : vector<64x8xf32>, vector<8x128xf32>, vector<64x128xf32> -> vector<64x128xf32>
    %170 = arith.addf %168, %169 : vector<64x128xf32>
    %171 = vector.broadcast %6 : vector<1x128xf32> to vector<64x128xf32>
    %172 = arith.addf %170, %171 : vector<64x128xf32>
    %173 = math.tanh %172 : vector<64x128xf32>
    %174 = arith.addf %108, %173 : vector<64x128xf32>
    %c32_i32_66 = arith.constant 32 : i32
    %175 = tpu.dynamic_rotate %173 by %c32_i32_66 dim 1 : vector<64x128xf32>, i32 -> vector<64x128xf32>
    %176 = arith.addf %173, %175 : vector<64x128xf32>
    %c64_i32_67 = arith.constant 64 : i32
    %177 = tpu.dynamic_rotate %176 by %c64_i32_67 dim 1 : vector<64x128xf32>, i32 -> vector<64x128xf32>
    %178 = arith.addf %176, %177 : vector<64x128xf32>
    %179 = vector.extract_strided_slice %178 {offsets = [0, 0], sizes = [64, 32], strides = [1, 1]} : vector<64x128xf32> to vector<64x32xf32>
    %180 = arith.mulf %173, %173 : vector<64x128xf32>
    %cst_68 = arith.constant dense<0.000000e+00> : vector<64xf32>
    %181 = vector.multi_reduction <add>, %180, %cst_68 [1] : vector<64x128xf32> to vector<64xf32>
    %182 = vector.shape_cast %181 : vector<64xf32> to vector<64x1xf32>
    %cst_69 = arith.constant 2.500000e-01 : f32
    %183 = vector.broadcast %cst_69 : f32 to vector<64x1xf32>
    %184 = arith.mulf %183, %182 : vector<64x1xf32>
    %185 = arith.mulf %179, %179 : vector<64x32xf32>
    %cst_70 = arith.constant dense<0.000000e+00> : vector<64xf32>
    %186 = vector.multi_reduction <add>, %185, %cst_70 [1] : vector<64x32xf32> to vector<64xf32>
    %187 = vector.shape_cast %186 : vector<64xf32> to vector<64x1xf32>
    %cst_71 = arith.constant 6.250000e-02 : f32
    %188 = vector.broadcast %cst_71 : f32 to vector<64x1xf32>
    %189 = arith.mulf %188, %187 : vector<64x1xf32>
    %190 = arith.subf %184, %189 : vector<64x1xf32>
    %191 = arith.addf %125, %190 : vector<64x1xf32>
    %192 = vector.extract_strided_slice %174 {offsets = [0, 0], sizes = [64, 32], strides = [1, 1]} : vector<64x128xf32> to vector<64x32xf32>
    %193 = vector.broadcast %2 : vector<1x32xf32> to vector<64x32xf32>
    %194 = arith.mulf %192, %193 : vector<64x32xf32>
    %cst_72 = arith.constant dense<0.000000e+00> : vector<64xf32>
    %195 = vector.multi_reduction <add>, %194, %cst_72 [1] : vector<64x32xf32> to vector<64xf32>
    %196 = vector.shape_cast %195 : vector<64xf32> to vector<64x1xf32>
    %197 = arith.addf %196, %12 : vector<64x1xf32>
    %198 = math.tanh %197 : vector<64x1xf32>
    %cst_73 = arith.constant 2.500000e-01 : f32
    %199 = vector.broadcast %cst_73 : f32 to vector<64x1xf32>
    %200 = arith.mulf %199, %198 : vector<64x1xf32>
    %201 = arith.addf %165, %200 : vector<64x1xf32>
    %202 = vector.extract_strided_slice %174 {offsets = [0, 32], sizes = [64, 32], strides = [1, 1]} : vector<64x128xf32> to vector<64x32xf32>
    %203 = vector.broadcast %2 : vector<1x32xf32> to vector<64x32xf32>
    %204 = arith.mulf %202, %203 : vector<64x32xf32>
    %cst_74 = arith.constant dense<0.000000e+00> : vector<64xf32>
    %205 = vector.multi_reduction <add>, %204, %cst_74 [1] : vector<64x32xf32> to vector<64xf32>
    %206 = vector.shape_cast %205 : vector<64xf32> to vector<64x1xf32>
    %207 = arith.addf %206, %18 : vector<64x1xf32>
    %208 = math.tanh %207 : vector<64x1xf32>
    %cst_75 = arith.constant 2.500000e-01 : f32
    %209 = vector.broadcast %cst_75 : f32 to vector<64x1xf32>
    %210 = arith.mulf %209, %208 : vector<64x1xf32>
    %211 = arith.addf %201, %210 : vector<64x1xf32>
    %212 = vector.extract_strided_slice %174 {offsets = [0, 64], sizes = [64, 32], strides = [1, 1]} : vector<64x128xf32> to vector<64x32xf32>
    %213 = vector.broadcast %2 : vector<1x32xf32> to vector<64x32xf32>
    %214 = arith.mulf %212, %213 : vector<64x32xf32>
    %cst_76 = arith.constant dense<0.000000e+00> : vector<64xf32>
    %215 = vector.multi_reduction <add>, %214, %cst_76 [1] : vector<64x32xf32> to vector<64xf32>
    %216 = vector.shape_cast %215 : vector<64xf32> to vector<64x1xf32>
    %217 = arith.addf %216, %24 : vector<64x1xf32>
    %218 = math.tanh %217 : vector<64x1xf32>
    %cst_77 = arith.constant 2.500000e-01 : f32
    %219 = vector.broadcast %cst_77 : f32 to vector<64x1xf32>
    %220 = arith.mulf %219, %218 : vector<64x1xf32>
    %221 = arith.addf %211, %220 : vector<64x1xf32>
    %222 = vector.extract_strided_slice %174 {offsets = [0, 96], sizes = [64, 32], strides = [1, 1]} : vector<64x128xf32> to vector<64x32xf32>
    %223 = vector.broadcast %2 : vector<1x32xf32> to vector<64x32xf32>
    %224 = arith.mulf %222, %223 : vector<64x32xf32>
    %cst_78 = arith.constant dense<0.000000e+00> : vector<64xf32>
    %225 = vector.multi_reduction <add>, %224, %cst_78 [1] : vector<64x32xf32> to vector<64xf32>
    %226 = vector.shape_cast %225 : vector<64xf32> to vector<64x1xf32>
    %227 = arith.addf %226, %30 : vector<64x1xf32>
    %228 = math.tanh %227 : vector<64x1xf32>
    %cst_79 = arith.constant 2.500000e-01 : f32
    %229 = vector.broadcast %cst_79 : f32 to vector<64x1xf32>
    %230 = arith.mulf %229, %228 : vector<64x1xf32>
    %231 = arith.addf %221, %230 : vector<64x1xf32>
    %c3_80 = arith.constant 3 : index
    %c0_81 = arith.constant 0 : index
    %c0_82 = arith.constant 0 : index
    %232 = vector.load %arg1[%c3_80, %c0_81, %c0_82] : memref<4x64x8xf32, #tpu.memory_space<vmem>>, vector<1x64x8xf32>
    %233 = vector.shape_cast %232 : vector<1x64x8xf32> to vector<64x8xf32>
    %cst_83 = arith.constant dense<0.000000e+00> : vector<64x128xf32>
    %234 = tpu.matmul %174, %4, %cst_83 {dimension_numbers = #tpu.dot_dimension_numbers<[1], [0], [0], [1], [0, 0, 1, 1], [], []>} : vector<64x128xf32>, vector<128x128xf32>, vector<64x128xf32> -> vector<64x128xf32>
    %cst_84 = arith.constant dense<0.000000e+00> : vector<64x128xf32>
    %235 = tpu.matmul %233, %5, %cst_84 {dimension_numbers = #tpu.dot_dimension_numbers<[1], [0], [0], [1], [0, 0, 1, 1], [], []>} : vector<64x8xf32>, vector<8x128xf32>, vector<64x128xf32> -> vector<64x128xf32>
    %236 = arith.addf %234, %235 : vector<64x128xf32>
    %237 = vector.broadcast %6 : vector<1x128xf32> to vector<64x128xf32>
    %238 = arith.addf %236, %237 : vector<64x128xf32>
    %239 = math.tanh %238 : vector<64x128xf32>
    %240 = arith.addf %174, %239 : vector<64x128xf32>
    %c32_i32_85 = arith.constant 32 : i32
    %241 = tpu.dynamic_rotate %239 by %c32_i32_85 dim 1 : vector<64x128xf32>, i32 -> vector<64x128xf32>
    %242 = arith.addf %239, %241 : vector<64x128xf32>
    %c64_i32_86 = arith.constant 64 : i32
    %243 = tpu.dynamic_rotate %242 by %c64_i32_86 dim 1 : vector<64x128xf32>, i32 -> vector<64x128xf32>
    %244 = arith.addf %242, %243 : vector<64x128xf32>
    %245 = vector.extract_strided_slice %244 {offsets = [0, 0], sizes = [64, 32], strides = [1, 1]} : vector<64x128xf32> to vector<64x32xf32>
    %246 = arith.mulf %239, %239 : vector<64x128xf32>
    %cst_87 = arith.constant dense<0.000000e+00> : vector<64xf32>
    %247 = vector.multi_reduction <add>, %246, %cst_87 [1] : vector<64x128xf32> to vector<64xf32>
    %248 = vector.shape_cast %247 : vector<64xf32> to vector<64x1xf32>
    %cst_88 = arith.constant 2.500000e-01 : f32
    %249 = vector.broadcast %cst_88 : f32 to vector<64x1xf32>
    %250 = arith.mulf %249, %248 : vector<64x1xf32>
    %251 = arith.mulf %245, %245 : vector<64x32xf32>
    %cst_89 = arith.constant dense<0.000000e+00> : vector<64xf32>
    %252 = vector.multi_reduction <add>, %251, %cst_89 [1] : vector<64x32xf32> to vector<64xf32>
    %253 = vector.shape_cast %252 : vector<64xf32> to vector<64x1xf32>
    %cst_90 = arith.constant 6.250000e-02 : f32
    %254 = vector.broadcast %cst_90 : f32 to vector<64x1xf32>
    %255 = arith.mulf %254, %253 : vector<64x1xf32>
    %256 = arith.subf %250, %255 : vector<64x1xf32>
    %257 = arith.addf %191, %256 : vector<64x1xf32>
    %258 = vector.extract_strided_slice %240 {offsets = [0, 0], sizes = [64, 32], strides = [1, 1]} : vector<64x128xf32> to vector<64x32xf32>
    %259 = vector.broadcast %2 : vector<1x32xf32> to vector<64x32xf32>
    %260 = arith.mulf %258, %259 : vector<64x32xf32>
    %cst_91 = arith.constant dense<0.000000e+00> : vector<64xf32>
    %261 = vector.multi_reduction <add>, %260, %cst_91 [1] : vector<64x32xf32> to vector<64xf32>
    %262 = vector.shape_cast %261 : vector<64xf32> to vector<64x1xf32>
    %263 = arith.addf %262, %12 : vector<64x1xf32>
    %264 = math.tanh %263 : vector<64x1xf32>
    %cst_92 = arith.constant 2.500000e-01 : f32
    %265 = vector.broadcast %cst_92 : f32 to vector<64x1xf32>
    %266 = arith.mulf %265, %264 : vector<64x1xf32>
    %267 = arith.addf %231, %266 : vector<64x1xf32>
    %268 = vector.extract_strided_slice %240 {offsets = [0, 32], sizes = [64, 32], strides = [1, 1]} : vector<64x128xf32> to vector<64x32xf32>
    %269 = vector.broadcast %2 : vector<1x32xf32> to vector<64x32xf32>
    %270 = arith.mulf %268, %269 : vector<64x32xf32>
    %cst_93 = arith.constant dense<0.000000e+00> : vector<64xf32>
    %271 = vector.multi_reduction <add>, %270, %cst_93 [1] : vector<64x32xf32> to vector<64xf32>
    %272 = vector.shape_cast %271 : vector<64xf32> to vector<64x1xf32>
    %273 = arith.addf %272, %18 : vector<64x1xf32>
    %274 = math.tanh %273 : vector<64x1xf32>
    %cst_94 = arith.constant 2.500000e-01 : f32
    %275 = vector.broadcast %cst_94 : f32 to vector<64x1xf32>
    %276 = arith.mulf %275, %274 : vector<64x1xf32>
    %277 = arith.addf %267, %276 : vector<64x1xf32>
    %278 = vector.extract_strided_slice %240 {offsets = [0, 64], sizes = [64, 32], strides = [1, 1]} : vector<64x128xf32> to vector<64x32xf32>
    %279 = vector.broadcast %2 : vector<1x32xf32> to vector<64x32xf32>
    %280 = arith.mulf %278, %279 : vector<64x32xf32>
    %cst_95 = arith.constant dense<0.000000e+00> : vector<64xf32>
    %281 = vector.multi_reduction <add>, %280, %cst_95 [1] : vector<64x32xf32> to vector<64xf32>
    %282 = vector.shape_cast %281 : vector<64xf32> to vector<64x1xf32>
    %283 = arith.addf %282, %24 : vector<64x1xf32>
    %284 = math.tanh %283 : vector<64x1xf32>
    %cst_96 = arith.constant 2.500000e-01 : f32
    %285 = vector.broadcast %cst_96 : f32 to vector<64x1xf32>
    %286 = arith.mulf %285, %284 : vector<64x1xf32>
    %287 = arith.addf %277, %286 : vector<64x1xf32>
    %288 = vector.extract_strided_slice %240 {offsets = [0, 96], sizes = [64, 32], strides = [1, 1]} : vector<64x128xf32> to vector<64x32xf32>
    %289 = vector.broadcast %2 : vector<1x32xf32> to vector<64x32xf32>
    %290 = arith.mulf %288, %289 : vector<64x32xf32>
    %cst_97 = arith.constant dense<0.000000e+00> : vector<64xf32>
    %291 = vector.multi_reduction <add>, %290, %cst_97 [1] : vector<64x32xf32> to vector<64xf32>
    %292 = vector.shape_cast %291 : vector<64xf32> to vector<64x1xf32>
    %293 = arith.addf %292, %30 : vector<64x1xf32>
    %294 = math.tanh %293 : vector<64x1xf32>
    %cst_98 = arith.constant 2.500000e-01 : f32
    %295 = vector.broadcast %cst_98 : f32 to vector<64x1xf32>
    %296 = arith.mulf %295, %294 : vector<64x1xf32>
    %297 = arith.addf %287, %296 : vector<64x1xf32>
    %298 = tpu.concatenate %297, %257 in 1 : vector<64x1xf32>, vector<64x1xf32> -> vector<64x2xf32>
    %c0_99 = arith.constant 0 : index
    %c0_100 = arith.constant 0 : index
    %299 = vector.load %arg7[%c0_99, %c0_100] : memref<64x2xf32, #tpu.memory_space<vmem>>, vector<64x2xf32>
    tpu.vector_store %arg7[%c0_99, %c0_100], %298 {strides = array<i32>} : memref<64x2xf32, #tpu.memory_space<vmem>>, vector<64x2xf32>,
    return
  }
}

</mosaic_0001>

<bundles_post_ra>
// kernel: tile.8
= control target key start
LH: loop header
LB: loop body
LE: loop exit
PB: predicated region body
PF: predicated region fallthrough
CT: control target
= control target key end

     0   :  { %s22_s0 = inlined_call_operand.vmem [shape: f32[32], index: 0, kind: input, shape index: {}]   ;;  %s23_s1 = inlined_call_operand.vmem [shape: f32[4,32], index: 1, kind: output, shape index: {}]  }
   0x1   :  { %v4_v0 = vld [vmem:[%s22_s0] ss:$0 sm:$0xff] }
   0x2   :  { %5 = vst [vmem:[%s23_s1] sm:$0xf] %v4_v0 }

// kernel: tile.9
= control target key start
LH: loop header
LB: loop body
LE: loop exit
PB: predicated region body
PF: predicated region fallthrough
CT: control target
= control target key end

     0   :  { %vm7_vm0 = vcmask 261120   ;;  %s37_s8 = smov 32   ;;  %s38_s9 = smov 64   ;;  %vm13_vm1 = vcmask 1048320   ;;  %vm19_vm2 = vcmask 785920   ;;  %vm25_vm3 = vcmask 523520   ;;  %s55_s0 = inlined_call_operand.vmem [shape: f32[4,32], index: 0, kind: input, shape index: {}]   ;;  %s56_s1 = inlined_call_operand.vmem [shape: f32[1,128], index: 1, kind: output, shape index: {}]  }
   0x1   :  { %v4_v0 = vld [vmem:[%s55_s0] sm:$0xf]  ;;  %s36_s0 = smov 96  }
   0x2   :  { %5 = vst [vmem:[#allocation1] sm:$0xf] %v4_v0 }
   0x9   :  { %v10_v1 = vld [vmem:[#allocation1 + $0x3] sm:$0x1]   ;;  %v22_v2 = vld [vmem:[#allocation1 + $0x1] sm:$0x1]   ;;  %v6_v3 = vld [vmem:[#allocation1] sm:$0x1]  }
   0xa   :  { %11 = vrot.lane.b32.xlu0 %v10_v1, %s36_s0  ;;  %23 = vrot.lane.b32.xlu1 %v22_v2, %s37_s8  ;;  %v16_v4 = vld [vmem:[#allocation1 + $0x2] sm:$0x1]   ;;  %8 = vst.msk [vmem:[#allocation0] sm:$0x1] %vm7_vm0, %v6_v3  }
   0xe   :  { %17 = vrot.lane.b32.xlu0 %v16_v4, %s38_s9 }
  0x7c   :  { %v12_v5 = vpop.permute.xlu0 %11   ;;  %v24_v6 = vpop.permute.xlu1 %23  }
  0x7d   :  { %14 = vst.msk [vmem:[#allocation0] sm:$0x1] %vm13_vm1, %v12_v5  }
  0x80   :  { %v18_v7 = vpop.permute.xlu0 %17  }
  0x81   :  { %20 = vst.msk [vmem:[#allocation0] sm:$0x1] %vm19_vm2, %v18_v7  }
  0x82   :  { %26 = vst.msk [vmem:[#allocation0] sm:$0x1] %vm25_vm3, %v24_v6  }
  0x89   :  { %v30_v8 = vld [vmem:[#allocation0] sm:$0x1] }
  0x8a   :  { %32 = vst [vmem:[%s56_s1] sm:$0x1] %v30_v8 }

// kernel: _plan.2
= control target key start
LH: loop header
LB: loop body
LE: loop exit
PB: predicated region body
PF: predicated region fallthrough
CT: control target
= control target key end

     0   :  { %vm68_vm0 = vcmask 64512   ;;  %s4161_s22 = smov 64   ;;  %s4162_s23 = smov 32   ;;  %vm575_vm1 = vcmask 261120   ;;  %vm3229_vm2 = vcmask 7168   ;;  %vm3238_vm3 = vcmask 15360   ;;  %s6701_s3 = inlined_call_operand.vmem [shape: f32[8,128], index: 3, kind: input, shape index: {}]   ;;  %s6702_s1 = inlined_call_operand.vmem [shape: f32[4,64,8], index: 1, kind: input, shape index: {}]   ;;  %s6703_s6 = inlined_call_operand.vmem [shape: f32[1,8], index: 6, kind: input, shape index: {}]   ;;  %s6704_s2 = inlined_call_operand.vmem [shape: f32[128,128], index: 2, kind: input, shape index: {}]   ;;  %s6705_s0 = inlined_call_operand.vmem [shape: f32[1,128], index: 0, kind: input, shape index: {}]   ;;  %s6706_s5 = inlined_call_operand.vmem [shape: f32[1,32], index: 5, kind: input, shape index: {}]   ;;  %s6707_s4 = inlined_call_operand.vmem [shape: f32[1,128], index: 4, kind: input, shape index: {}]   ;;  %s6708_s7 = inlined_call_operand.vmem [shape: f32[64,2], index: 7, kind: output, shape index: {}]  }
   0x1   :  { %v4207_v0 = vld [vmem:[%s6701_s3] sm:$0xff]  ;;  %v29_v5 = vld [vmem:[%s6704_s2 + $0x8] sm:$0xff]  ;;  %v30_v8 = vld [vmem:[%s6704_s2 + $0x10] sm:$0xff]  ;;  %s4163_s24 = smov 96  }
   0x2   :  { %v4212_v1 = vld [vmem:[%s6703_s6] ss:$0 sm:$0xff]  ;;  %3443 = vmatprep.subr.mxu0 %v4207_v0  ;;  %v47_v6 = vld [vmem:[%s6702_s1 + $0x8] sm:$0xff]  ;;  %v31_v9 = vld [vmem:[%s6704_s2 + $0x18] sm:$0xff]  ;;  %3501 = vmatprep.subr.mxu1 %v4207_v0 }
   0x3   :  { %v46_v2 = vld [vmem:[%s6702_s1] sm:$0xff]  ;;  %3444 = vmatpush3.msra.mxu0 %v4207_v0  ;;  %v61_v10 = vmul.f32 %v4212_v1, %v47_v6  ;;  %v4241_v11 = vpack.c.bf16 %v31_v9, %v30_v8  ;;  %v33_v13 = vld [vmem:[%s6704_s2 + $0x28] sm:$0xff]  ;;  %3502 = vmatpush3.msra.mxu1 %v4207_v0  ;;  %v48_v15 = vld [vmem:[%s6702_s1 + $0x10] sm:$0xff] }
   0x4   :  { %v60_v3 = vmul.f32 %v4212_v1, %v46_v2  ;;  %3445 = vmatprep.mubr.msk.f32.mxu0 %vm68_vm0, %v46_v2  ;;  %v28_v4 = vld [vmem:[%s6704_s2] sm:$0xff]  ;;  %v49_v16 = vld [vmem:[%s6702_s1 + $0x18] sm:$0xff]  ;;  %v62_v17 = vmul.f32 %v4212_v1, %v48_v15  ;;  %v34_v22 = vld [vmem:[%s6704_s2 + $0x30] sm:$0xff] }
   0x5   :  { %v4230_v7 = vpack.c.bf16 %v29_v5, %v28_v4  ;;  %3446 = vmatmul.mubr.msk.f32.vlgmr.msra.gmra.mrb[0].mxu0 %vm68_vm0, %v47_v6  ;;  %v32_v12 = vld [vmem:[%s6704_s2 + $0x20] sm:$0xff]  ;;  %v72_v20 = vsel %vm68_vm0, %v61_v10, 0.0  ;;  %v63_v21 = vmul.f32 %v4212_v1, %v49_v16  ;;  %v35_v23 = vld [vmem:[%s6704_s2 + $0x38] sm:$0xff]  ;;  %v51_v26 = vld [vmem:[%s6702_s1 + $0x28] sm:$0xff] }
   0x6   :  { %v69_v14 = vsel %vm68_vm0, %v60_v3, 0.0  ;;  %3448 = vmatprep.mubr.msk.f32.mxu0 %vm68_vm0, %v48_v15  ;;  %v4262_v18 = vpack.c.bf16 %v33_v13, %v32_v12  ;;  %v50_v19 = vld [vmem:[%s6702_s1 + $0x20] sm:$0xff]  ;;  %v75_v24 = vsel %vm68_vm0, %v62_v17, 0.0  ;;  %v52_v27 = vld [vmem:[%s6702_s1 + $0x30] sm:$0xff]  ;;  %v65_v29 = vmul.f32 %v4212_v1, %v51_v26  ;;  %v37_v35 = vld [vmem:[%s6704_s2 + $0x48] sm:$0xff] }
   0x7   :  { %3676 = vmatprep.subr.bf16.mxu0 %v4230_v7  ;;  %70 = vadd.xlane.f32.xlu0 %v69_v14  ;;  %v64_v25 = vmul.f32 %v4212_v1, %v50_v19  ;;  %v78_v28 = vsel %vm68_vm0, %v63_v21, 0.0  ;;  %v3252_v30 = vld [vmem:[%s6702_s1 + $0x40] sm:$0xff]  ;;  %v4293_v31 = vpack.c.bf16 %v35_v23, %v34_v22  ;;  %v66_v33 = vmul.f32 %v4212_v1, %v52_v27  ;;  %v53_v36 = vld [vmem:[%s6702_s1 + $0x38] sm:$0xff]  ;;  %v3253_v40 = vld [vmem:[%s6702_s1 + $0x48] sm:$0xff] }
   0x8   :  { %3678 = vmatpush3.bf16.msra.mxu0 %v4230_v7  ;;  %3708 = vmatprep.subr.bf16.mxu1 %v4230_v7  ;;  %v36_v34 = vld [vmem:[%s6704_s2 + $0x40] sm:$0xff]  ;;  %v84_v38 = vsel %vm68_vm0, %v65_v29, 0.0  ;;  %v67_v39 = vmul.f32 %v4212_v1, %v53_v36  ;;  %v102_v43 = vmul.f32 %v3252_v30, %v4212_v1  ;;  %v38_v44 = vld [vmem:[%s6704_s2 + $0x50] sm:$0xff]  ;;  %v39_v45 = vld [vmem:[%s6704_s2 + $0x58] sm:$0xff]  ;;  %v103_v48 = vmul.f32 %v3253_v40, %v4212_v1 }
   0x9   :  { %3680 = vmatprep.subr.bf16.mxu0 %v4241_v11  ;;  %3449 = vmatmul.mubr.msk.f32.gmra.mrb[2].mxu0 %vm68_vm0, %v49_v16  ;;  %v81_v32 = vsel %vm68_vm0, %v64_v25, 0.0  ;;  %v4313_v37 = vld [vmem:[%s6705_s0] ss:$0 sm:$0xff]  ;;  %v4321_v41 = vpack.c.bf16 %v37_v35, %v36_v34  ;;  %v87_v42 = vsel %vm68_vm0, %v66_v33, 0.0  ;;  %v3254_v46 = vld [vmem:[%s6702_s1 + $0x50] sm:$0xff]  ;;  %v4341_v49 = vpack.c.bf16 %v39_v45, %v38_v44  ;;  %v3255_v52 = vld [vmem:[%s6702_s1 + $0x58] sm:$0xff] }
   0xa   :  { %3451 = vmatprep.mubr.msk.f32.mxu0 %vm68_vm0, %v50_v19  ;;  %76 = vadd.xlane.f32.xlu1 %v75_v24  ;;  %v90_v47 = vsel %vm68_vm0, %v67_v39, 0.0  ;;  %v110_v50 = vsel %vm68_vm0, %v102_v43, 0.0  ;;  %v104_v51 = vmul.f32 %v3254_v46, %v4212_v1  ;;  %v40_v53 = vld [vmem:[%s6704_s2 + $0x60] sm:$0xff]  ;;  %v41_v54 = vld [vmem:[%s6704_s2 + $0x68] sm:$0xff]  ;;  %v113_v56 = vsel %vm68_vm0, %v103_v48, 0.0  ;;  %v42_v62 = vld [vmem:[%s6704_s2 + $0x70] sm:$0xff] }
   0xb   :  { %73 = vadd.xlane.f32.xlu0 %v72_v20  ;;  %3503 = vmatprep.mubr.msk.f32.mxu1 %vm68_vm0, %v3252_v30  ;;  %v3256_v55 = vld [vmem:[%s6702_s1 + $0x60] sm:$0xff]  ;;  %v105_v57 = vmul.f32 %v3255_v52, %v4212_v1  ;;  %v4364_v58 = vpack.c.bf16 %v41_v54, %v40_v53  ;;  %v3257_v61 = vld [vmem:[%s6702_s1 + $0x68] sm:$0xff]  ;;  %v43_v63 = vld [vmem:[%s6704_s2 + $0x78] sm:$0xff] }
   0xc   :  { %3682 = vmatpush3.bf16.msra.mxu0 %v4241_v11  ;;  %3504 = vmatmul.mubr.msk.f32.vlgmr.msra.gmra.mrb[0].mxu1 %vm68_vm0, %v3253_v40  ;;  %v116_v59 = vsel %vm68_vm0, %v104_v51, 0.0  ;;  %v106_v60 = vmul.f32 %v3256_v55, %v4212_v1  ;;  %v3258_v2 = vld [vmem:[%s6702_s1 + $0x70] sm:$0xff]  ;;  %v107_v4 = vmul.f32 %v3257_v61, %v4212_v1  ;;  %v4388_v5 = vpack.c.bf16 %v43_v63, %v42_v62  ;;  %v3259_v9 = vld [vmem:[%s6702_s1 + $0x78] sm:$0xff]  ;;  %v4399_v10 = vld [vmem:[%s6702_s1 + $0x80] sm:$0xff] }
   0xd   :  { %3684 = vmatprep.subr.bf16.mxu0 %v4262_v18  ;;  %3452 = vmatmul.mubr.msk.f32.gmra.mrb[4].mxu0 %vm68_vm0, %v51_v26  ;;  %v119_v3 = vsel %vm68_vm0, %v105_v57, 0.0  ;;  %v108_v8 = vmul.f32 %v3258_v2, %v4212_v1  ;;  %v109_v13 = vmul.f32 %v3259_v9, %v4212_v1  ;;  %v143_v15 = vmul.f32 %v4399_v10, %v4212_v1  ;;  %v4414_v16 = vld [vmem:[%s6702_s1 + $0x88] sm:$0xff]  ;;  %v4420_v17 = vld [vmem:[%s6702_s1 + $0x90] sm:$0xff]  ;;  %v4434_v23 = vld [vmem:[%s6702_s1 + $0x98] sm:$0xff] }
   0xe   :  { %3454 = vmatprep.mubr.msk.f32.mxu0 %vm68_vm0, %v52_v27  ;;  %79 = vadd.xlane.f32.xlu1 %v78_v28  ;;  %v122_v6 = vsel %vm68_vm0, %v106_v60, 0.0  ;;  %v125_v12 = vsel %vm68_vm0, %v107_v4, 0.0  ;;  %v144_v20 = vmul.f32 %v4414_v16, %v4212_v1  ;;  %v145_v22 = vmul.f32 %v4420_v17, %v4212_v1  ;;  %v4441_v24 = vld [vmem:[%s6702_s1 + $0xa0] sm:$0xff]  ;;  %v4455_v29 = vld [vmem:[%s6702_s1 + $0xa8] sm:$0xff]  ;;  %v4462_v30 = vld [vmem:[%s6702_s1 + $0xb0] sm:$0xff] }
   0xf   :  { %82 = vadd.xlane.f32.xlu0 %v81_v32  ;;  %3710 = vmatpush3.bf16.msra.mxu1 %v4230_v7  ;;  %v128_v14 = vsel %vm68_vm0, %v108_v8, 0.0  ;;  %v131_v19 = vsel %vm68_vm0, %v109_v13, 0.0  ;;  %v151_v21 = vsel %vm68_vm0, %v143_v15, 0.0  ;;  %v146_v26 = vmul.f32 %v4434_v23, %v4212_v1  ;;  %v4494_v44 = vld [vmem:[%s6702_s1 + $0xc8] sm:$0xff]  ;;  %v4500_v45 = vld [vmem:[%s6702_s1 + $0xd0] sm:$0xff]  ;;  %v4515_v51 = vld [vmem:[%s6702_s1 + $0xd8] sm:$0xff] }
  0x10   :  { %3686 = vmatpush3.bf16.msra.mxu0 %v4262_v18  ;;  %3712 = vmatprep.subr.bf16.mxu1 %v4241_v11  ;;  %v154_v25 = vsel %vm68_vm0, %v144_v20, 0.0  ;;  %v157_v27 = vsel %vm68_vm0, %v145_v22, 0.0  ;;  %v147_v28 = vmul.f32 %v4441_v24, %v4212_v1  ;;  %v148_v33 = vmul.f32 %v4455_v29, %v4212_v1  ;;  %v4534_v57 = vld [vmem:[%s6702_s1 + $0xe8] sm:$0xff]  ;;  %v4618_v22 = vld [vmem:[%s6707_s4] ss:$0 sm:$0xff] }
  0x11   :  { %3688 = vmatprep.subr.bf16.mxu0 %v4293_v31  ;;  %3455 = vmatmul.mubr.msk.f32.gmra.mrb[6].mxu0 %vm68_vm0, %v53_v36  ;;  %v160_v32 = vsel %vm68_vm0, %v146_v26, 0.0  ;;  %v149_v35 = vmul.f32 %v4462_v30, %v4212_v1  ;;  %v3267_v36 = vld [vmem:[%s6702_s1 + $0xb8] sm:$0xff]  ;;  %v187_v54 = vmul.f32 %v4515_v51, %v4212_v1 }
  0x12   :  { %3489 = vmatprep.mubr.f32.mxu0 %v4313_v37  ;;  %85 = vadd.xlane.f32.xlu1 %v84_v38  ;;  %v163_v34 = vsel %vm68_vm0, %v147_v28, 0.0  ;;  %v4481_v38 = vld [vmem:[%s6702_s1 + $0xc0] sm:$0xff]  ;;  %v166_v39 = vsel %vm68_vm0, %v148_v33, 0.0  ;;  %v150_v40 = vmul.f32 %v3267_v36, %v4212_v1 }
  0x13   :  { %88 = vadd.xlane.f32.xlu0 %v87_v42  ;;  %3506 = vmatprep.mubr.msk.f32.mxu1 %vm68_vm0, %v3254_v46  ;;  %v169_v42 = vsel %vm68_vm0, %v149_v35, 0.0  ;;  %v184_v43 = vmul.f32 %v4481_v38, %v4212_v1  ;;  %v201_v60 = vsel %vm68_vm0, %v187_v54, 0.0 }
  0x14   :  { %3690 = vmatpush3.bf16.msra.mxu0 %v4293_v31  ;;  %3714 = vmatpush3.bf16.msra.mxu1 %v4241_v11  ;;  %v172_v46 = vsel %vm68_vm0, %v150_v40, 0.0 }
  0x15   :  { %3692 = vmatprep.subr.bf16.mxu0 %v4321_v41  ;;  %3716 = vmatprep.subr.bf16.mxu1 %v4262_v18  ;;  %v192_v48 = vsel %vm68_vm0, %v184_v43, 0.0 }
  0x16   :  { %91 = vadd.xlane.f32.xlu1 %v90_v47  ;;  %3507 = vmatmul.mubr.msk.f32.gmra.mrb[2].mxu1 %vm68_vm0, %v3255_v52  ;;  %v185_v47 = vmul.f32 %v4494_v44, %v4212_v1  ;;  %v4520_v52 = vld [vmem:[%s6702_s1 + $0xe0] sm:$0xff] }
  0x17   :  { %111 = vadd.xlane.f32.xlu0 %v110_v50  ;;  %3509 = vmatprep.mubr.msk.f32.mxu1 %vm68_vm0, %v3256_v55  ;;  %v186_v50 = vmul.f32 %v4500_v45, %v4212_v1 }
  0x18   :  { %3694 = vmatpush3.bf16.msra.mxu0 %v4321_v41  ;;  %3718 = vmatpush3.bf16.msra.mxu1 %v4262_v18  ;;  %v195_v53 = vsel %vm68_vm0, %v185_v47, 0.0 }
  0x19   :  { %3696 = vmatprep.subr.bf16.mxu0 %v4341_v49  ;;  %3720 = vmatprep.subr.bf16.mxu1 %v4293_v31  ;;  %v198_v55 = vsel %vm68_vm0, %v186_v50, 0.0 }
  0x1a   :  { %114 = vadd.xlane.f32.xlu1 %v113_v56  ;;  %3510 = vmatmul.mubr.msk.f32.gmra.mrb[4].mxu1 %vm68_vm0, %v3257_v61  ;;  %v188_v56 = vmul.f32 %v4520_v52, %v4212_v1  ;;  %v189_v61 = vmul.f32 %v4534_v57, %v4212_v1 }
  0x1b   :  { %117 = vadd.xlane.f32.xlu0 %v116_v59  ;;  %3512 = vmatprep.mubr.msk.f32.mxu1 %vm68_vm0, %v3258_v2  ;;  %v4542_v59 = vld [vmem:[%s6702_s1 + $0xf0] sm:$0xff]  ;;  %v4556_v2 = vld [vmem:[%s6702_s1 + $0xf8] sm:$0xff] }
  0x1c   :  { %3698 = vmatpush3.bf16.msra.mxu0 %v4341_v49  ;;  %3722 = vmatpush3.bf16.msra.mxu1 %v4293_v31  ;;  %v204_v62 = vsel %vm68_vm0, %v188_v56, 0.0  ;;  %v190_v63 = vmul.f32 %v4542_v59, %v4212_v1  ;;  %v191_v4 = vmul.f32 %v4556_v2, %v4212_v1  ;;  %v4585_v1 = vld [vmem:[%s6706_s5] ss:$0 sm:$0xff] }
  0x1d   :  { %3700 = vmatprep.subr.bf16.mxu0 %v4364_v58  ;;  %3724 = vmatprep.subr.bf16.mxu1 %v4321_v41 }
  0x1e   :  { %120 = vadd.xlane.f32.xlu1 %v119_v3  ;;  %3513 = vmatmul.mubr.msk.f32.gmra.mrb[6].mxu1 %vm68_vm0, %v3259_v9  ;;  %v207_v3 = vsel %vm68_vm0, %v189_v61, 0.0  ;;  %v213_v8 = vsel %vm68_vm0, %v191_v4, 0.0 }
  0x1f   :  { %123 = vadd.xlane.f32.xlu0 %v122_v6  ;;  %v210_v6 = vsel %vm68_vm0, %v190_v63, 0.0 }
  0x20   :  { %3702 = vmatpush3.bf16.msra.mxu0 %v4364_v58  ;;  %3726 = vmatpush3.bf16.msra.mxu1 %v4321_v41 }
  0x21   :  { %3704 = vmatprep.subr.bf16.mxu0 %v4388_v5  ;;  %3728 = vmatprep.subr.bf16.mxu1 %v4341_v49 }
  0x22   :  { %126 = vadd.xlane.f32.xlu1 %v125_v12 }
  0x23   :  { %129 = vadd.xlane.f32.xlu0 %v128_v14 }
  0x24   :  { %3706 = vmatpush3.bf16.msra.mxu0 %v4388_v5  ;;  %3730 = vmatpush3.bf16.msra.mxu1 %v4341_v49 }
  0x25   :  { %3559 = vmatprep.subr.mxu0 %v4207_v0  ;;  %3732 = vmatprep.subr.bf16.mxu1 %v4364_v58 }
  0x26   :  { %132 = vadd.xlane.f32.xlu1 %v131_v19 }
  0x27   :  { %3490 = vmatmul.mubr.f32.vlgmr.msra.gmra.mrb[0].mxu0 %v4313_v37  ;;  %152 = vadd.xlane.f32.xlu0 %v151_v21 }
  0x28   :  { %3492 = vmatprep.mubr.f32.mxu0 %v4313_v37  ;;  %3560 = vmatpush3.msra.mxu0 %v4207_v0 }
  0x29   :  { %3740 = vmatprep.subr.bf16.mxu0 %v4230_v7  ;;  %3734 = vmatpush3.bf16.msra.mxu1 %v4364_v58 }
  0x2a   :  { %155 = vadd.xlane.f32.xlu1 %v154_v25  ;;  %3736 = vmatprep.subr.bf16.mxu1 %v4388_v5 }
  0x2b   :  { %3493 = vmatmul.mubr.f32.gmra.mrb[2].mxu0 %v4313_v37  ;;  %158 = vadd.xlane.f32.xlu0 %v157_v27 }
  0x2c   :  { %3495 = vmatprep.mubr.f32.mxu0 %v4313_v37 }
  0x2d   :  { %3738 = vmatpush3.bf16.msra.mxu1 %v4388_v5 }
  0x2e   :  { %161 = vadd.xlane.f32.xlu1 %v160_v32  ;;  %3617 = vmatprep.subr.mxu1 %v4207_v0 }
  0x2f   :  { %3496 = vmatmul.mubr.f32.gmra.mrb[4].mxu0 %v4313_v37  ;;  %164 = vadd.xlane.f32.xlu0 %v163_v34 }
  0x30   :  { %3498 = vmatprep.mubr.f32.mxu0 %v4313_v37 }
  0x32   :  { %167 = vadd.xlane.f32.xlu1 %v166_v39 }
  0x33   :  { %3499 = vmatmul.mubr.f32.gmra.mrb[6].mxu0 %v4313_v37  ;;  %170 = vadd.xlane.f32.xlu0 %v169_v42 }
  0x34   :  { %3561 = vmatprep.mubr.msk.f32.mxu0 %vm68_vm0, %v4399_v10 }
  0x36   :  { %173 = vadd.xlane.f32.xlu1 %v172_v46 }
  0x37   :  { %3562 = vmatmul.mubr.msk.f32.vlgmr.msra.gmra.mrb[8].mxu0 %vm68_vm0, %v4414_v16  ;;  %193 = vadd.xlane.f32.xlu0 %v192_v48 }
  0x38   :  { %3742 = vmatpush3.bf16.msra.mxu0 %v4230_v7  ;;  %3564 = vmatprep.mubr.msk.f32.mxu0 %vm68_vm0, %v4420_v17 }
  0x39   :  { %3744 = vmatprep.subr.bf16.mxu0 %v4241_v11 }
  0x3a   :  { %196 = vadd.xlane.f32.xlu1 %v195_v53 }
  0x3b   :  { %3565 = vmatmul.mubr.msk.f32.gmra.mrb[10].mxu0 %vm68_vm0, %v4434_v23  ;;  %199 = vadd.xlane.f32.xlu0 %v198_v55 }
  0x3c   :  { %3746 = vmatpush3.bf16.msra.mxu0 %v4241_v11  ;;  %3567 = vmatprep.mubr.msk.f32.mxu0 %vm68_vm0, %v4441_v24 }
  0x3d   :  { %3748 = vmatprep.subr.bf16.mxu0 %v4262_v18 }
  0x3e   :  { %202 = vadd.xlane.f32.xlu1 %v201_v60 }
  0x3f   :  { %3568 = vmatmul.mubr.msk.f32.gmra.mrb[12].mxu0 %vm68_vm0, %v4455_v29  ;;  %205 = vadd.xlane.f32.xlu0 %v204_v62 }
  0x40   :  { %3750 = vmatpush3.bf16.msra.mxu0 %v4262_v18  ;;  %3570 = vmatprep.mubr.msk.f32.mxu0 %vm68_vm0, %v4462_v30 }
  0x41   :  { %3752 = vmatprep.subr.bf16.mxu0 %v4293_v31 }
  0x42   :  { %208 = vadd.xlane.f32.xlu1 %v207_v3 }
  0x43   :  { %3571 = vmatmul.mubr.msk.f32.gmra.mrb[14].mxu0 %vm68_vm0, %v3267_v36  ;;  %211 = vadd.xlane.f32.xlu0 %v210_v6 }
  0x44   :  { %3754 = vmatpush3.bf16.msra.mxu0 %v4293_v31 }
  0x45   :  { %3756 = vmatprep.subr.bf16.mxu0 %v4321_v41 }
  0x46   :  { %214 = vadd.xlane.f32.xlu1 %v213_v8 }
  0x48   :  { %3758 = vmatpush3.bf16.msra.mxu0 %v4321_v41 }
  0x49   :  { %3760 = vmatprep.subr.bf16.mxu0 %v4341_v49 }
  0x4c   :  { %3762 = vmatpush3.bf16.msra.mxu0 %v4341_v49 }
  0x4d   :  { %3764 = vmatprep.subr.bf16.mxu0 %v4364_v58 }
  0x50   :  { %3766 = vmatpush3.bf16.msra.mxu0 %v4364_v58 }
  0x51   :  { %3768 = vmatprep.subr.bf16.mxu0 %v4388_v5 }
  0x54   :  { %3770 = vmatpush3.bf16.msra.mxu0 %v4388_v5 }
  0x57   :  { %793 = vrot.lane.b32.xlu1 %v4585_v1, %s4161_s22 }
  0x59   :  { %694 = vrot.lane.b32.xlu0 %v4585_v1, %s4162_s23 }
  0x5d   :  { %892 = vrot.lane.b32.xlu0 %v4585_v1, %s4163_s24 }
  0x94   :  { %v4595_v10 = vpop.xlane.xlu0 %70 }
  0x95   :  { %6769 = vst [vmem:[#allocation3_spill] sm:$0xff] %v4595_v10 }
  0x97   :  { %v4593_v9 = vpop.xlane.xlu1 %76 }
  0x98   :  { %6768 = vst [vmem:[#allocation2_spill] sm:$0xff] %v4593_v9  ;;  %v4599_v13 = vpop.xlane.xlu0 %73 }
  0x99   :  { %6771 = vst [vmem:[#allocation5_spill] sm:$0xff] %v4599_v13 }
  0x9b   :  { %v4597_v12 = vpop.xlane.xlu1 %79 }
  0x9c   :  { %6770 = vst [vmem:[#allocation4_spill] sm:$0xff] %v4597_v12  ;;  %v4603_v15 = vpop.xlane.xlu0 %82 }
  0x9d   :  { %6773 = vst [vmem:[#allocation7_spill] sm:$0xff] %v4603_v15 }
  0x9f   :  { %v4601_v14 = vpop.xlane.xlu1 %85 }
  0xa0   :  { %6772 = vst [vmem:[#allocation6_spill] sm:$0xff] %v4601_v14  ;;  %v4607_v17 = vpop.xlane.xlu0 %88 }
  0xa1   :  { %6775 = vst [vmem:[#allocation9_spill] sm:$0xff] %v4607_v17 }
  0xa3   :  { %v4605_v16 = vpop.xlane.xlu1 %91 }
  0xa4   :  { %6774 = vst [vmem:[#allocation8_spill] sm:$0xff] %v4605_v16  ;;  %v4611_v20 = vpop.xlane.xlu0 %111 }
  0xa5   :  { %6777 = vst [vmem:[#allocation11_spill] sm:$0xff] %v4611_v20 }
  0xa7   :  { %v4609_v19 = vpop.xlane.xlu1 %114 }
  0xa8   :  { %6776 = vst [vmem:[#allocation10_spill] sm:$0xff] %v4609_v19  ;;  %v4621_v26 = vpop.xlane.xlu0 %117 }
  0xa9   :  { %6779 = vst [vmem:[#allocation13_spill] sm:$0xff] %v4621_v26 }
  0xab   :  { %v4613_v21 = vpop.xlane.xlu1 %120 }
  0xac   :  { %6778 = vst [vmem:[#allocation12_spill] sm:$0xff] %v4613_v21  ;;  %v4628_v34 = vpop.xlane.xlu0 %123 }
  0xad   :  { %6781 = vst [vmem:[#allocation15_spill] sm:$0xff] %v4628_v34 }
  0xaf   :  { %v4624_v28 = vpop.xlane.xlu1 %126 }
  0xb0   :  { %6780 = vst [vmem:[#allocation14_spill] sm:$0xff] %v4624_v28  ;;  %v4639_v53 = vpop.xlane.xlu0 %129 }
  0xb1   :  { %6783 = vst [vmem:[#allocation17_spill] sm:$0xff] %v4639_v53 }
  0xb3   :  { %v4630_v36 = vpop.xlane.xlu1 %132 }
  0xb4   :  { %6782 = vst [vmem:[#allocation16_spill] sm:$0xff] %v4630_v36  ;;  %v4667_v3 = vpop.xlane.xlu0 %152 }
  0xb5   :  { %6785 = vst [vmem:[#allocation19_spill] sm:$0xff] %v4667_v3 }
  0xb7   :  { %v4644_v55 = vpop.xlane.xlu1 %155 }
  0xb8   :  { %6784 = vst [vmem:[#allocation18_spill] sm:$0xff] %v4644_v55 }
  0xbb   :  { %v4676_v8 = vpop.xlane.xlu1 %161 }
  0xbc   :  { %6786 = vst [vmem:[#allocation20_spill] sm:$0xff] %v4676_v8 }
  0xfa   :  { %v3491_v23 = vpop.f32.mrb[0].mxu0 }
  0xfb   :  { %v464_v24 = vadd.f32 %v3491_v23, %v4618_v22  ;;  %v418_v25 = vpop.f32.mrb[1].mxu0 }
  0xfc   :  { %v463_v27 = vadd.f32 %v4618_v22, %v418_v25 }
  0xfd   :  { %3838 = vtanh.f32 %v464_v24 }
  0xfe   :  { %3840 = vtanh.f32 %v463_v27  ;;  %v3494_v29 = vpop.f32.mrb[2].mxu0 }
  0xff   :  { %v466_v30 = vadd.f32 %v3494_v29, %v4618_v22  ;;  %v428_v32 = vpop.f32.mrb[3].mxu0  ;;  %v4695_v29 = vpop.xlane.xlu0 %158 }
 0x100   :  { %v465_v33 = vadd.f32 %v4618_v22, %v428_v32  ;;  %6787 = vst [vmem:[#allocation21_spill] sm:$0xff] %v4695_v29 }
 0x101   :  { %3842 = vtanh.f32 %v466_v30  ;;  %v4698_v30 = vpop.xlane.xlu1 %167 }
 0x102   :  { %3844 = vtanh.f32 %v465_v33  ;;  %v3497_v35 = vpop.f32.mrb[4].mxu0  ;;  %6788 = vst [vmem:[#allocation22_spill] sm:$0xff] %v4698_v30 }
 0x103   :  { %v468_v39 = vadd.f32 %v3497_v35, %v4618_v22  ;;  %v438_v40 = vpop.f32.mrb[5].mxu0  ;;  %v4712_v35 = vpop.xlane.xlu0 %164 }
 0x104   :  { %v467_v42 = vadd.f32 %v4618_v22, %v438_v40  ;;  %6789 = vst [vmem:[#allocation23_spill] sm:$0xff] %v4712_v35 }
 0x105   :  { %3846 = vtanh.f32 %v468_v39  ;;  %v4714_v39 = vpop.xlane.xlu1 %173 }
 0x106   :  { %3848 = vtanh.f32 %v467_v42  ;;  %v3500_v43 = vpop.f32.mrb[6].mxu0  ;;  %6790 = vst [vmem:[#allocation24_spill] sm:$0xff] %v4714_v39 }
 0x107   :  { %v4634_v46 = vpop.eup %3838  ;;  %v470_v47 = vadd.f32 %v3500_v43, %v4618_v22  ;;  %v448_v48 = vpop.f32.mrb[7].mxu0 }
 0x108   :  { %v4637_v50 = vpop.eup %3840  ;;  %v469_v54 = vadd.f32 %v4618_v22, %v448_v48  ;;  %489 = vrot.lane.b32.xlu1 %v4634_v46, %s4162_s23  ;;  %v4654_v60 = vadd.f32 %v4634_v46, %v4313_v37 }
 0x109   :  { %3850 = vtanh.f32 %v470_v47  ;;  %487 = vrot.lane.b32.xlu0 %v4637_v50, %s4162_s23  ;;  %v4650_v56 = vadd.f32 %v4637_v50, %v4313_v37 }
 0x10a   :  { %3852 = vtanh.f32 %v469_v54  ;;  %v631_v54 = vmul.f32 %v4585_v1, %v4654_v60 }
 0x10b   :  { %v4656_v61 = vpop.eup %3842  ;;  %3547 = vmatprep.mubr.f32.mxu1 %v4650_v56  ;;  %v630_v43 = vmul.f32 %v4585_v1, %v4650_v56 }
 0x10c   :  { %v4659_v62 = vpop.eup %3844  ;;  %3548 = vmatmul.mubr.f32.vlgmr.msra.gmra.mrb[0].mxu1 %v4654_v60  ;;  %v4671_v4 = vadd.f32 %v4656_v61, %v4313_v37  ;;  %v538_v42 = vmul.f32 %v4656_v61, %v4656_v61 }
 0x10d   :  { %v4664_v63 = vadd.f32 %v4659_v62, %v4313_v37  ;;  %3618 = vmatpush3.msra.mxu1 %v4207_v0  ;;  %v638_v47 = vsel %vm575_vm1, %v630_v43, 0.0  ;;  %v537_v48 = vmul.f32 %v4659_v62, %v4659_v62 }
 0x10e   :  { %3772 = vmatprep.subr.bf16.mxu1 %v4230_v7 }
 0x10f   :  { %v4674_v6 = vpop.eup %3846  ;;  %3550 = vmatprep.mubr.f32.mxu1 %v4664_v63 }
 0x110   :  { %v4679_v23 = vpop.eup %3848  ;;  %3551 = vmatmul.mubr.f32.gmra.mrb[2].mxu1 %v4671_v4  ;;  %v4688_v24 = vadd.f32 %v4674_v6, %v4313_v37 }
 0x111   :  { %v4684_v0 = vadd.f32 %v4679_v23, %v4313_v37 }
 0x112   :  { %v635_v34 = vmul.f32 %v4585_v1, %v4688_v24 }
 0x113   :  { %v4690_v25 = vpop.eup %3850  ;;  %3553 = vmatprep.mubr.f32.mxu1 %v4684_v0 }
 0x114   :  { %v4693_v27 = vpop.eup %3852  ;;  %3554 = vmatmul.mubr.f32.gmra.mrb[4].mxu1 %v4688_v24  ;;  %v4706_v33 = vadd.f32 %v4690_v25, %v4313_v37  ;;  %v653_v30 = vsel %vm575_vm1, %v635_v34, 0.0 }
 0x115   :  { %v4702_v32 = vadd.f32 %v4693_v27, %v4313_v37  ;;  %v4722_v37 = vpop.xlane.xlu0 %170 }
 0x116   :  { %6791 = vst [vmem:[#allocation25_spill] sm:$0xff] %v4722_v37 }
 0x117   :  { %3556 = vmatprep.mubr.f32.mxu1 %v4702_v32 }
 0x118   :  { %3557 = vmatmul.mubr.f32.gmra.mrb[6].mxu1 %v4706_v33 }
 0x119   :  { %3619 = vmatprep.mubr.msk.f32.mxu1 %vm68_vm0, %v4481_v38  ;;  %v4726_v38 = vpop.xlane.xlu1 %196 }
 0x11a   :  { %6792 = vst [vmem:[#allocation26_spill] sm:$0xff] %v4726_v38 }
 0x11c   :  { %3620 = vmatmul.mubr.msk.f32.vlgmr.msra.gmra.mrb[8].mxu1 %vm68_vm0, %v4494_v44  ;;  %v535_v44 = vmul.f32 %v4637_v50, %v4637_v50 }
 0x11d   :  { %3774 = vmatpush3.bf16.msra.mxu1 %v4230_v7  ;;  %3622 = vmatprep.mubr.msk.f32.mxu1 %vm68_vm0, %v4500_v45  ;;  %v4737_v7 = vpop.xlane.xlu0 %193 }
 0x11e   :  { %3776 = vmatprep.subr.bf16.mxu1 %v4241_v11  ;;  %6793 = vst [vmem:[#allocation27_spill] sm:$0xff] %v4737_v7 }
 0x120   :  { %3623 = vmatmul.mubr.msk.f32.gmra.mrb[10].mxu1 %vm68_vm0, %v4515_v51 }
 0x121   :  { %3778 = vmatpush3.bf16.msra.mxu1 %v4241_v11  ;;  %3625 = vmatprep.mubr.msk.f32.mxu1 %vm68_vm0, %v4520_v52  ;;  %v4742_v11 = vpop.xlane.xlu1 %202  ;;  %v4750_v45 = vpop.xlane.xlu0 %199 }
 0x122   :  { %3780 = vmatprep.subr.bf16.mxu1 %v4262_v18  ;;  %6794 = vst [vmem:[#allocation28_spill] sm:$0xff] %v4742_v11  ;;  %6795 = vst [vmem:[#allocation29_spill] sm:$0xff] %v4750_v45 }
 0x124   :  { %3626 = vmatmul.mubr.msk.f32.gmra.mrb[12].mxu1 %vm68_vm0, %v4534_v57 }
 0x125   :  { %3782 = vmatpush3.bf16.msra.mxu1 %v4262_v18  ;;  %3628 = vmatprep.mubr.msk.f32.mxu1 %vm68_vm0, %v4542_v59  ;;  %v536_v18 = vmul.f32 %v4634_v46, %v4634_v46  ;;  %v4752_v51 = vpop.xlane.xlu1 %208  ;;  %v4757_v52 = vpop.xlane.xlu0 %205 }
 0x126   :  { %3784 = vmatprep.subr.bf16.mxu1 %v4293_v31  ;;  %6796 = vst [vmem:[#allocation30_spill] sm:$0xff] %v4752_v51  ;;  %6797 = vst [vmem:[#allocation31_spill] sm:$0xff] %v4757_v52 }
 0x128   :  { %543 = vadd.xlane.f32.xlu0 %v535_v44  ;;  %3629 = vmatmul.mubr.msk.f32.gmra.mrb[14].mxu1 %vm68_vm0, %v4556_v2  ;;  %v641_v44 = vsel %vm575_vm1, %v631_v54, 0.0 }
 0x129   :  { %3786 = vmatpush3.bf16.msra.mxu1 %v4293_v31  ;;  %v4760_v31 = vpop.xlane.xlu1 %214  ;;  %v4764_v57 = vpop.xlane.xlu0 %211 }
 0x12a   :  { %3788 = vmatprep.subr.bf16.mxu1 %v4321_v41  ;;  %6798 = vst [vmem:[#allocation32_spill] sm:$0xff] %v4760_v31  ;;  %6799 = vst [vmem:[#allocation33_spill] sm:$0xff] %v4764_v57 }
 0x12c   :  { %545 = vadd.xlane.f32.xlu1 %v536_v18 }
 0x12d   :  { %3790 = vmatpush3.bf16.msra.mxu1 %v4321_v41  ;;  %v4766_v59 = vpop.permute.xlu1 %793 }
 0x12e   :  { %3792 = vmatprep.subr.bf16.mxu1 %v4341_v49  ;;  %v796_v41 = vmul.f32 %v4766_v59, %v4650_v56  ;;  %v797_v2 = vmul.f32 %v4766_v59, %v4654_v60  ;;  %v801_v7 = vmul.f32 %v4766_v59, %v4688_v24  ;;  %v802_v39 = vmul.f32 %v4766_v59, %v4702_v32 }
 0x131   :  { %3794 = vmatpush3.bf16.msra.mxu1 %v4341_v49  ;;  %v4773_v49 = vpop.permute.xlu0 %694 }
 0x132   :  { %3796 = vmatprep.subr.bf16.mxu1 %v4364_v58  ;;  %v700_v18 = vmul.f32 %v4773_v49, %v4671_v4  ;;  %v704_v52 = vmul.f32 %v4773_v49, %v4706_v33 }
 0x135   :  { %3798 = vmatpush3.bf16.msra.mxu1 %v4364_v58  ;;  %v698_v58 = vmul.f32 %v4773_v49, %v4654_v60  ;;  %v4781_v40 = vpop.permute.xlu0 %892 }
 0x136   :  { %3800 = vmatprep.subr.bf16.mxu1 %v4388_v5  ;;  %v902_v53 = vmul.f32 %v4781_v40, %v4706_v33 }
 0x139   :  { %3802 = vmatpush3.bf16.msra.mxu1 %v4388_v5  ;;  %v896_v5 = vmul.f32 %v4781_v40, %v4654_v60 }
 0x13d   :  { %493 = vrot.lane.b32.xlu1 %v4656_v61, %s4162_s23 }
 0x13e   :  { %812 = vrot.lane.b32.xlu0 %v796_v41, %s4161_s22  ;;  %v898_v41 = vmul.f32 %v4781_v40, %v4671_v4 }
 0x141   :  { %715 = vrot.lane.b32.xlu1 %v698_v58, %s4163_s24  ;;  %v697_v58 = vmul.f32 %v4773_v49, %v4650_v56 }
 0x145   :  { %814 = vrot.lane.b32.xlu1 %v797_v2, %s4161_s22  ;;  %v895_v2 = vmul.f32 %v4781_v40, %v4650_v56 }
 0x149   :  { %913 = vrot.lane.b32.xlu1 %v896_v5, %s4162_s23  ;;  %v799_v5 = vmul.f32 %v4766_v59, %v4671_v4 }
 0x14d   :  { %491 = vrot.lane.b32.xlu1 %v4659_v62, %s4162_s23 }
 0x15d   :  { %549 = vadd.xlane.f32.xlu0 %v538_v42  ;;  %v632_v42 = vmul.f32 %v4585_v1, %v4664_v63 }
 0x15f   :  { %v644_v43 = vsel %vm575_vm1, %v632_v42, 0.0 }
 0x161   :  { %639 = vadd.xlane.f32.xlu0 %v638_v47  ;;  %v539_v47 = vmul.f32 %v4679_v23, %v4679_v23 }
 0x165   :  { %547 = vadd.xlane.f32.xlu0 %v537_v48  ;;  %v633_v48 = vmul.f32 %v4585_v1, %v4671_v4 }
 0x167   :  { %v647_v54 = vsel %vm575_vm1, %v633_v48, 0.0 }
 0x171   :  { %642 = vadd.xlane.f32.xlu1 %v641_v44  ;;  %v702_v44 = vmul.f32 %v4773_v49, %v4688_v24 }
 0x17a   :  { %v490_v34 = vpop.permute.xlu1 %489 }
 0x17b   :  { %719 = vrot.lane.b32.xlu0 %v700_v18, %s4163_s24  ;;  %v900_v18 = vmul.f32 %v4781_v40, %v4688_v24 }
 0x17f   :  { %917 = vrot.lane.b32.xlu0 %v898_v41, %s4162_s23  ;;  %v699_v41 = vmul.f32 %v4773_v49, %v4664_v63 }
 0x182   :  { %713 = vrot.lane.b32.xlu1 %v697_v58, %s4163_s24  ;;  %v798_v58 = vmul.f32 %v4766_v59, %v4664_v63 }
 0x183   :  { %495 = vrot.lane.b32.xlu0 %v4679_v23, %s4162_s23 }
 0x186   :  { %911 = vrot.lane.b32.xlu1 %v895_v2, %s4162_s23  ;;  %v800_v2 = vmul.f32 %v4766_v59, %v4684_v0 }
 0x18a   :  { %497 = vrot.lane.b32.xlu1 %v4674_v6, %s4162_s23 }
 0x18e   :  { %818 = vrot.lane.b32.xlu1 %v799_v5, %s4161_s22  ;;  %v897_v5 = vmul.f32 %v4781_v40, %v4664_v63 }
 0x1a2   :  { %645 = vadd.xlane.f32.xlu0 %v644_v43 }
 0x1a6   :  { %551 = vadd.xlane.f32.xlu0 %v539_v47 }
 0x1b2   :  { %648 = vadd.xlane.f32.xlu1 %v647_v54  ;;  %v634_v54 = vmul.f32 %v4585_v1, %v4684_v0 }
 0x1bc   :  { %723 = vrot.lane.b32.xlu0 %v702_v44, %s4163_s24 }
 0x1c0   :  { %921 = vrot.lane.b32.xlu0 %v900_v18, %s4162_s23 }
 0x1c3   :  { %717 = vrot.lane.b32.xlu1 %v699_v41, %s4163_s24 }
 0x1c4   :  { %499 = vrot.lane.b32.xlu0 %v4693_v27, %s4162_s23 }
 0x1c7   :  { %816 = vrot.lane.b32.xlu1 %v798_v58, %s4161_s22 }
 0x1c8   :  { %820 = vrot.lane.b32.xlu0 %v800_v2, %s4161_s22  ;;  %v650_v2 = vsel %vm575_vm1, %v634_v54, 0.0 }
 0x1cb   :  { %915 = vrot.lane.b32.xlu1 %v897_v5, %s4162_s23 }
 0x1df   :  { %v3549_v42 = vpop.f32.mrb[0].mxu1 }
 0x1e0   :  { %v1226_v43 = vadd.f32 %v3549_v42, %v4618_v22  ;;  %v1186_v47 = vpop.f32.mrb[1].mxu1 }
 0x1e1   :  { %v1225_v48 = vadd.f32 %v4618_v22, %v1186_v47 }
 0x1e2   :  { %3854 = vtanh.f32 %v1226_v43 }
 0x1e3   :  { %3856 = vtanh.f32 %v1225_v48  ;;  %v3552_v44 = vpop.f32.mrb[2].mxu1  ;;  %v541_v48 = vmul.f32 %v4693_v27, %v4693_v27 }
 0x1e4   :  { %v1228_v18 = vadd.f32 %v3552_v44, %v4618_v22  ;;  %v1196_v41 = vpop.f32.mrb[3].mxu1 }
 0x1e5   :  { %v1227_v58 = vadd.f32 %v4618_v22, %v1196_v41 }
 0x1e6   :  { %3858 = vtanh.f32 %v1228_v18 }
 0x1e7   :  { %3860 = vtanh.f32 %v1227_v58  ;;  %v3555_v5 = vpop.f32.mrb[4].mxu1  ;;  %651 = vadd.xlane.f32.xlu0 %v650_v2  ;;  %v540_v2 = vmul.f32 %v4674_v6, %v4674_v6 }
 0x1e8   :  { %v1230_v42 = vadd.f32 %v3555_v5, %v4618_v22  ;;  %v1206_v47 = vpop.f32.mrb[5].mxu1 }
 0x1e9   :  { %v1229_v43 = vadd.f32 %v4618_v22, %v1206_v47 }
 0x1ea   :  { %3862 = vtanh.f32 %v1230_v42 }
 0x1eb   :  { %3864 = vtanh.f32 %v1229_v43  ;;  %555 = vadd.xlane.f32.xlu0 %v541_v48  ;;  %v3558_v44 = vpop.f32.mrb[6].mxu1 }
 0x1ec   :  { %v4857_v57 = vpop.eup %3854  ;;  %v1232_v18 = vadd.f32 %v3558_v44, %v4618_v22  ;;  %v1216_v54 = vpop.f32.mrb[7].mxu1 }
 0x1ed   :  { %v4860_v41 = vpop.eup %3856  ;;  %v1231_v58 = vadd.f32 %v4618_v22, %v1216_v54  ;;  %v4871_v42 = vadd.f32 %v4857_v57, %v4654_v60 }
 0x1ee   :  { %3866 = vtanh.f32 %v1232_v18  ;;  %v4867_v5 = vadd.f32 %v4860_v41, %v4650_v56 }
 0x1ef   :  { %3868 = vtanh.f32 %v1231_v58  ;;  %553 = vadd.xlane.f32.xlu1 %v540_v2 }
 0x1f0   :  { %v4873_v47 = vpop.eup %3858  ;;  %3605 = vmatprep.mubr.f32.mxu0 %v4867_v5 }
 0x1f1   :  { %v4876_v43 = vpop.eup %3860  ;;  %3606 = vmatmul.mubr.f32.vlgmr.msra.gmra.mrb[8].mxu0 %v4871_v42  ;;  %v4885_v56 = vadd.f32 %v4873_v47, %v4671_v4 }
 0x1f2   :  { %v4881_v48 = vadd.f32 %v4876_v43, %v4664_v63 }
 0x1f4   :  { %v4887_v44 = vpop.eup %3862  ;;  %3608 = vmatprep.mubr.f32.mxu0 %v4881_v48 }
 0x1f5   :  { %v4890_v60 = vpop.eup %3864  ;;  %3609 = vmatmul.mubr.f32.gmra.mrb[10].mxu0 %v4885_v56  ;;  %v4899_v63 = vadd.f32 %v4887_v44, %v4688_v24 }
 0x1f6   :  { %v4895_v18 = vadd.f32 %v4890_v60, %v4684_v0 }
 0x1f8   :  { %v4901_v54 = vpop.eup %3866  ;;  %3611 = vmatprep.mubr.f32.mxu0 %v4895_v18 }
 0x1f9   :  { %v4904_v4 = vpop.eup %3868  ;;  %3612 = vmatmul.mubr.f32.gmra.mrb[12].mxu0 %v4899_v63  ;;  %v4913_v2 = vadd.f32 %v4901_v54, %v4706_v33 }
 0x1fa   :  { %v4909_v58 = vadd.f32 %v4904_v4, %v4702_v32 }
 0x1fc   :  { %3614 = vmatprep.mubr.f32.mxu0 %v4909_v58 }
 0x1fd   :  { %3615 = vmatmul.mubr.f32.gmra.mrb[14].mxu0 %v4913_v2 }
 0x200   :  { %501 = vrot.lane.b32.xlu1 %v4690_v25, %s4162_s23 }
 0x201   :  { %727 = vrot.lane.b32.xlu0 %v704_v52, %s4163_s24  ;;  %v636_v52 = vmul.f32 %v4585_v1, %v4702_v32 }
 0x203   :  { %v656_v31 = vsel %vm575_vm1, %v636_v52, 0.0 }
 0x204   :  { %822 = vrot.lane.b32.xlu1 %v801_v7, %s4161_s22  ;;  %v488_v7 = vpop.permute.xlu0 %487 }
 0x205   :  { %925 = vrot.lane.b32.xlu0 %v902_v53, %s4162_s23  ;;  %v701_v53 = vmul.f32 %v4773_v49, %v4684_v0  ;;  %v4943_v24 = vadd.f32 %v4637_v50, %v488_v7  ;;  %v542_v50 = vmul.f32 %v4690_v25, %v4690_v25 }
 0x208   :  { %v4952_v52 = vpop.xlane.xlu0 %543 }
 0x209   :  { %824 = vrot.lane.b32.xlu0 %v802_v39, %s4161_s22  ;;  %v899_v39 = vmul.f32 %v4781_v40, %v4684_v0  ;;  %6801 = vst [vmem:[#allocation35_spill] sm:$0xff] %v4952_v52 }
 0x20c   :  { %v813_v11 = vpop.permute.xlu0 %812 }
 0x20d   :  { %v836_v0 = vsel %vm575_vm1, %v813_v11, 0.0 }
 0x228   :  { %654 = vadd.xlane.f32.xlu1 %v653_v30  ;;  %657 = vadd.xlane.f32.xlu0 %v656_v31  ;;  %v4948_v30 = vpop.xlane.xlu1 %545 }
 0x229   :  { %6800 = vst [vmem:[#allocation34_spill] sm:$0xff] %v4948_v30  ;;  %v803_v30 = vmul.f32 %v4766_v59, %v4706_v33 }
 0x22c   :  { %v4950_v31 = vpop.permute.xlu1 %493 }
 0x22d   :  { %v5086_v19 = vadd.f32 %v4656_v61, %v4950_v31 }
 0x230   :  { %v716_v51 = vpop.permute.xlu1 %715 }
 0x234   :  { %v4958_v7 = vpop.permute.xlu1 %814 }
 0x239   :  { %721 = vrot.lane.b32.xlu1 %v701_v53, %s4163_s24  ;;  %v740_v53 = vsel %vm575_vm1, %v716_v51, 0.0 }
 0x23d   :  { %919 = vrot.lane.b32.xlu1 %v899_v39, %s4162_s23  ;;  %v4960_v39 = vpop.permute.xlu1 %913 }
 0x23e   :  { %511 = vrot.lane.b32.xlu0 %v4943_v24, %s4161_s22 }
 0x241   :  { %v492_v52 = vpop.permute.xlu1 %491 }
 0x242   :  { %v4966_v51 = vadd.f32 %v4659_v62, %v492_v52  ;;  %v637_v62 = vmul.f32 %v4585_v1, %v4706_v33  ;;  %v703_v33 = vmul.f32 %v4773_v49, %v4702_v32 }
 0x244   :  { %v659_v20 = vsel %vm575_vm1, %v637_v62, 0.0 }
 0x25d   :  { %741 = vadd.xlane.f32.xlu0 %v740_v53  ;;  %v4968_v53 = vpop.xlane.xlu1 %642 }
 0x25e   :  { %6802 = vst [vmem:[#allocation36_spill] sm:$0xff] %v4968_v53 }
 0x261   :  { %557 = vadd.xlane.f32.xlu1 %v542_v50  ;;  %837 = vadd.xlane.f32.xlu0 %v836_v0  ;;  %v4972_v11 = vpop.permute.xlu1 %713  ;;  %v4974_v50 = vpop.xlane.xlu0 %549 }
 0x262   :  { %6803 = vst [vmem:[#allocation37_spill] sm:$0xff] %v4974_v50 }
 0x265   :  { %v4976_v0 = vpop.permute.xlu1 %911  ;;  %v4978_v45 = vpop.xlane.xlu0 %639 }
 0x266   :  { %6804 = vst [vmem:[#allocation38_spill] sm:$0xff] %v4978_v45 }
 0x269   :  { %v4980_v37 = vpop.permute.xlu1 %497  ;;  %v4982_v38 = vpop.xlane.xlu0 %547 }
 0x26a   :  { %6805 = vst [vmem:[#allocation39_spill] sm:$0xff] %v4982_v38 }
 0x26d   :  { %v720_v52 = vpop.permute.xlu0 %719 }
 0x26e   :  { %v746_v35 = vsel %vm575_vm1, %v720_v52, 0.0 }
 0x272   :  { %826 = vrot.lane.b32.xlu1 %v803_v30, %s4161_s22  ;;  %v819_v30 = vpop.permute.xlu1 %818 }
 0x273   :  { %v845_v28 = vsel %vm575_vm1, %v819_v30, 0.0 }
 0x276   :  { %v4986_v36 = vpop.xlane.xlu1 %648 }
 0x277   :  { %515 = vrot.lane.b32.xlu0 %v4966_v51, %s4161_s22  ;;  %6806 = vst [vmem:[#allocation40_spill] sm:$0xff] %v4986_v36  ;;  %v737_v36 = vsel %vm575_vm1, %v4972_v11, 0.0 }
 0x27a   :  { %v718_v50 = vpop.permute.xlu1 %717 }
 0x27b   :  { %v743_v55 = vsel %vm575_vm1, %v718_v50, 0.0 }
 0x27e   :  { %v817_v38 = vpop.permute.xlu1 %816 }
 0x27f   :  { %v842_v29 = vsel %vm575_vm1, %v817_v38, 0.0 }
 0x296   :  { %660 = vadd.xlane.f32.xlu1 %v659_v20  ;;  %747 = vadd.xlane.f32.xlu0 %v746_v35  ;;  %v901_v20 = vmul.f32 %v4781_v40, %v4702_v32  ;;  %v5000_v35 = vadd.f32 %v4634_v46, %v490_v34 }
 0x29a   :  { %846 = vadd.xlane.f32.xlu0 %v845_v28  ;;  %v5002_v28 = vpop.permute.xlu0 %917 }
 0x29e   :  { %744 = vadd.xlane.f32.xlu0 %v743_v55  ;;  %v496_v55 = vpop.permute.xlu0 %495 }
 0x2a2   :  { %843 = vadd.xlane.f32.xlu0 %v842_v29  ;;  %v5007_v29 = vadd.f32 %v4679_v23, %v496_v55  ;;  %v5011_v38 = vpop.xlane.xlu0 %645 }
 0x2a3   :  { %6807 = vst [vmem:[#allocation41_spill] sm:$0xff] %v5011_v38  ;;  %v5107_v38 = vadd.f32 %v4674_v6, %v4980_v37 }
 0x2a6   :  { %v5013_v32 = vpop.xlane.xlu0 %551 }
 0x2a7   :  { %725 = vrot.lane.b32.xlu1 %v703_v33, %s4163_s24  ;;  %6808 = vst [vmem:[#allocation42_spill] sm:$0xff] %v5013_v32 }
 0x2aa   :  { %v724_v30 = vpop.permute.xlu0 %723 }
 0x2ab   :  { %923 = vrot.lane.b32.xlu1 %v901_v20, %s4162_s23 }
 0x2ae   :  { %v5019_v55 = vpop.permute.xlu0 %921 }
 0x2af   :  { %513 = vrot.lane.b32.xlu1 %v5000_v35, %s4161_s22 }
 0x2b8   :  { %519 = vrot.lane.b32.xlu0 %v5007_v29, %s4161_s22 }
 0x2c4   :  { %v3607_v50 = vpop.f32.mrb[8].mxu0 }
 0x2c5   :  { %v1972_v46 = vadd.f32 %v3607_v50, %v4618_v22  ;;  %v1932_v34 = vpop.f32.mrb[9].mxu0 }
 0x2c6   :  { %v1971_v62 = vadd.f32 %v4618_v22, %v1932_v34 }
 0x2c7   :  { %3870 = vtanh.f32 %v1972_v46 }
 0x2c8   :  { %3872 = vtanh.f32 %v1971_v62  ;;  %v3610_v52 = vpop.f32.mrb[10].mxu0  ;;  %v500_v62 = vpop.permute.xlu0 %499 }
 0x2c9   :  { %v1974_v23 = vadd.f32 %v3610_v52, %v4618_v22  ;;  %v1942_v33 = vpop.f32.mrb[11].mxu0  ;;  %v5092_v17 = vadd.f32 %v4693_v27, %v500_v62  ;;  %v938_v27 = vsel %vm575_vm1, %v4960_v39, 0.0  ;;  %v950_v39 = vsel %vm575_vm1, %v5019_v55, 0.0 }
 0x2ca   :  { %v1973_v20 = vadd.f32 %v4618_v22, %v1942_v33  ;;  %v1298_v55 = vmul.f32 %v4857_v57, %v4857_v57 }
 0x2cb   :  { %3874 = vtanh.f32 %v1974_v23 }
 0x2cc   :  { %3876 = vtanh.f32 %v1973_v20  ;;  %v3613_v32 = vpop.f32.mrb[12].mxu0  ;;  %v839_v20 = vsel %vm575_vm1, %v4958_v7, 0.0 }
 0x2cd   :  { %v1976_v26 = vadd.f32 %v3613_v32, %v4618_v22  ;;  %v1952_v8 = vpop.f32.mrb[13].mxu0 }
 0x2ce   :  { %v1975_v50 = vadd.f32 %v4618_v22, %v1952_v8 }
 0x2cf   :  { %3878 = vtanh.f32 %v1976_v26 }
 0x2d0   :  { %3880 = vtanh.f32 %v1975_v50  ;;  %v3616_v46 = vpop.f32.mrb[14].mxu0 }
 0x2d1   :  { %v5023_v34 = vpop.eup %3870  ;;  %v1978_v52 = vadd.f32 %v3616_v46, %v4618_v22  ;;  %v1962_v21 = vpop.f32.mrb[15].mxu0 }
 0x2d2   :  { %v5026_v33 = vpop.eup %3872  ;;  %v1977_v23 = vadd.f32 %v4618_v22, %v1962_v21  ;;  %v5037_v8 = vadd.f32 %v5023_v34, %v4871_v42  ;;  %v752_v21 = vsel %vm575_vm1, %v724_v30, 0.0  ;;  %v821_v22 = vpop.permute.xlu0 %820 }
 0x2d3   :  { %3882 = vtanh.f32 %v1978_v52  ;;  %840 = vadd.xlane.f32.xlu1 %v839_v20  ;;  %v5033_v26 = vadd.f32 %v5026_v33, %v4867_v5  ;;  %v848_v30 = vsel %vm575_vm1, %v821_v22, 0.0 }
 0x2d4   :  { %3884 = vtanh.f32 %v1977_v23 }
 0x2d5   :  { %v5039_v32 = vpop.eup %3874  ;;  %3663 = vmatprep.mubr.f32.mxu1 %v5033_v26 }
 0x2d6   :  { %v5042_v50 = vpop.eup %3876  ;;  %3664 = vmatmul.mubr.f32.vlgmr.msra.gmra.mrb[8].mxu1 %v5037_v8  ;;  %v5052_v46 = vadd.f32 %v5039_v32, %v4885_v56  ;;  %v5096_v14 = vpop.xlane.xlu0 %651 }
 0x2d7   :  { %753 = vadd.xlane.f32.xlu0 %v752_v21  ;;  %v5048_v7 = vadd.f32 %v5042_v50, %v4881_v48  ;;  %6809 = vst [vmem:[#allocation43_spill] sm:$0xff] %v5096_v14  ;;  %v916_v14 = vpop.permute.xlu1 %915 }
 0x2d9   :  { %v5054_v52 = vpop.eup %3878  ;;  %3666 = vmatprep.mubr.f32.mxu1 %v5048_v7 }
 0x2da   :  { %v5057_v23 = vpop.eup %3880  ;;  %3667 = vmatmul.mubr.f32.gmra.mrb[10].mxu1 %v5052_v46  ;;  %v5067_v21 = vadd.f32 %v5054_v52, %v4899_v63  ;;  %v5098_v15 = vpop.xlane.xlu0 %555 }
 0x2db   :  { %849 = vadd.xlane.f32.xlu0 %v848_v30  ;;  %v5063_v20 = vadd.f32 %v5057_v23, %v4895_v18  ;;  %6810 = vst [vmem:[#allocation44_spill] sm:$0xff] %v5098_v15  ;;  %v5118_v37 = vpop.xlane.xlu1 %553 }
 0x2dc   :  { %6811 = vst [vmem:[#allocation45_spill] sm:$0xff] %v5118_v37 }
 0x2dd   :  { %v5069_v16 = vpop.eup %3882  ;;  %3669 = vmatprep.mubr.f32.mxu1 %v5063_v20 }
 0x2de   :  { %v5072_v3 = vpop.eup %3884  ;;  %3670 = vmatmul.mubr.f32.gmra.mrb[12].mxu1 %v5067_v21  ;;  %v5081_v30 = vadd.f32 %v5069_v16, %v4913_v2  ;;  %v728_v61 = vpop.permute.xlu0 %727 }
 0x2df   :  { %v5077_v22 = vadd.f32 %v5072_v3, %v4909_v58  ;;  %v758_v12 = vsel %vm575_vm1, %v728_v61, 0.0 }
 0x2e1   :  { %3672 = vmatprep.mubr.f32.mxu1 %v5077_v22 }
 0x2e2   :  { %3673 = vmatmul.mubr.f32.gmra.mrb[14].mxu1 %v5081_v30  ;;  %v926_v31 = vpop.permute.xlu0 %925 }
 0x2e3   :  { %v956_v6 = vsel %vm575_vm1, %v926_v31, 0.0 }
 0x2e4   :  { %517 = vrot.lane.b32.xlu1 %v5086_v19, %s4161_s22 }
 0x2e6   :  { %v825_v62 = vpop.permute.xlu0 %824 }
 0x2e7   :  { %v854_v15 = vsel %vm575_vm1, %v825_v62, 0.0 }
 0x2f1   :  { %523 = vrot.lane.b32.xlu0 %v5092_v17, %s4161_s22 }
 0x308   :  { %738 = vadd.xlane.f32.xlu1 %v737_v36  ;;  %v941_v36 = vsel %vm575_vm1, %v916_v14, 0.0 }
 0x310   :  { %759 = vadd.xlane.f32.xlu0 %v758_v12  ;;  %v944_v12 = vsel %vm575_vm1, %v5002_v28, 0.0 }
 0x314   :  { %939 = vadd.xlane.f32.xlu0 %v938_v27  ;;  %v1386_v27 = vmul.f32 %v4585_v1, %v4871_v42 }
 0x316   :  { %v1396_v62 = vsel %vm575_vm1, %v1386_v27, 0.0 }
 0x318   :  { %855 = vadd.xlane.f32.xlu0 %v854_v15  ;;  %v502_v15 = vpop.permute.xlu1 %501 }
 0x319   :  { %521 = vrot.lane.b32.xlu1 %v5107_v38, %s4161_s22  ;;  %v5124_v14 = vadd.f32 %v4690_v25, %v502_v15  ;;  %v1300_v25 = vmul.f32 %v4873_v47, %v4873_v47 }
 0x31c   :  { %942 = vadd.xlane.f32.xlu0 %v941_v36  ;;  %v823_v11 = vpop.permute.xlu1 %822 }
 0x31d   :  { %v851_v61 = vsel %vm575_vm1, %v823_v11, 0.0 }
 0x320   :  { %945 = vadd.xlane.f32.xlu0 %v944_v12  ;;  %v5128_v28 = vpop.xlane.xlu1 %654 }
 0x321   :  { %6812 = vst [vmem:[#allocation46_spill] sm:$0xff] %v5128_v28 }
 0x324   :  { %951 = vadd.xlane.f32.xlu0 %v950_v39  ;;  %v722_v31 = vpop.permute.xlu1 %721  ;;  %v1299_v39 = vmul.f32 %v4876_v43, %v4876_v43 }
 0x325   :  { %v749_v11 = vsel %vm575_vm1, %v722_v31, 0.0 }
 0x328   :  { %957 = vadd.xlane.f32.xlu0 %v956_v6  ;;  %v920_v36 = vpop.permute.xlu1 %919 }
 0x32c   :  { %v5137_v12 = vpop.xlane.xlu1 %557 }
 0x32d   :  { %6813 = vst [vmem:[#allocation47_spill] sm:$0xff] %v5137_v12 }
 0x330   :  { %v827_v6 = vpop.permute.xlu1 %826 }
 0x334   :  { %v5141_v15 = vpop.xlane.xlu1 %660 }
 0x335   :  { %6814 = vst [vmem:[#allocation48_spill] sm:$0xff] %v5141_v15  ;;  %v1297_v15 = vmul.f32 %v4860_v41, %v4860_v41 }
 0x33d   :  { %852 = vadd.xlane.f32.xlu1 %v851_v61  ;;  %v857_v61 = vsel %vm575_vm1, %v827_v6, 0.0  ;;  %v5152_v6 = vpop.xlane.xlu0 %657 }
 0x33e   :  { %1251 = vrot.lane.b32.xlu0 %v4857_v57, %s4162_s23  ;;  %6815 = vst [vmem:[#allocation49_spill] sm:$0xff] %v5152_v6 }
 0x34e   :  { %525 = vrot.lane.b32.xlu1 %v5124_v14, %s4161_s22 }
 0x35d   :  { %1307 = vadd.xlane.f32.xlu0 %v1298_v55  ;;  %v726_v55 = vpop.permute.xlu1 %725 }
 0x35e   :  { %v755_v27 = vsel %vm575_vm1, %v726_v55, 0.0 }
 0x361   :  { %1397 = vadd.xlane.f32.xlu0 %v1396_v62  ;;  %v935_v62 = vsel %vm575_vm1, %v4976_v0, 0.0 }
 0x365   :  { %1311 = vadd.xlane.f32.xlu0 %v1300_v25  ;;  %v947_v25 = vsel %vm575_vm1, %v920_v36, 0.0 }
 0x369   :  { %1309 = vadd.xlane.f32.xlu0 %v1299_v39  ;;  %v924_v39 = vpop.permute.xlu1 %923 }
 0x36a   :  { %v953_v31 = vsel %vm575_vm1, %v924_v39, 0.0 }
 0x372   :  { %750 = vadd.xlane.f32.xlu1 %v749_v11  ;;  %v512_v11 = vpop.permute.xlu0 %511 }
 0x376   :  { %858 = vadd.xlane.f32.xlu1 %v857_v61  ;;  %v527_v61 = vadd.f32 %v512_v11, %v4943_v24 }
 0x378   :  { %v567_v0 = vmul.f32 %v527_v61, %v527_v61 }
 0x37a   :  { %756 = vadd.xlane.f32.xlu1 %v755_v27  ;;  %v576_v55 = vsel %vm575_vm1, %v567_v0, 0.0  ;;  %v1388_v27 = vmul.f32 %v4585_v1, %v4885_v56 }
 0x37c   :  { %v1402_v36 = vsel %vm575_vm1, %v1388_v27, 0.0 }
 0x37e   :  { %936 = vadd.xlane.f32.xlu1 %v935_v62  ;;  %v5161_v62 = vpop.xlane.xlu0 %741 }
 0x37f   :  { %1259 = vrot.lane.b32.xlu0 %v4887_v44, %s4162_s23  ;;  %6816 = vst [vmem:[#allocation50_spill] sm:$0xff] %v5161_v62 }
 0x382   :  { %948 = vadd.xlane.f32.xlu1 %v947_v25  ;;  %v1302_v25 = vmul.f32 %v4887_v44, %v4887_v44  ;;  %v5165_v24 = vpop.xlane.xlu0 %837 }
 0x383   :  { %6817 = vst [vmem:[#allocation51_spill] sm:$0xff] %v5165_v24 }
 0x386   :  { %954 = vadd.xlane.f32.xlu1 %v953_v31  ;;  %v516_v0 = vpop.permute.xlu0 %515 }
 0x397   :  { %1249 = vrot.lane.b32.xlu1 %v4860_v41, %s4162_s23 }
 0x39e   :  { %577 = vadd.xlane.f32.xlu0 %v576_v55 }
 0x3a2   :  { %1403 = vadd.xlane.f32.xlu0 %v1402_v36  ;;  %v5179_v36 = vpop.xlane.xlu0 %747 }
 0x3a3   :  { %6818 = vst [vmem:[#allocation52_spill] sm:$0xff] %v5179_v36 }
 0x3a6   :  { %1315 = vadd.xlane.f32.xlu0 %v1302_v25  ;;  %v5185_v37 = vpop.xlane.xlu0 %846 }
 0x3a7   :  { %6820 = vst [vmem:[#allocation54_spill] sm:$0xff] %v5185_v37  ;;  %v529_v37 = vadd.f32 %v516_v0, %v4966_v51 }
 0x3a9   :  { %v5167_v39 = vpop.f32.mrb[8].mxu1 }
 0x3aa   :  { %v5169_v31 = vpop.f32.mrb[9].mxu1  ;;  %v5191_v24 = vpop.xlane.xlu0 %744 }
 0x3ab   :  { %6821 = vst [vmem:[#allocation55_spill] sm:$0xff] %v5191_v24 }
 0x3ad   :  { %v5171_v11 = vpop.f32.mrb[10].mxu1 }
 0x3ae   :  { %v5173_v61 = vpop.f32.mrb[11].mxu1  ;;  %v5193_v62 = vpop.xlane.xlu0 %843 }
 0x3af   :  { %6822 = vst [vmem:[#allocation56_spill] sm:$0xff] %v5193_v62  ;;  %v1304_v62 = vmul.f32 %v4901_v54, %v4901_v54 }
 0x3b1   :  { %v5175_v55 = vpop.f32.mrb[12].mxu1 }
 0x3b2   :  { %v5177_v27 = vpop.f32.mrb[13].mxu1  ;;  %v520_v6 = vpop.permute.xlu0 %519 }
 0x3b3   :  { %v531_v9 = vadd.f32 %v520_v6, %v5007_v29  ;;  %v1390_v29 = vmul.f32 %v4585_v1, %v4899_v63 }
 0x3b5   :  { %v5181_v12 = vpop.f32.mrb[14].mxu1  ;;  %v571_v13 = vmul.f32 %v531_v9, %v531_v9  ;;  %v1392_v9 = vmul.f32 %v4585_v1, %v4913_v2 }
 0x3b6   :  { %6819 = vst [vmem:[#allocation53_spill] sm:$0xff] %v5181_v12  ;;  %v5183_v25 = vpop.f32.mrb[15].mxu1  ;;  %v5197_v36 = vpop.xlane.xlu0 %753 }
 0x3b7   :  { %6823 = vst [vmem:[#allocation57_spill] sm:$0xff] %v5197_v36  ;;  %v588_v51 = vsel %vm575_vm1, %v571_v13, 0.0  ;;  %v1414_v13 = vsel %vm575_vm1, %v1392_v9, 0.0  ;;  %v1456_v9 = vmul.f32 %v4913_v2, %v4773_v49 }
 0x3ba   :  { %v5202_v28 = vpop.xlane.xlu0 %849 }
 0x3bb   :  { %1305 = vadd.xlane.f32.xlu1 %v1297_v15  ;;  %6824 = vst [vmem:[#allocation58_spill] sm:$0xff] %v5202_v28  ;;  %v569_v15 = vmul.f32 %v529_v37, %v529_v37 }
 0x3bc   :  { %1263 = vrot.lane.b32.xlu0 %v4901_v54, %s4162_s23 }
 0x3bd   :  { %v582_v24 = vsel %vm575_vm1, %v569_v15, 0.0 }
 0x3be   :  { %v524_v53 = vpop.permute.xlu0 %523 }
 0x3bf   :  { %v533_v36 = vadd.f32 %v524_v53, %v5092_v17  ;;  %v514_v17 = vpop.permute.xlu1 %513 }
 0x3c1   :  { %v573_v45 = vmul.f32 %v533_v36, %v533_v36 }
 0x3c2   :  { %v5209_v10 = vpop.xlane.xlu0 %759 }
 0x3c3   :  { %6825 = vst [vmem:[#allocation59_spill] sm:$0xff] %v5209_v10  ;;  %v594_v37 = vsel %vm575_vm1, %v573_v45, 0.0  ;;  %v1385_v45 = vmul.f32 %v4585_v1, %v4867_v5  ;;  %v1454_v1 = vmul.f32 %v4899_v63, %v4773_v49 }
 0x3c5   :  { %v1393_v36 = vsel %vm575_vm1, %v1385_v45, 0.0  ;;  %v5257_v45 = vld [vmem:[%s6706_s5] ss:$0 sm:$0xff] }
 0x3c6   :  { %v5215_v6 = vpop.xlane.xlu0 %939 }
 0x3c7   :  { %6826 = vst [vmem:[#allocation60_spill] sm:$0xff] %v5215_v6 }
 0x3ca   :  { %v5220_v53 = vpop.xlane.xlu0 %855 }
 0x3cb   :  { %6827 = vst [vmem:[#allocation61_spill] sm:$0xff] %v5220_v53 }
 0x3cc   :  { %1255 = vrot.lane.b32.xlu1 %v4873_v47, %s4162_s23 }
 0x3ce   :  { %v5227_v15 = vpop.xlane.xlu0 %942 }
 0x3cf   :  { %6828 = vst [vmem:[#allocation62_spill] sm:$0xff] %v5227_v15 }
 0x3d0   :  { %1253 = vrot.lane.b32.xlu1 %v4876_v43, %s4162_s23 }
 0x3db   :  { %583 = vadd.xlane.f32.xlu0 %v582_v24  ;;  %v1408_v24 = vsel %vm575_vm1, %v1390_v29, 0.0 }
 0x3df   :  { %1319 = vadd.xlane.f32.xlu0 %v1304_v62  ;;  %v528_v62 = vadd.f32 %v514_v17, %v5000_v35  ;;  %v1450_v35 = vmul.f32 %v4871_v42, %v4773_v49 }
 0x3e1   :  { %v568_v0 = vmul.f32 %v528_v62, %v528_v62  ;;  %v5252_v62 = vpop.xlane.xlu1 %840 }
 0x3e2   :  { %6832 = vst [vmem:[#allocation66_spill] sm:$0xff] %v5252_v62 }
 0x3e3   :  { %589 = vadd.xlane.f32.xlu0 %v588_v51  ;;  %v579_v51 = vsel %vm575_vm1, %v568_v0, 0.0  ;;  %v1387_v0 = vmul.f32 %v5257_v45, %v4881_v48 }
 0x3e7   :  { %595 = vadd.xlane.f32.xlu0 %v594_v37  ;;  %v5230_v37 = vpop.xlane.xlu0 %945 }
 0x3e8   :  { %6829 = vst [vmem:[#allocation63_spill] sm:$0xff] %v5230_v37 }
 0x3eb   :  { %1409 = vadd.xlane.f32.xlu0 %v1408_v24  ;;  %v5232_v29 = vpop.xlane.xlu0 %951 }
 0x3ec   :  { %6830 = vst [vmem:[#allocation64_spill] sm:$0xff] %v5232_v29 }
 0x3ef   :  { %1415 = vadd.xlane.f32.xlu0 %v1414_v13  ;;  %v5237_v24 = vpop.xlane.xlu0 %957 }
 0x3f0   :  { %6831 = vst [vmem:[#allocation65_spill] sm:$0xff] %v5237_v24 }
 0x3f3   :  { %v1252_v17 = vpop.permute.xlu0 %1251 }
 0x3f4   :  { %1394 = vadd.xlane.f32.xlu1 %v1393_v36  ;;  %v5248_v13 = vadd.f32 %v4857_v57, %v1252_v17  ;;  %v518_v36 = vpop.permute.xlu1 %517  ;;  %v1301_v57 = vmul.f32 %v4890_v60, %v4890_v60 }
 0x3f7   :  { %v5266_v17 = vpop.xlane.xlu0 %1307 }
 0x3f8   :  { %580 = vadd.xlane.f32.xlu1 %v579_v51  ;;  %v530_v51 = vadd.f32 %v518_v36, %v5086_v19  ;;  %6833 = vst [vmem:[#allocation67_spill] sm:$0xff] %v5266_v17  ;;  %v5278_v36 = vpop.xlane.xlu1 %738 }
 0x3f9   :  { %6837 = vst [vmem:[#allocation71_spill] sm:$0xff] %v5278_v36 }
 0x3fb   :  { %v5268_v24 = vpop.xlane.xlu0 %1397 }
 0x3fc   :  { %6834 = vst [vmem:[#allocation68_spill] sm:$0xff] %v5268_v24 }
 0x3ff   :  { %v5270_v29 = vpop.xlane.xlu0 %1311 }
 0x400   :  { %6835 = vst [vmem:[#allocation69_spill] sm:$0xff] %v5270_v29 }
 0x403   :  { %v5274_v19 = vpop.xlane.xlu0 %1309 }
 0x404   :  { %6836 = vst [vmem:[#allocation70_spill] sm:$0xff] %v5274_v19  ;;  %v1389_v19 = vmul.f32 %v5257_v45, %v4895_v18 }
 0x405   :  { %1467 = vrot.lane.b32.xlu0 %v1450_v35, %s4163_s24  ;;  %v1399_v35 = vsel %vm575_vm1, %v1387_v0, 0.0 }
 0x407   :  { %v5276_v0 = vpop.permute.xlu0 %1259 }
 0x409   :  { %1257 = vrot.lane.b32.xlu1 %v4890_v60, %s4162_s23  ;;  %1475 = vrot.lane.b32.xlu0 %v1454_v1, %s4163_s24  ;;  %v570_v1 = vmul.f32 %v530_v51, %v530_v51 }
 0x40d   :  { %1479 = vrot.lane.b32.xlu0 %v1456_v9, %s4163_s24  ;;  %v585_v9 = vsel %vm575_vm1, %v570_v1, 0.0 }
 0x411   :  { %1275 = vrot.lane.b32.xlu0 %v5248_v13, %s4161_s22 }
 0x42b   :  { %v5280_v51 = vpop.xlane.xlu0 %577 }
 0x42c   :  { %6838 = vst [vmem:[#allocation72_spill] sm:$0xff] %v5280_v51  ;;  %v1405_v51 = vsel %vm575_vm1, %v1389_v19, 0.0 }
 0x42d   :  { %1400 = vadd.xlane.f32.xlu1 %v1399_v35  ;;  %v522_v35 = vpop.permute.xlu1 %521 }
 0x42e   :  { %v532_v15 = vadd.f32 %v522_v35, %v5107_v38  ;;  %v1391_v35 = vmul.f32 %v5257_v45, %v4909_v58 }
 0x430   :  { %v572_v53 = vmul.f32 %v532_v15, %v532_v15 }
 0x431   :  { %1313 = vadd.xlane.f32.xlu1 %v1301_v57  ;;  %v5282_v57 = vpop.xlane.xlu0 %1403  ;;  %v5284_v1 = vpop.xlane.xlu1 %852 }
 0x432   :  { %6839 = vst [vmem:[#allocation73_spill] sm:$0xff] %v5282_v57  ;;  %6840 = vst [vmem:[#allocation74_spill] sm:$0xff] %v5284_v1  ;;  %v591_v38 = vsel %vm575_vm1, %v572_v53, 0.0 }
 0x435   :  { %586 = vadd.xlane.f32.xlu1 %v585_v9  ;;  %v5286_v9 = vpop.xlane.xlu0 %1315  ;;  %v526_v17 = vpop.permute.xlu1 %525 }
 0x436   :  { %6841 = vst [vmem:[#allocation75_spill] sm:$0xff] %v5286_v9  ;;  %v1303_v9 = vmul.f32 %v4904_v4, %v4904_v4 }
 0x439   :  { %v5288_v29 = vpop.permute.xlu0 %1263  ;;  %v5290_v24 = vpop.xlane.xlu1 %750 }
 0x43a   :  { %6842 = vst [vmem:[#allocation76_spill] sm:$0xff] %v5290_v24  ;;  %v534_v24 = vadd.f32 %v526_v17, %v5124_v14  ;;  %v1411_v17 = vsel %vm575_vm1, %v1391_v35, 0.0  ;;  %v1451_v35 = vmul.f32 %v4881_v48, %v4773_v49 }
 0x43c   :  { %v574_v10 = vmul.f32 %v534_v24, %v534_v24 }
 0x43d   :  { %v5298_v57 = vpop.xlane.xlu1 %858 }
 0x43e   :  { %6844 = vst [vmem:[#allocation78_spill] sm:$0xff] %v5298_v57 }
 0x446   :  { %1261 = vrot.lane.b32.xlu1 %v4904_v4, %s4162_s23 }
 0x468   :  { %v5294_v37 = vpop.xlane.xlu0 %583 }
 0x469   :  { %6843 = vst [vmem:[#allocation77_spill] sm:$0xff] %v5294_v37  ;;  %v5307_v37 = vpop.xlane.xlu1 %756 }
 0x46a   :  { %1406 = vadd.xlane.f32.xlu1 %v1405_v51  ;;  %6847 = vst [vmem:[#allocation81_spill] sm:$0xff] %v5307_v37  ;;  %v597_v51 = vsel %vm575_vm1, %v574_v10, 0.0 }
 0x46c   :  { %v5300_v1 = vpop.xlane.xlu0 %1319 }
 0x46d   :  { %6845 = vst [vmem:[#allocation79_spill] sm:$0xff] %v5300_v1  ;;  %v5315_v15 = vpop.xlane.xlu1 %936 }
 0x46e   :  { %1317 = vadd.xlane.f32.xlu1 %v1303_v9  ;;  %6849 = vst [vmem:[#allocation83_spill] sm:$0xff] %v5315_v15 }
 0x470   :  { %v5305_v6 = vpop.xlane.xlu0 %589 }
 0x471   :  { %6846 = vst [vmem:[#allocation80_spill] sm:$0xff] %v5305_v6  ;;  %v5322_v9 = vpop.xlane.xlu1 %948 }
 0x472   :  { %592 = vadd.xlane.f32.xlu1 %v591_v38  ;;  %6852 = vst [vmem:[#allocation86_spill] sm:$0xff] %v5322_v9 }
 0x474   :  { %v5310_v19 = vpop.xlane.xlu0 %595 }
 0x475   :  { %6848 = vst [vmem:[#allocation82_spill] sm:$0xff] %v5310_v19  ;;  %v5325_v10 = vpop.xlane.xlu1 %954 }
 0x476   :  { %598 = vadd.xlane.f32.xlu1 %v597_v51  ;;  %6853 = vst [vmem:[#allocation87_spill] sm:$0xff] %v5325_v10  ;;  %v1449_v51 = vmul.f32 %v4867_v5, %v4773_v49 }
 0x478   :  { %v5317_v14 = vpop.xlane.xlu0 %1409 }
 0x479   :  { %6850 = vst [vmem:[#allocation84_spill] sm:$0xff] %v5317_v14  ;;  %v1250_v1 = vpop.permute.xlu1 %1249 }
 0x47a   :  { %1412 = vadd.xlane.f32.xlu1 %v1411_v17  ;;  %v1452_v17 = vmul.f32 %v4885_v56, %v4773_v49 }
 0x47c   :  { %v5320_v24 = vpop.xlane.xlu0 %1415 }
 0x47d   :  { %6851 = vst [vmem:[#allocation85_spill] sm:$0xff] %v5320_v24  ;;  %v5330_v19 = vpop.xlane.xlu1 %1305 }
 0x47e   :  { %6854 = vst [vmem:[#allocation88_spill] sm:$0xff] %v5330_v19 }
 0x480   :  { %v1468_v53 = vpop.permute.xlu0 %1467 }
 0x481   :  { %v1492_v38 = vsel %vm575_vm1, %v1468_v53, 0.0  ;;  %v1256_v53 = vpop.permute.xlu1 %1255 }
 0x482   :  { %1493 = vadd.xlane.f32.xlu0 %v1492_v38  ;;  %v1453_v38 = vmul.f32 %v4895_v18, %v4773_v49  ;;  %v5341_v6 = vadd.f32 %v4873_v47, %v1256_v53 }
 0x485   :  { %v1254_v47 = vpop.permute.xlu1 %1253 }
 0x489   :  { %v5357_v53 = vpop.xlane.xlu1 %1394 }
 0x48a   :  { %6855 = vst [vmem:[#allocation89_spill] sm:$0xff] %v5357_v53 }
 0x48b   :  { %1465 = vrot.lane.b32.xlu1 %v1449_v51, %s4163_s24  ;;  %v1455_v51 = vmul.f32 %v4909_v58, %v4773_v49 }
 0x48f   :  { %1469 = vrot.lane.b32.xlu1 %v1451_v35, %s4163_s24  ;;  %v1545_v35 = vmul.f32 %v4867_v5, %v4766_v59 }
 0x493   :  { %1471 = vrot.lane.b32.xlu1 %v1452_v17, %s4163_s24  ;;  %v5353_v17 = vadd.f32 %v4860_v41, %v1250_v1 }
 0x497   :  { %1473 = vrot.lane.b32.xlu1 %v1453_v38, %s4163_s24  ;;  %v5359_v38 = vpop.xlane.xlu1 %580 }
 0x498   :  { %1279 = vrot.lane.b32.xlu0 %v5341_v6, %s4161_s22  ;;  %6856 = vst [vmem:[#allocation90_spill] sm:$0xff] %v5359_v38 }
 0x49b   :  { %1477 = vrot.lane.b32.xlu1 %v1455_v51, %s4163_s24  ;;  %v1258_v19 = vpop.permute.xlu1 %1257 }
 0x49f   :  { %1561 = vrot.lane.b32.xlu1 %v1545_v35, %s4161_s22 }
 0x4a3   :  { %1273 = vrot.lane.b32.xlu1 %v5353_v17, %s4161_s22 }
 0x4ba   :  { %v5361_v24 = vpop.xlane.xlu1 %1400 }
 0x4bb   :  { %6857 = vst [vmem:[#allocation91_spill] sm:$0xff] %v5361_v24 }
 0x4be   :  { %v5363_v51 = vpop.xlane.xlu1 %1313 }
 0x4bf   :  { %6858 = vst [vmem:[#allocation92_spill] sm:$0xff] %v5363_v51 }
 0x4c2   :  { %v5365_v14 = vpop.xlane.xlu1 %586 }
 0x4c3   :  { %6859 = vst [vmem:[#allocation93_spill] sm:$0xff] %v5365_v14  ;;  %v5380_v14 = vadd.f32 %v4876_v43, %v1254_v47 }
 0x4c6   :  { %v1262_v10 = vpop.permute.xlu1 %1261 }
 0x4f7   :  { %v5367_v35 = vpop.xlane.xlu1 %1406 }
 0x4f8   :  { %6860 = vst [vmem:[#allocation94_spill] sm:$0xff] %v5367_v35 }
 0x4fb   :  { %v5369_v41 = vpop.xlane.xlu1 %1317 }
 0x4fc   :  { %6861 = vst [vmem:[#allocation95_spill] sm:$0xff] %v5369_v41  ;;  %v5385_v41 = vadd.f32 %v4890_v60, %v1258_v19  ;;  %v5399_v19 = vadd.f32 %v4904_v4, %v1262_v10  ;;  %v1547_v4 = vmul.f32 %v4881_v48, %v4766_v59  ;;  %v1551_v10 = vmul.f32 %v4909_v58, %v4766_v59 }
 0x4ff   :  { %v5371_v1 = vpop.xlane.xlu1 %592 }
 0x500   :  { %6862 = vst [vmem:[#allocation96_spill] sm:$0xff] %v5371_v1 }
 0x503   :  { %v5373_v9 = vpop.xlane.xlu1 %598 }
 0x504   :  { %6863 = vst [vmem:[#allocation97_spill] sm:$0xff] %v5373_v9 }
 0x507   :  { %v5375_v15 = vpop.xlane.xlu1 %1412 }
 0x508   :  { %6864 = vst [vmem:[#allocation98_spill] sm:$0xff] %v5375_v15 }
 0x50b   :  { %v1466_v53 = vpop.permute.xlu1 %1465 }
 0x50c   :  { %v1489_v38 = vsel %vm575_vm1, %v1466_v53, 0.0  ;;  %v5391_v53 = vadd.f32 %v4887_v44, %v5276_v0  ;;  %v5405_v44 = vadd.f32 %v4901_v54, %v5288_v29  ;;  %v1548_v54 = vmul.f32 %v4885_v56, %v4766_v59 }
 0x50d   :  { %1490 = vadd.xlane.f32.xlu1 %v1489_v38  ;;  %v1476_v38 = vpop.permute.xlu0 %1475  ;;  %v1549_v29 = vmul.f32 %v4895_v18, %v4766_v59 }
 0x50e   :  { %v1504_v60 = vsel %vm575_vm1, %v1476_v38, 0.0  ;;  %v1552_v38 = vmul.f32 %v4913_v2, %v4766_v59 }
 0x50f   :  { %v1470_v24 = vpop.permute.xlu1 %1469 }
 0x510   :  { %v1495_v47 = vsel %vm575_vm1, %v1470_v24, 0.0 }
 0x513   :  { %v1472_v37 = vpop.permute.xlu1 %1471 }
 0x514   :  { %v1498_v51 = vsel %vm575_vm1, %v1472_v37, 0.0 }
 0x515   :  { %1499 = vadd.xlane.f32.xlu0 %v1498_v51  ;;  %v1480_v51 = vpop.permute.xlu0 %1479 }
 0x517   :  { %v1474_v37 = vpop.permute.xlu1 %1473 }
 0x518   :  { %v1501_v43 = vsel %vm575_vm1, %v1474_v37, 0.0  ;;  %v1510_v37 = vsel %vm575_vm1, %v1480_v51, 0.0 }
 0x51b   :  { %v1478_v0 = vpop.permute.xlu1 %1477 }
 0x51c   :  { %v1507_v24 = vsel %vm575_vm1, %v1478_v0, 0.0 }
 0x51e   :  { %1277 = vrot.lane.b32.xlu1 %v5380_v14, %s4161_s22 }
 0x522   :  { %1281 = vrot.lane.b32.xlu1 %v5385_v41, %s4161_s22 }
 0x52b   :  { %1283 = vrot.lane.b32.xlu0 %v5391_v53, %s4161_s22 }
 0x546   :  { %1502 = vadd.xlane.f32.xlu1 %v1501_v43  ;;  %v1546_v43 = vmul.f32 %v4871_v42, %v4766_v59 }
 0x54a   :  { %1496 = vadd.xlane.f32.xlu0 %v1495_v47  ;;  %v1550_v47 = vmul.f32 %v4899_v63, %v4766_v59 }
 0x54e   :  { %1505 = vadd.xlane.f32.xlu0 %v1504_v60  ;;  %v1562_v60 = vpop.permute.xlu1 %1561 }
 0x54f   :  { %v1585_v0 = vsel %vm575_vm1, %v1562_v60, 0.0 }
 0x552   :  { %v1274_v51 = vpop.permute.xlu1 %1273 }
 0x557   :  { %1285 = vrot.lane.b32.xlu1 %v5399_v19, %s4161_s22 }
 0x564   :  { %1287 = vrot.lane.b32.xlu0 %v5405_v44, %s4161_s22 }
 0x57b   :  { %1508 = vadd.xlane.f32.xlu1 %v1507_v24  ;;  %v1276_v24 = vpop.permute.xlu0 %1275 }
 0x583   :  { %1511 = vadd.xlane.f32.xlu0 %v1510_v37  ;;  %v5433_v37 = vpop.xlane.xlu0 %1493 }
 0x584   :  { %6865 = vst [vmem:[#allocation99_spill] sm:$0xff] %v5433_v37 }
 0x58c   :  { %1565 = vrot.lane.b32.xlu1 %v1547_v4, %s4161_s22 }
 0x590   :  { %1567 = vrot.lane.b32.xlu1 %v1548_v54, %s4161_s22  ;;  %v1280_v54 = vpop.permute.xlu0 %1279 }
 0x594   :  { %1569 = vrot.lane.b32.xlu1 %v1549_v29, %s4161_s22 }
 0x598   :  { %1573 = vrot.lane.b32.xlu1 %v1551_v10, %s4161_s22 }
 0x599   :  { %1563 = vrot.lane.b32.xlu0 %v1546_v43, %s4161_s22 }
 0x59a   :  { %v5435_v4 = vpop.xlane.xlu1 %1490 }
 0x59b   :  { %6866 = vst [vmem:[#allocation100_spill] sm:$0xff] %v5435_v4 }
 0x59d   :  { %1571 = vrot.lane.b32.xlu0 %v1550_v47, %s4161_s22 }
 0x59e   :  { %v1278_v29 = vpop.permute.xlu1 %1277 }
 0x5a1   :  { %1575 = vrot.lane.b32.xlu0 %v1552_v38, %s4161_s22 }
 0x5a2   :  { %v5437_v10 = vpop.xlane.xlu0 %1499  ;;  %v1282_v43 = vpop.permute.xlu1 %1281 }
 0x5a3   :  { %6867 = vst [vmem:[#allocation101_spill] sm:$0xff] %v5437_v10 }
 0x5a6   :  { %v1284_v47 = vpop.permute.xlu0 %1283 }
 0x5bc   :  { %1586 = vadd.xlane.f32.xlu1 %v1585_v0 }
 0x5d3   :  { %v5439_v9 = vpop.xlane.xlu1 %1502 }
 0x5d4   :  { %6868 = vst [vmem:[#allocation102_spill] sm:$0xff] %v5439_v9 }
 0x5d7   :  { %v5441_v1 = vpop.xlane.xlu0 %1496  ;;  %v1286_v38 = vpop.permute.xlu1 %1285 }
 0x5d8   :  { %6869 = vst [vmem:[#allocation103_spill] sm:$0xff] %v5441_v1 }
 0x5db   :  { %v5443_v15 = vpop.xlane.xlu0 %1505 }
 0x5dc   :  { %6870 = vst [vmem:[#allocation104_spill] sm:$0xff] %v5443_v15 }
 0x5df   :  { %v1288_v0 = vpop.permute.xlu0 %1287 }
 0x608   :  { %v5445_v60 = vpop.xlane.xlu1 %1508 }
 0x609   :  { %6871 = vst [vmem:[#allocation105_spill] sm:$0xff] %v5445_v60 }
 0x60c   :  { %v1566_v35 = vpop.permute.xlu1 %1565 }
 0x60d   :  { %v1591_v15 = vsel %vm575_vm1, %v1566_v35, 0.0  ;;  %v1292_v35 = vadd.f32 %v1280_v54, %v5341_v6 }
 0x610   :  { %v1568_v37 = vpop.permute.xlu1 %1567  ;;  %v5447_v57 = vpop.xlane.xlu0 %1511 }
 0x611   :  { %6872 = vst [vmem:[#allocation106_spill] sm:$0xff] %v5447_v57  ;;  %v1594_v62 = vsel %vm575_vm1, %v1568_v37, 0.0 }
 0x614   :  { %v1570_v4 = vpop.permute.xlu1 %1569  ;;  %v1564_v36 = vpop.permute.xlu0 %1563 }
 0x615   :  { %v1597_v10 = vsel %vm575_vm1, %v1570_v4, 0.0  ;;  %v1588_v28 = vsel %vm575_vm1, %v1564_v36, 0.0  ;;  %v1643_v36 = vmul.f32 %v4881_v48, %v4781_v40  ;;  %v1646_v48 = vmul.f32 %v4899_v63, %v4781_v40 }
 0x616   :  { %1598 = vadd.xlane.f32.xlu1 %v1597_v10  ;;  %1589 = vadd.xlane.f32.xlu0 %v1588_v28  ;;  %v1641_v28 = vmul.f32 %v4867_v5, %v4781_v40  ;;  %v1647_v5 = vmul.f32 %v4909_v58, %v4781_v40  ;;  %v1290_v58 = vadd.f32 %v1276_v24, %v5248_v13 }
 0x617   :  { %v1293_v63 = vadd.f32 %v1282_v43, %v5385_v41  ;;  %v1332_v10 = vmul.f32 %v1292_v35, %v1292_v35  ;;  %v1295_v13 = vadd.f32 %v1286_v38, %v5399_v19  ;;  %v1296_v41 = vadd.f32 %v1288_v0, %v5405_v44 }
 0x618   :  { %v1574_v9 = vpop.permute.xlu1 %1573  ;;  %v1572_v60 = vpop.permute.xlu0 %1571 }
 0x619   :  { %v1603_v1 = vsel %vm575_vm1, %v1574_v9, 0.0  ;;  %v1600_v57 = vsel %vm575_vm1, %v1572_v60, 0.0  ;;  %v1330_v9 = vmul.f32 %v1290_v58, %v1290_v58  ;;  %v1333_v60 = vmul.f32 %v1293_v63, %v1293_v63 }
 0x61a   :  { %1604 = vadd.xlane.f32.xlu1 %v1603_v1  ;;  %1592 = vadd.xlane.f32.xlu0 %v1591_v15  ;;  %v1346_v6 = vsel %vm575_vm1, %v1332_v10, 0.0 }
 0x61b   :  { %v1349_v54 = vsel %vm575_vm1, %v1333_v60, 0.0 }
 0x61c   :  { %v1576_v12 = vpop.permute.xlu0 %1575 }
 0x61d   :  { %v1606_v4 = vsel %vm575_vm1, %v1576_v12, 0.0  ;;  %v1642_v12 = vmul.f32 %v4871_v42, %v4781_v40  ;;  %v1291_v42 = vadd.f32 %v1278_v29, %v5380_v14  ;;  %v1336_v29 = vmul.f32 %v1296_v41, %v1296_v41 }
 0x61e   :  { %1595 = vadd.xlane.f32.xlu0 %v1594_v62  ;;  %v1644_v62 = vmul.f32 %v4885_v56, %v4781_v40  ;;  %v1648_v56 = vmul.f32 %v4913_v2, %v4781_v40  ;;  %v1340_v2 = vsel %vm575_vm1, %v1330_v9, 0.0 }
 0x61f   :  { %v1331_v1 = vmul.f32 %v1291_v42, %v1291_v42  ;;  %v1358_v19 = vsel %vm575_vm1, %v1336_v29, 0.0 }
 0x621   :  { %v1343_v24 = vsel %vm575_vm1, %v1331_v1, 0.0 }
 0x622   :  { %1601 = vadd.xlane.f32.xlu0 %v1600_v57  ;;  %v1645_v57 = vmul.f32 %v4895_v18, %v4781_v40  ;;  %v1289_v18 = vadd.f32 %v1274_v51, %v5353_v17  ;;  %v1294_v17 = vadd.f32 %v1284_v47, %v5391_v53  ;;  %v1335_v51 = vmul.f32 %v1295_v13, %v1295_v13 }
 0x624   :  { %v1329_v15 = vmul.f32 %v1289_v18, %v1289_v18  ;;  %v1334_v14 = vmul.f32 %v1294_v17, %v1294_v17  ;;  %v1355_v43 = vsel %vm575_vm1, %v1335_v51, 0.0 }
 0x626   :  { %1607 = vadd.xlane.f32.xlu0 %v1606_v4  ;;  %v1337_v37 = vsel %vm575_vm1, %v1329_v15, 0.0  ;;  %v1352_v53 = vsel %vm575_vm1, %v1334_v14, 0.0 }
 0x62b   :  { %1657 = vrot.lane.b32.xlu1 %v1641_v28, %s4162_s23 }
 0x62f   :  { %1661 = vrot.lane.b32.xlu1 %v1643_v36, %s4162_s23 }
 0x633   :  { %1663 = vrot.lane.b32.xlu1 %v1644_v62, %s4162_s23 }
 0x637   :  { %1665 = vrot.lane.b32.xlu1 %v1645_v57, %s4162_s23 }
 0x63b   :  { %1669 = vrot.lane.b32.xlu1 %v1647_v5, %s4162_s23 }
 0x63c   :  { %1659 = vrot.lane.b32.xlu0 %v1642_v12, %s4162_s23 }
 0x640   :  { %1667 = vrot.lane.b32.xlu0 %v1646_v48, %s4162_s23 }
 0x644   :  { %1671 = vrot.lane.b32.xlu0 %v1648_v56, %s4162_s23 }
 0x649   :  { %v5496_v47 = vpop.xlane.xlu1 %1586 }
 0x65f   :  { %1338 = vadd.xlane.f32.xlu1 %v1337_v37 }
 0x663   :  { %1344 = vadd.xlane.f32.xlu1 %v1343_v24  ;;  %1341 = vadd.xlane.f32.xlu0 %v1340_v2 }
 0x667   :  { %1350 = vadd.xlane.f32.xlu1 %v1349_v54  ;;  %1347 = vadd.xlane.f32.xlu0 %v1346_v6 }
 0x66b   :  { %1356 = vadd.xlane.f32.xlu1 %v1355_v43  ;;  %1353 = vadd.xlane.f32.xlu0 %v1352_v53 }
 0x66f   :  { %1359 = vadd.xlane.f32.xlu0 %v1358_v19 }
 0x6a3   :  { %v5498_v38 = vpop.xlane.xlu1 %1598  ;;  %v5500_v4 = vpop.xlane.xlu0 %1589 }
 0x6a7   :  { %v5502_v44 = vpop.xlane.xlu1 %1604  ;;  %v5504_v0 = vpop.xlane.xlu0 %1592 }
 0x6ab   :  { %v1658_v28 = vpop.permute.xlu1 %1657  ;;  %v5506_v36 = vpop.xlane.xlu0 %1595 }
 0x6ac   :  { %6873 = vst [vmem:[#allocation107_spill] sm:$0xff] %v5506_v36  ;;  %v1681_v62 = vsel %vm575_vm1, %v1658_v28, 0.0 }
 0x6ad   :  { %1682 = vadd.xlane.f32.xlu1 %v1681_v62 }
 0x6af   :  { %v1662_v57 = vpop.permute.xlu1 %1661  ;;  %v5509_v5 = vpop.xlane.xlu0 %1601 }
 0x6b0   :  { %6874 = vst [vmem:[#allocation108_spill] sm:$0xff] %v5509_v5  ;;  %v1687_v35 = vsel %vm575_vm1, %v1662_v57, 0.0  ;;  %v7003_v5 = vld [vmem:[#allocation86_spill] sm:$0xff] }
 0x6b3   :  { %v1664_v12 = vpop.permute.xlu1 %1663  ;;  %v5511_v48 = vpop.xlane.xlu0 %1607 }
 0x6b4   :  { %6875 = vst [vmem:[#allocation109_spill] sm:$0xff] %v5511_v48  ;;  %v1690_v63 = vsel %vm575_vm1, %v1664_v12, 0.0 }
 0x6b7   :  { %v1666_v56 = vpop.permute.xlu1 %1665  ;;  %v1660_v18 = vpop.permute.xlu0 %1659 }
 0x6b8   :  { %v1693_v58 = vsel %vm575_vm1, %v1666_v56, 0.0  ;;  %v1684_v15 = vsel %vm575_vm1, %v1660_v18, 0.0 }
 0x6b9   :  { %1694 = vadd.xlane.f32.xlu1 %v1693_v58  ;;  %1685 = vadd.xlane.f32.xlu0 %v1684_v15 }
 0x6bb   :  { %v1670_v42 = vpop.permute.xlu1 %1669  ;;  %v1668_v1 = vpop.permute.xlu0 %1667 }
 0x6bc   :  { %v1699_v9 = vsel %vm575_vm1, %v1670_v42, 0.0  ;;  %v1696_v37 = vsel %vm575_vm1, %v1668_v1, 0.0 }
 0x6bd   :  { %1700 = vadd.xlane.f32.xlu1 %v1699_v9  ;;  %1688 = vadd.xlane.f32.xlu0 %v1687_v35 }
 0x6bf   :  { %v1672_v10 = vpop.permute.xlu0 %1671 }
 0x6c0   :  { %v1702_v2 = vsel %vm575_vm1, %v1672_v10, 0.0 }
 0x6c1   :  { %1691 = vadd.xlane.f32.xlu0 %v1690_v63 }
 0x6c5   :  { %1697 = vadd.xlane.f32.xlu0 %v1696_v37 }
 0x6c9   :  { %1703 = vadd.xlane.f32.xlu0 %v1702_v2 }
 0x6ce   :  { %1995 = vrot.lane.b32.xlu1 %v5026_v33, %s4162_s23 }
 0x6d2   :  { %1999 = vrot.lane.b32.xlu1 %v5042_v50, %s4162_s23 }
 0x6d6   :  { %2001 = vrot.lane.b32.xlu1 %v5039_v32, %s4162_s23 }
 0x6da   :  { %2003 = vrot.lane.b32.xlu1 %v5057_v23, %s4162_s23 }
 0x6de   :  { %2007 = vrot.lane.b32.xlu1 %v5072_v3, %s4162_s23 }
 0x6df   :  { %1997 = vrot.lane.b32.xlu0 %v5023_v34, %s4162_s23 }
 0x6e3   :  { %2005 = vrot.lane.b32.xlu0 %v5054_v52, %s4162_s23 }
 0x6e7   :  { %2009 = vrot.lane.b32.xlu0 %v5069_v16, %s4162_s23 }
 0x6ec   :  { %v5536_v60 = vpop.xlane.xlu1 %1338 }
 0x6ed   :  { %6876 = vst [vmem:[#allocation110_spill] sm:$0xff] %v5536_v60 }
 0x6f0   :  { %v5538_v17 = vpop.xlane.xlu0 %1341  ;;  %v5540_v13 = vpop.xlane.xlu1 %1344 }
 0x6f1   :  { %6877 = vst [vmem:[#allocation111_spill] sm:$0xff] %v5538_v17  ;;  %6878 = vst [vmem:[#allocation112_spill] sm:$0xff] %v5540_v13 }
 0x6f4   :  { %v5542_v24 = vpop.xlane.xlu0 %1347  ;;  %v5544_v6 = vpop.xlane.xlu1 %1350 }
 0x6f5   :  { %6879 = vst [vmem:[#allocation113_spill] sm:$0xff] %v5542_v24  ;;  %6880 = vst [vmem:[#allocation114_spill] sm:$0xff] %v5544_v6 }
 0x6f8   :  { %v5546_v14 = vpop.xlane.xlu0 %1353  ;;  %v5548_v51 = vpop.xlane.xlu1 %1356 }
 0x6f9   :  { %6881 = vst [vmem:[#allocation115_spill] sm:$0xff] %v5546_v14  ;;  %6882 = vst [vmem:[#allocation116_spill] sm:$0xff] %v5548_v51 }
 0x6fc   :  { %v5550_v41 = vpop.xlane.xlu0 %1359 }
 0x6fd   :  { %6883 = vst [vmem:[#allocation117_spill] sm:$0xff] %v5550_v41  ;;  %v2131_v41 = vmul.f32 %v5257_v45, %v5033_v26 }
 0x73a   :  { %v5552_v54 = vpop.xlane.xlu1 %1682 }
 0x73b   :  { %6884 = vst [vmem:[#allocation118_spill] sm:$0xff] %v5552_v54  ;;  %v6999_v54 = vld [vmem:[#allocation81_spill] sm:$0xff] }
 0x746   :  { %v5554_v29 = vpop.xlane.xlu1 %1694  ;;  %v5556_v43 = vpop.xlane.xlu0 %1685 }
 0x747   :  { %6885 = vst [vmem:[#allocation119_spill] sm:$0xff] %v5554_v29  ;;  %6886 = vst [vmem:[#allocation120_spill] sm:$0xff] %v5556_v43 }
 0x74a   :  { %v5558_v53 = vpop.xlane.xlu1 %1700  ;;  %v5560_v19 = vpop.xlane.xlu0 %1688 }
 0x74b   :  { %6887 = vst [vmem:[#allocation121_spill] sm:$0xff] %v5558_v53  ;;  %6888 = vst [vmem:[#allocation122_spill] sm:$0xff] %v5560_v19 }
 0x74e   :  { %v1996_v28 = vpop.permute.xlu1 %1995  ;;  %v5562_v62 = vpop.xlane.xlu0 %1691 }
 0x74f   :  { %6889 = vst [vmem:[#allocation123_spill] sm:$0xff] %v5562_v62  ;;  %v5565_v57 = vadd.f32 %v5026_v33, %v1996_v28 }
 0x751   :  { %2019 = vrot.lane.b32.xlu1 %v5565_v57, %s4161_s22 }
 0x752   :  { %v2000_v12 = vpop.permute.xlu1 %1999  ;;  %v5569_v56 = vpop.xlane.xlu0 %1697 }
 0x753   :  { %6890 = vst [vmem:[#allocation124_spill] sm:$0xff] %v5569_v56  ;;  %v5572_v18 = vadd.f32 %v5042_v50, %v2000_v12  ;;  %v6984_v56 = vld [vmem:[#allocation62_spill] sm:$0xff] }
 0x755   :  { %2023 = vrot.lane.b32.xlu1 %v5572_v18, %s4161_s22 }
 0x756   :  { %v2002_v58 = vpop.permute.xlu1 %2001  ;;  %v5576_v15 = vpop.xlane.xlu0 %1703 }
 0x757   :  { %6891 = vst [vmem:[#allocation125_spill] sm:$0xff] %v5576_v15  ;;  %v5589_v10 = vadd.f32 %v5039_v32, %v2002_v58  ;;  %v2043_v58 = vmul.f32 %v5026_v33, %v5026_v33  ;;  %v2046_v33 = vmul.f32 %v5039_v32, %v5039_v32  ;;  %v2050_v32 = vmul.f32 %v5069_v16, %v5069_v16 }
 0x75a   :  { %v2004_v42 = vpop.permute.xlu1 %2003  ;;  %v1998_v9 = vpop.permute.xlu0 %1997 }
 0x75b   :  { %v5579_v35 = vadd.f32 %v5057_v23, %v2004_v42  ;;  %v5582_v1 = vadd.f32 %v5023_v34, %v1998_v9  ;;  %v2044_v9 = vmul.f32 %v5023_v34, %v5023_v34  ;;  %v2139_v34 = vsel %vm575_vm1, %v2131_v41, 0.0 }
 0x75c   :  { %v2132_v41 = vmul.f32 %v5257_v45, %v5037_v8 }
 0x75d   :  { %2027 = vrot.lane.b32.xlu1 %v5579_v35, %s4161_s22  ;;  %2021 = vrot.lane.b32.xlu0 %v5582_v1, %s4161_s22 }
 0x75e   :  { %v2008_v63 = vpop.permute.xlu1 %2007  ;;  %v2006_v37 = vpop.permute.xlu0 %2005 }
 0x75f   :  { %v5592_v2 = vadd.f32 %v5072_v3, %v2008_v63  ;;  %v5599_v28 = vadd.f32 %v5054_v52, %v2006_v37  ;;  %v2047_v63 = vmul.f32 %v5057_v23, %v5057_v23  ;;  %v2045_v37 = vmul.f32 %v5042_v50, %v5042_v50 }
 0x760   :  { %v2133_v23 = vmul.f32 %v5257_v45, %v5048_v7  ;;  %v2048_v50 = vmul.f32 %v5054_v52, %v5054_v52  ;;  %v2142_v52 = vsel %vm575_vm1, %v2132_v41, 0.0  ;;  %v2201_v41 = vmul.f32 %v5077_v22, %v4773_v49 }
 0x761   :  { %2031 = vrot.lane.b32.xlu1 %v5592_v2, %s4161_s22  ;;  %2025 = vrot.lane.b32.xlu0 %v5589_v10, %s4161_s22 }
 0x762   :  { %v2010_v12 = vpop.permute.xlu0 %2009 }
 0x763   :  { %v5604_v42 = vadd.f32 %v5069_v16, %v2010_v12  ;;  %v2049_v12 = vmul.f32 %v5072_v3, %v5072_v3  ;;  %v2145_v3 = vsel %vm575_vm1, %v2133_v23, 0.0  ;;  %v2138_v23 = vmul.f32 %v5257_v45, %v5081_v30 }
 0x765   :  { %2029 = vrot.lane.b32.xlu0 %v5599_v28, %s4161_s22 }
 0x769   :  { %2033 = vrot.lane.b32.xlu0 %v5604_v42, %s4161_s22 }
 0x785   :  { %2051 = vadd.xlane.f32.xlu1 %v2043_v58  ;;  %v2135_v58 = vmul.f32 %v5257_v45, %v5063_v20 }
 0x788   :  { %2053 = vadd.xlane.f32.xlu0 %v2044_v9  ;;  %v2151_v9 = vsel %vm575_vm1, %v2135_v58, 0.0  ;;  %v2197_v58 = vmul.f32 %v5048_v7, %v4773_v49 }
 0x789   :  { %2059 = vadd.xlane.f32.xlu1 %v2047_v63  ;;  %v2137_v63 = vmul.f32 %v5257_v45, %v5077_v22 }
 0x78c   :  { %2055 = vadd.xlane.f32.xlu0 %v2045_v37  ;;  %v2134_v37 = vmul.f32 %v5257_v45, %v5052_v46 }
 0x78d   :  { %2063 = vadd.xlane.f32.xlu1 %v2049_v12  ;;  %v2157_v12 = vsel %vm575_vm1, %v2137_v63, 0.0  ;;  %v2200_v63 = vmul.f32 %v5067_v21, %v4773_v49 }
 0x78e   :  { %v2148_v16 = vsel %vm575_vm1, %v2134_v37, 0.0 }
 0x790   :  { %2057 = vadd.xlane.f32.xlu0 %v2046_v33  ;;  %v2136_v33 = vmul.f32 %v5257_v45, %v5067_v21  ;;  %v2199_v45 = vmul.f32 %v5063_v20, %v4773_v49 }
 0x791   :  { %2140 = vadd.xlane.f32.xlu1 %v2139_v34 }
 0x792   :  { %v2154_v34 = vsel %vm575_vm1, %v2136_v33, 0.0 }
 0x794   :  { %2061 = vadd.xlane.f32.xlu0 %v2048_v50  ;;  %v2160_v50 = vsel %vm575_vm1, %v2138_v23, 0.0 }
 0x795   :  { %2146 = vadd.xlane.f32.xlu1 %v2145_v3  ;;  %v2195_v3 = vmul.f32 %v5033_v26, %v4773_v49 }
 0x798   :  { %2065 = vadd.xlane.f32.xlu0 %v2050_v32  ;;  %v2198_v32 = vmul.f32 %v5052_v46, %v4773_v49 }
 0x799   :  { %2152 = vadd.xlane.f32.xlu1 %v2151_v9  ;;  %v2196_v9 = vmul.f32 %v5037_v8, %v4773_v49 }
 0x79c   :  { %2143 = vadd.xlane.f32.xlu0 %v2142_v52  ;;  %v2202_v52 = vmul.f32 %v5081_v30, %v4773_v49 }
 0x79d   :  { %2158 = vadd.xlane.f32.xlu1 %v2157_v12 }
 0x7a0   :  { %2149 = vadd.xlane.f32.xlu0 %v2148_v16 }
 0x7a4   :  { %2155 = vadd.xlane.f32.xlu0 %v2154_v34 }
 0x7a8   :  { %2161 = vadd.xlane.f32.xlu0 %v2160_v50 }
 0x7ae   :  { %2211 = vrot.lane.b32.xlu1 %v2195_v3, %s4163_s24 }
 0x7b2   :  { %2215 = vrot.lane.b32.xlu1 %v2197_v58, %s4163_s24 }
 0x7b6   :  { %2217 = vrot.lane.b32.xlu1 %v2198_v32, %s4163_s24 }
 0x7ba   :  { %2219 = vrot.lane.b32.xlu1 %v2199_v45, %s4163_s24 }
 0x7be   :  { %2223 = vrot.lane.b32.xlu1 %v2201_v41, %s4163_s24  ;;  %2213 = vrot.lane.b32.xlu0 %v2196_v9, %s4163_s24 }
 0x7c2   :  { %2221 = vrot.lane.b32.xlu0 %v2200_v63, %s4163_s24 }
 0x7c3   :  { %v2020_v37 = vpop.permute.xlu1 %2019 }
 0x7c4   :  { %v2035_v33 = vadd.f32 %v2020_v37, %v5565_v57 }
 0x7c6   :  { %2225 = vrot.lane.b32.xlu0 %v2202_v52, %s4163_s24  ;;  %v2075_v3 = vmul.f32 %v2035_v33, %v2035_v33 }
 0x7c7   :  { %v2024_v16 = vpop.permute.xlu1 %2023 }
 0x7c8   :  { %v2037_v58 = vadd.f32 %v2024_v16, %v5572_v18  ;;  %v2083_v52 = vsel %vm575_vm1, %v2075_v3, 0.0 }
 0x7ca   :  { %v2077_v9 = vmul.f32 %v2037_v58, %v2037_v58 }
 0x7cc   :  { %v2089_v16 = vsel %vm575_vm1, %v2077_v9, 0.0 }
 0x7cf   :  { %v2022_v12 = vpop.permute.xlu0 %2021  ;;  %v2028_v23 = vpop.permute.xlu1 %2027 }
 0x7d0   :  { %v2036_v50 = vadd.f32 %v2022_v12, %v5582_v1  ;;  %v2039_v63 = vadd.f32 %v2028_v23, %v5579_v35 }
 0x7d2   :  { %v2076_v45 = vmul.f32 %v2036_v50, %v2036_v50  ;;  %v2079_v1 = vmul.f32 %v2039_v63, %v2039_v63 }
 0x7d3   :  { %v2026_v34 = vpop.permute.xlu0 %2025  ;;  %v2032_v14 = vpop.permute.xlu1 %2031 }
 0x7d4   :  { %v2038_v41 = vadd.f32 %v2026_v34, %v5589_v10  ;;  %v2086_v37 = vsel %vm575_vm1, %v2076_v45, 0.0  ;;  %v2041_v12 = vadd.f32 %v2032_v14, %v5592_v2  ;;  %v2095_v23 = vsel %vm575_vm1, %v2079_v1, 0.0 }
 0x7d6   :  { %v2078_v51 = vmul.f32 %v2038_v41, %v2038_v41  ;;  %v2081_v34 = vmul.f32 %v2041_v12, %v2041_v12 }
 0x7d7   :  { %v2030_v32 = vpop.permute.xlu0 %2029 }
 0x7d8   :  { %v2040_v57 = vadd.f32 %v2030_v32, %v5599_v28  ;;  %v2092_v33 = vsel %vm575_vm1, %v2078_v51, 0.0  ;;  %v2101_v14 = vsel %vm575_vm1, %v2081_v34, 0.0 }
 0x7da   :  { %v2080_v10 = vmul.f32 %v2040_v57, %v2040_v57 }
 0x7db   :  { %v2034_v18 = vpop.permute.xlu0 %2033 }
 0x7dc   :  { %v2042_v35 = vadd.f32 %v2034_v18, %v5604_v42  ;;  %v2098_v50 = vsel %vm575_vm1, %v2080_v10, 0.0 }
 0x7de   :  { %v2082_v28 = vmul.f32 %v2042_v35, %v2042_v35 }
 0x7e0   :  { %v2104_v2 = vsel %vm575_vm1, %v2082_v28, 0.0 }
 0x7e2   :  { %2084 = vadd.xlane.f32.xlu1 %v2083_v52 }
 0x7e5   :  { %2087 = vadd.xlane.f32.xlu0 %v2086_v37 }
 0x7e6   :  { %2090 = vadd.xlane.f32.xlu1 %v2089_v16 }
 0x7e9   :  { %2093 = vadd.xlane.f32.xlu0 %v2092_v33 }
 0x7ea   :  { %2096 = vadd.xlane.f32.xlu1 %v2095_v23 }
 0x7ed   :  { %2099 = vadd.xlane.f32.xlu0 %v2098_v50 }
 0x7ee   :  { %2102 = vadd.xlane.f32.xlu1 %v2101_v14 }
 0x7f1   :  { %2105 = vadd.xlane.f32.xlu0 %v2104_v2 }
 0x812   :  { %v5688_v3 = vpop.xlane.xlu1 %2051 }
 0x813   :  { %6892 = vst [vmem:[#allocation126_spill] sm:$0xff] %v5688_v3 }
 0x815   :  { %v5690_v42 = vpop.xlane.xlu0 %2053 }
 0x816   :  { %6893 = vst [vmem:[#allocation127_spill] sm:$0xff] %v5690_v42  ;;  %v5692_v51 = vpop.xlane.xlu1 %2059 }
 0x817   :  { %6894 = vst [vmem:[#allocation128_spill] sm:$0xff] %v5692_v51 }
 0x819   :  { %v5694_v58 = vpop.xlane.xlu0 %2055 }
 0x81a   :  { %6895 = vst [vmem:[#allocation129_spill] sm:$0xff] %v5694_v58  ;;  %v5696_v32 = vpop.xlane.xlu1 %2063 }
 0x81b   :  { %6896 = vst [vmem:[#allocation130_spill] sm:$0xff] %v5696_v32 }
 0x81d   :  { %v5698_v45 = vpop.xlane.xlu0 %2057 }
 0x81e   :  { %6897 = vst [vmem:[#allocation131_spill] sm:$0xff] %v5698_v45  ;;  %v5700_v41 = vpop.xlane.xlu1 %2140 }
 0x81f   :  { %6898 = vst [vmem:[#allocation132_spill] sm:$0xff] %v5700_v41 }
 0x821   :  { %v5702_v9 = vpop.xlane.xlu0 %2061 }
 0x822   :  { %6899 = vst [vmem:[#allocation133_spill] sm:$0xff] %v5702_v9  ;;  %v5704_v63 = vpop.xlane.xlu1 %2146 }
 0x823   :  { %6900 = vst [vmem:[#allocation134_spill] sm:$0xff] %v5704_v63 }
 0x825   :  { %v5706_v52 = vpop.xlane.xlu0 %2065 }
 0x826   :  { %6901 = vst [vmem:[#allocation135_spill] sm:$0xff] %v5706_v52  ;;  %v5708_v57 = vpop.xlane.xlu1 %2152 }
 0x827   :  { %6902 = vst [vmem:[#allocation136_spill] sm:$0xff] %v5708_v57 }
 0x829   :  { %v5710_v37 = vpop.xlane.xlu0 %2143 }
 0x82a   :  { %6903 = vst [vmem:[#allocation137_spill] sm:$0xff] %v5710_v37  ;;  %v5712_v1 = vpop.xlane.xlu1 %2158 }
 0x82b   :  { %6904 = vst [vmem:[#allocation138_spill] sm:$0xff] %v5712_v1 }
 0x82d   :  { %v5714_v12 = vpop.xlane.xlu0 %2149 }
 0x82e   :  { %6905 = vst [vmem:[#allocation139_spill] sm:$0xff] %v5714_v12  ;;  %v2212_v18 = vpop.permute.xlu1 %2211 }
 0x82f   :  { %v2235_v16 = vsel %vm575_vm1, %v2212_v18, 0.0 }
 0x830   :  { %2236 = vadd.xlane.f32.xlu1 %v2235_v16 }
 0x831   :  { %v5717_v10 = vpop.xlane.xlu0 %2155 }
 0x832   :  { %6906 = vst [vmem:[#allocation140_spill] sm:$0xff] %v5717_v10  ;;  %v2216_v35 = vpop.permute.xlu1 %2215 }
 0x833   :  { %v2241_v52 = vsel %vm575_vm1, %v2216_v35, 0.0  ;;  %v2292_v35 = vmul.f32 %v5037_v8, %v4766_v59 }
 0x835   :  { %v5719_v33 = vpop.xlane.xlu0 %2161 }
 0x836   :  { %6907 = vst [vmem:[#allocation141_spill] sm:$0xff] %v5719_v33  ;;  %v2218_v34 = vpop.permute.xlu1 %2217 }
 0x837   :  { %v2244_v9 = vsel %vm575_vm1, %v2218_v34, 0.0  ;;  %v2296_v34 = vmul.f32 %v5067_v21, %v4766_v59 }
 0x839   :  { %v2214_v23 = vpop.permute.xlu0 %2213 }
 0x83a   :  { %v2220_v28 = vpop.permute.xlu1 %2219  ;;  %v2238_v50 = vsel %vm575_vm1, %v2214_v23, 0.0 }
 0x83b   :  { %2239 = vadd.xlane.f32.xlu0 %v2238_v50  ;;  %v2247_v14 = vsel %vm575_vm1, %v2220_v28, 0.0  ;;  %v2291_v28 = vmul.f32 %v5033_v26, %v4766_v59  ;;  %v2298_v50 = vmul.f32 %v5081_v30, %v4766_v59 }
 0x83c   :  { %2248 = vadd.xlane.f32.xlu1 %v2247_v14 }
 0x83d   :  { %v2222_v16 = vpop.permute.xlu0 %2221 }
 0x83e   :  { %v2224_v2 = vpop.permute.xlu1 %2223  ;;  %v2250_v45 = vsel %vm575_vm1, %v2222_v16, 0.0 }
 0x83f   :  { %2242 = vadd.xlane.f32.xlu0 %v2241_v52  ;;  %v2253_v18 = vsel %vm575_vm1, %v2224_v2, 0.0  ;;  %v2293_v52 = vmul.f32 %v5048_v7, %v4766_v59 }
 0x840   :  { %2254 = vadd.xlane.f32.xlu1 %v2253_v18 }
 0x841   :  { %v2226_v32 = vpop.permute.xlu0 %2225 }
 0x842   :  { %v2256_v23 = vsel %vm575_vm1, %v2226_v32, 0.0  ;;  %v2297_v32 = vmul.f32 %v5077_v22, %v4766_v59 }
 0x843   :  { %2245 = vadd.xlane.f32.xlu0 %v2244_v9  ;;  %v2294_v9 = vmul.f32 %v5052_v46, %v4766_v59 }
 0x847   :  { %2251 = vadd.xlane.f32.xlu0 %v2250_v45  ;;  %v2295_v45 = vmul.f32 %v5063_v20, %v4766_v59 }
 0x84b   :  { %2257 = vadd.xlane.f32.xlu0 %v2256_v23 }
 0x851   :  { %2307 = vrot.lane.b32.xlu1 %v2291_v28, %s4161_s22 }
 0x855   :  { %2311 = vrot.lane.b32.xlu1 %v2293_v52, %s4161_s22 }
 0x859   :  { %2313 = vrot.lane.b32.xlu1 %v2294_v9, %s4161_s22 }
 0x85d   :  { %2315 = vrot.lane.b32.xlu1 %v2295_v45, %s4161_s22 }
 0x861   :  { %2319 = vrot.lane.b32.xlu1 %v2297_v32, %s4161_s22  ;;  %2309 = vrot.lane.b32.xlu0 %v2292_v35, %s4161_s22 }
 0x865   :  { %2317 = vrot.lane.b32.xlu0 %v2296_v34, %s4161_s22 }
 0x869   :  { %2321 = vrot.lane.b32.xlu0 %v2298_v50, %s4161_s22 }
 0x86f   :  { %v5752_v14 = vpop.xlane.xlu1 %2084 }
 0x870   :  { %6908 = vst [vmem:[#allocation142_spill] sm:$0xff] %v5752_v14 }
 0x872   :  { %v5754_v2 = vpop.xlane.xlu0 %2087 }
 0x873   :  { %6909 = vst [vmem:[#allocation143_spill] sm:$0xff] %v5754_v2  ;;  %v5756_v18 = vpop.xlane.xlu1 %2090 }
 0x874   :  { %6910 = vst [vmem:[#allocation144_spill] sm:$0xff] %v5756_v18 }
 0x876   :  { %v5758_v16 = vpop.xlane.xlu0 %2093 }
 0x877   :  { %6911 = vst [vmem:[#allocation145_spill] sm:$0xff] %v5758_v16  ;;  %v5760_v23 = vpop.xlane.xlu1 %2096 }
 0x878   :  { %6912 = vst [vmem:[#allocation146_spill] sm:$0xff] %v5760_v23 }
 0x87a   :  { %v5762_v28 = vpop.xlane.xlu0 %2099 }
 0x87b   :  { %6913 = vst [vmem:[#allocation147_spill] sm:$0xff] %v5762_v28  ;;  %v5764_v52 = vpop.xlane.xlu1 %2102 }
 0x87c   :  { %6914 = vst [vmem:[#allocation148_spill] sm:$0xff] %v5764_v52 }
 0x87e   :  { %v5766_v9 = vpop.xlane.xlu0 %2105 }
 0x87f   :  { %6915 = vst [vmem:[#allocation149_spill] sm:$0xff] %v5766_v9 }
 0x8bd   :  { %v5768_v45 = vpop.xlane.xlu1 %2236 }
 0x8be   :  { %6916 = vst [vmem:[#allocation150_spill] sm:$0xff] %v5768_v45 }
 0x8c8   :  { %v5770_v32 = vpop.xlane.xlu0 %2239 }
 0x8c9   :  { %6917 = vst [vmem:[#allocation151_spill] sm:$0xff] %v5770_v32  ;;  %v5772_v35 = vpop.xlane.xlu1 %2248 }
 0x8ca   :  { %6918 = vst [vmem:[#allocation152_spill] sm:$0xff] %v5772_v35 }
 0x8cc   :  { %v5774_v34 = vpop.xlane.xlu0 %2242 }
 0x8cd   :  { %6919 = vst [vmem:[#allocation153_spill] sm:$0xff] %v5774_v34  ;;  %v5776_v50 = vpop.xlane.xlu1 %2254 }
 0x8ce   :  { %6920 = vst [vmem:[#allocation154_spill] sm:$0xff] %v5776_v50 }
 0x8d0   :  { %v5778_v58 = vpop.xlane.xlu0 %2245 }
 0x8d1   :  { %6921 = vst [vmem:[#allocation155_spill] sm:$0xff] %v5778_v58  ;;  %v2308_v16 = vpop.permute.xlu1 %2307 }
 0x8d2   :  { %v2331_v23 = vsel %vm575_vm1, %v2308_v16, 0.0 }
 0x8d3   :  { %2332 = vadd.xlane.f32.xlu1 %v2331_v23 }
 0x8d4   :  { %v5781_v28 = vpop.xlane.xlu0 %2251 }
 0x8d5   :  { %6922 = vst [vmem:[#allocation156_spill] sm:$0xff] %v5781_v28  ;;  %v2312_v52 = vpop.permute.xlu1 %2311 }
 0x8d6   :  { %v2337_v24 = vsel %vm575_vm1, %v2312_v52, 0.0 }
 0x8d8   :  { %v5783_v9 = vpop.xlane.xlu0 %2257 }
 0x8d9   :  { %6923 = vst [vmem:[#allocation157_spill] sm:$0xff] %v5783_v9  ;;  %v2314_v51 = vpop.permute.xlu1 %2313 }
 0x8da   :  { %v2340_v6 = vsel %vm575_vm1, %v2314_v51, 0.0  ;;  %v2392_v51 = vmul.f32 %v5067_v21, %v4781_v40 }
 0x8dc   :  { %v2310_v18 = vpop.permute.xlu0 %2309 }
 0x8dd   :  { %v2316_v2 = vpop.permute.xlu1 %2315  ;;  %v2334_v42 = vsel %vm575_vm1, %v2310_v18, 0.0 }
 0x8de   :  { %2335 = vadd.xlane.f32.xlu0 %v2334_v42  ;;  %v2343_v14 = vsel %vm575_vm1, %v2316_v2, 0.0  ;;  %v2394_v2 = vmul.f32 %v5081_v30, %v4781_v40 }
 0x8df   :  { %2344 = vadd.xlane.f32.xlu1 %v2343_v14  ;;  %v2387_v14 = vmul.f32 %v5033_v26, %v4781_v40 }
 0x8e0   :  { %v2318_v23 = vpop.permute.xlu0 %2317 }
 0x8e1   :  { %v2320_v3 = vpop.permute.xlu1 %2319  ;;  %v2346_v17 = vsel %vm575_vm1, %v2318_v23, 0.0 }
 0x8e2   :  { %2338 = vadd.xlane.f32.xlu0 %v2337_v24  ;;  %v2349_v16 = vsel %vm575_vm1, %v2320_v3, 0.0  ;;  %v2389_v24 = vmul.f32 %v5048_v7, %v4781_v40  ;;  %v2388_v3 = vmul.f32 %v5037_v8, %v4781_v40 }
 0x8e3   :  { %2350 = vadd.xlane.f32.xlu1 %v2349_v16 }
 0x8e4   :  { %v2322_v13 = vpop.permute.xlu0 %2321 }
 0x8e5   :  { %v2352_v42 = vsel %vm575_vm1, %v2322_v13, 0.0  ;;  %v2393_v13 = vmul.f32 %v5077_v22, %v4781_v40 }
 0x8e6   :  { %2341 = vadd.xlane.f32.xlu0 %v2340_v6  ;;  %v2390_v6 = vmul.f32 %v5052_v46, %v4781_v40 }
 0x8ea   :  { %2347 = vadd.xlane.f32.xlu0 %v2346_v17  ;;  %v2391_v17 = vmul.f32 %v5063_v20, %v4781_v40 }
 0x8ee   :  { %2353 = vadd.xlane.f32.xlu0 %v2352_v42 }
 0x8f4   :  { %2403 = vrot.lane.b32.xlu1 %v2387_v14, %s4162_s23 }
 0x8f8   :  { %2407 = vrot.lane.b32.xlu1 %v2389_v24, %s4162_s23 }
 0x8fc   :  { %2409 = vrot.lane.b32.xlu1 %v2390_v6, %s4162_s23 }
 0x900   :  { %2411 = vrot.lane.b32.xlu1 %v2391_v17, %s4162_s23 }
 0x904   :  { %2415 = vrot.lane.b32.xlu1 %v2393_v13, %s4162_s23  ;;  %2405 = vrot.lane.b32.xlu0 %v2388_v3, %s4162_s23 }
 0x908   :  { %2413 = vrot.lane.b32.xlu0 %v2392_v51, %s4162_s23 }
 0x90c   :  { %2417 = vrot.lane.b32.xlu0 %v2394_v2, %s4162_s23 }
 0x960   :  { %v5816_v18 = vpop.xlane.xlu1 %2332 }
 0x961   :  { %6924 = vst [vmem:[#allocation158_spill] sm:$0xff] %v5816_v18 }
 0x96b   :  { %v5818_v52 = vpop.xlane.xlu0 %2335 }
 0x96c   :  { %6925 = vst [vmem:[#allocation159_spill] sm:$0xff] %v5818_v52  ;;  %v5820_v16 = vpop.xlane.xlu1 %2344 }
 0x96d   :  { %6926 = vst [vmem:[#allocation160_spill] sm:$0xff] %v5820_v16 }
 0x96f   :  { %v5822_v23 = vpop.xlane.xlu0 %2338 }
 0x970   :  { %6927 = vst [vmem:[#allocation161_spill] sm:$0xff] %v5822_v23  ;;  %v5824_v42 = vpop.xlane.xlu1 %2350 }
 0x971   :  { %6928 = vst [vmem:[#allocation162_spill] sm:$0xff] %v5824_v42 }
 0x973   :  { %v5826_v14 = vpop.xlane.xlu0 %2341 }
 0x974   :  { %6929 = vst [vmem:[#allocation163_spill] sm:$0xff] %v5826_v14  ;;  %v2404_v24 = vpop.permute.xlu1 %2403 }
 0x975   :  { %v2427_v6 = vsel %vm575_vm1, %v2404_v24, 0.0 }
 0x976   :  { %2428 = vadd.xlane.f32.xlu1 %v2427_v6 }
 0x977   :  { %v5829_v17 = vpop.xlane.xlu0 %2347 }
 0x978   :  { %6930 = vst [vmem:[#allocation164_spill] sm:$0xff] %v5829_v17  ;;  %v2408_v13 = vpop.permute.xlu1 %2407 }
 0x979   :  { %v2433_v14 = vsel %vm575_vm1, %v2408_v13, 0.0 }
 0x97b   :  { %v5831_v3 = vpop.xlane.xlu0 %2353 }
 0x97c   :  { %6931 = vst [vmem:[#allocation165_spill] sm:$0xff] %v5831_v3  ;;  %v2410_v51 = vpop.permute.xlu1 %2409  ;;  %v4159_v3 = vld [vmem:[%s6707_s4] ss:$0 sm:$0xff] }
 0x97d   :  { %v2717_v17 = vadd.f32 %v4159_v3, %v5169_v31  ;;  %v2721_v13 = vadd.f32 %v4159_v3, %v5177_v27 }
 0x97f   :  { %v2406_v2 = vpop.permute.xlu0 %2405  ;;  %3886 = vtanh.f32 %v2717_v17 }
 0x980   :  { %v2412_v60 = vpop.permute.xlu1 %2411  ;;  %v2430_v16 = vsel %vm575_vm1, %v2406_v2, 0.0  ;;  %v2436_v2 = vsel %vm575_vm1, %v2410_v51, 0.0  ;;  %v2718_v51 = vadd.f32 %v4159_v3, %v5167_v39  ;;  %v6932_v39 = vld [vmem:[#allocation53_spill] sm:$0xff] }
 0x981   :  { %v2439_v23 = vsel %vm575_vm1, %v2412_v60, 0.0  ;;  %2431 = vadd.xlane.f32.xlu0 %v2430_v16  ;;  %v2719_v60 = vadd.f32 %v4159_v3, %v5173_v61  ;;  %v2723_v61 = vadd.f32 %v4159_v3, %v5183_v25 }
 0x982   :  { %2440 = vadd.xlane.f32.xlu1 %v2439_v23 }
 0x983   :  { %v2414_v6 = vpop.permute.xlu0 %2413  ;;  %3888 = vtanh.f32 %v2719_v60 }
 0x984   :  { %v2416_v42 = vpop.permute.xlu1 %2415  ;;  %v2442_v16 = vsel %vm575_vm1, %v2414_v6, 0.0 }
 0x985   :  { %v2445_v24 = vsel %vm575_vm1, %v2416_v42, 0.0  ;;  %2434 = vadd.xlane.f32.xlu0 %v2433_v14  ;;  %v2720_v42 = vadd.f32 %v4159_v3, %v5171_v11  ;;  %v2722_v11 = vadd.f32 %v4159_v3, %v5175_v55 }
 0x986   :  { %2446 = vadd.xlane.f32.xlu1 %v2445_v24  ;;  %v2724_v24 = vadd.f32 %v4159_v3, %v6932_v39 }
 0x987   :  { %v2418_v23 = vpop.permute.xlu0 %2417  ;;  %3890 = vtanh.f32 %v2720_v42 }
 0x988   :  { %v2448_v14 = vsel %vm575_vm1, %v2418_v23, 0.0  ;;  %3892 = vtanh.f32 %v2721_v13 }
 0x989   :  { %2437 = vadd.xlane.f32.xlu0 %v2436_v2  ;;  %v5847_v31 = vpop.eup %3886  ;;  %3894 = vtanh.f32 %v2718_v51 }
 0x98a   :  { %3896 = vtanh.f32 %v2723_v61  ;;  %v2789_v9 = vmul.f32 %v5847_v31, %v5847_v31 }
 0x98b   :  { %3898 = vtanh.f32 %v2722_v11 }
 0x98c   :  { %3900 = vtanh.f32 %v2724_v24 }
 0x98d   :  { %2443 = vadd.xlane.f32.xlu0 %v2442_v16  ;;  %v5853_v17 = vpop.eup %3888 }
 0x991   :  { %2449 = vadd.xlane.f32.xlu0 %v2448_v14  ;;  %v5858_v27 = vpop.eup %3890 }
 0x992   :  { %v5863_v6 = vpop.eup %3892  ;;  %v2792_v18 = vmul.f32 %v5858_v27, %v5858_v27 }
 0x993   :  { %v5867_v25 = vpop.eup %3894 }
 0x994   :  { %v5869_v2 = vpop.eup %3896 }
 0x995   :  { %v5875_v55 = vpop.eup %3898 }
 0x996   :  { %v5879_v3 = vpop.eup %3900 }
 0x997   :  { %2741 = vrot.lane.b32.xlu1 %v5847_v31, %s4162_s23 }
 0x99b   :  { %2745 = vrot.lane.b32.xlu1 %v5853_v17, %s4162_s23 }
 0x99f   :  { %2747 = vrot.lane.b32.xlu1 %v5858_v27, %s4162_s23 }
 0x9a3   :  { %2749 = vrot.lane.b32.xlu1 %v5863_v6, %s4162_s23 }
 0x9a7   :  { %2753 = vrot.lane.b32.xlu1 %v5869_v2, %s4162_s23  ;;  %2743 = vrot.lane.b32.xlu0 %v5867_v25, %s4162_s23 }
 0x9ab   :  { %2751 = vrot.lane.b32.xlu0 %v5875_v55, %s4162_s23 }
 0x9af   :  { %2755 = vrot.lane.b32.xlu0 %v5879_v3, %s4162_s23 }
 0xa03   :  { %v5883_v60 = vpop.xlane.xlu1 %2428 }
 0xa04   :  { %6933 = vst [vmem:[#allocation53_spill] sm:$0xff] %v5883_v60 }
 0xa0e   :  { %v5885_v16 = vpop.xlane.xlu0 %2431 }
 0xa0f   :  { %6934 = vst [vmem:[#allocation166_spill] sm:$0xff] %v5885_v16  ;;  %v5887_v23 = vpop.xlane.xlu1 %2440 }
 0xa10   :  { %6935 = vst [vmem:[#allocation167_spill] sm:$0xff] %v5887_v23 }
 0xa12   :  { %v5889_v42 = vpop.xlane.xlu0 %2434 }
 0xa13   :  { %6936 = vst [vmem:[#allocation168_spill] sm:$0xff] %v5889_v42  ;;  %v5891_v14 = vpop.xlane.xlu1 %2446 }
 0xa14   :  { %6937 = vst [vmem:[#allocation169_spill] sm:$0xff] %v5891_v14 }
 0xa16   :  { %v5893_v13 = vpop.xlane.xlu0 %2437 }
 0xa17   :  { %6938 = vst [vmem:[#allocation170_spill] sm:$0xff] %v5893_v13  ;;  %v2742_v51 = vpop.permute.xlu1 %2741 }
 0xa18   :  { %v2757_v61 = vadd.f32 %v5847_v31, %v2742_v51 }
 0xa1a   :  { %2765 = vrot.lane.b32.xlu1 %v2757_v61, %s4161_s22  ;;  %v5897_v11 = vpop.xlane.xlu0 %2443 }
 0xa1b   :  { %6939 = vst [vmem:[#allocation171_spill] sm:$0xff] %v5897_v11  ;;  %v2746_v39 = vpop.permute.xlu1 %2745 }
 0xa1c   :  { %v2759_v24 = vadd.f32 %v5853_v17, %v2746_v39 }
 0xa1e   :  { %2769 = vrot.lane.b32.xlu1 %v2759_v24, %s4161_s22  ;;  %v5901_v16 = vpop.xlane.xlu0 %2449 }
 0xa1f   :  { %6940 = vst [vmem:[#allocation172_spill] sm:$0xff] %v5901_v16  ;;  %v2748_v23 = vpop.permute.xlu1 %2747 }
 0xa20   :  { %v2760_v11 = vadd.f32 %v5858_v27, %v2748_v23  ;;  %v2793_v23 = vmul.f32 %v5863_v6, %v5863_v6 }
 0xa22   :  { %v2744_v42 = vpop.permute.xlu0 %2743 }
 0xa23   :  { %v2758_v14 = vadd.f32 %v5867_v25, %v2744_v42  ;;  %v2750_v60 = vpop.permute.xlu1 %2749 }
 0xa24   :  { %v2761_v13 = vadd.f32 %v5863_v6, %v2750_v60 }
 0xa25   :  { %2767 = vrot.lane.b32.xlu0 %v2758_v14, %s4161_s22 }
 0xa26   :  { %2773 = vrot.lane.b32.xlu1 %v2761_v13, %s4161_s22  ;;  %v2752_v51 = vpop.permute.xlu0 %2751 }
 0xa27   :  { %v2754_v52 = vpop.permute.xlu1 %2753  ;;  %v2762_v16 = vadd.f32 %v5875_v55, %v2752_v51  ;;  %v2791_v51 = vmul.f32 %v5853_v17, %v5853_v17 }
 0xa28   :  { %v2763_v39 = vadd.f32 %v5869_v2, %v2754_v52  ;;  %v2790_v52 = vmul.f32 %v5867_v25, %v5867_v25 }
 0xa29   :  { %2771 = vrot.lane.b32.xlu0 %v2760_v11, %s4161_s22 }
 0xa2a   :  { %2777 = vrot.lane.b32.xlu1 %v2763_v39, %s4161_s22  ;;  %v2756_v42 = vpop.permute.xlu0 %2755 }
 0xa2b   :  { %v2764_v60 = vadd.f32 %v5879_v3, %v2756_v42  ;;  %v2795_v42 = vmul.f32 %v5869_v2, %v5869_v2 }
 0xa2d   :  { %2775 = vrot.lane.b32.xlu0 %v2762_v16, %s4161_s22 }
 0xa31   :  { %2779 = vrot.lane.b32.xlu0 %v2764_v60, %s4161_s22 }
 0xa4e   :  { %2797 = vadd.xlane.f32.xlu1 %v2789_v9  ;;  %v2794_v9 = vmul.f32 %v5875_v55, %v5875_v55 }
 0xa50   :  { %2799 = vadd.xlane.f32.xlu0 %v2790_v52  ;;  %v2796_v52 = vmul.f32 %v5879_v3, %v5879_v3 }
 0xa52   :  { %2805 = vadd.xlane.f32.xlu1 %v2793_v23 }
 0xa54   :  { %2801 = vadd.xlane.f32.xlu0 %v2791_v51 }
 0xa56   :  { %2809 = vadd.xlane.f32.xlu1 %v2795_v42 }
 0xa58   :  { %2803 = vadd.xlane.f32.xlu0 %v2792_v18 }
 0xa5c   :  { %2807 = vadd.xlane.f32.xlu0 %v2794_v9 }
 0xa60   :  { %2811 = vadd.xlane.f32.xlu0 %v2796_v52 }
 0xa8c   :  { %v2766_v23 = vpop.permute.xlu1 %2765 }
 0xa8d   :  { %v2781_v28 = vadd.f32 %v2766_v23, %v2757_v61  ;;  %v5958_v23 = vadd.f32 %v5863_v6, %v5063_v20 }
 0xa8f   :  { %v2821_v58 = vmul.f32 %v2781_v28, %v2781_v28 }
 0xa90   :  { %v2770_v51 = vpop.permute.xlu1 %2769 }
 0xa91   :  { %v2783_v50 = vadd.f32 %v2770_v51, %v2759_v24  ;;  %v2829_v34 = vsel %vm575_vm1, %v2821_v58, 0.0  ;;  %v5964_v51 = vadd.f32 %v5858_v27, %v5052_v46 }
 0xa92   :  { %2830 = vadd.xlane.f32.xlu1 %v2829_v34  ;;  %v5937_v34 = vadd.f32 %v5847_v31, %v5033_v26  ;;  %v5947_v26 = vadd.f32 %v5853_v17, %v5048_v7 }
 0xa93   :  { %v2823_v42 = vmul.f32 %v2783_v50, %v2783_v50 }
 0xa95   :  { %v2835_v35 = vsel %vm575_vm1, %v2823_v42, 0.0  ;;  %v5970_v42 = vadd.f32 %v5869_v2, %v5077_v22  ;;  %v5984_v2 = vadd.f32 %v5879_v3, %v5081_v30  ;;  %v2943_v30 = vmul.f32 %v5947_v26, %v4773_v49 }
 0xa96   :  { %2836 = vadd.xlane.f32.xlu1 %v2835_v35  ;;  %v2944_v3 = vmul.f32 %v5964_v51, %v4773_v49 }
 0xa97   :  { %v2768_v18 = vpop.permute.xlu0 %2767 }
 0xa98   :  { %v2782_v32 = vadd.f32 %v2768_v18, %v2758_v14  ;;  %v2774_v45 = vpop.permute.xlu1 %2773  ;;  %v5976_v18 = vadd.f32 %v5875_v55, %v5067_v21 }
 0xa99   :  { %v2785_v9 = vadd.f32 %v2774_v45, %v2761_v13 }
 0xa9a   :  { %v2822_v33 = vmul.f32 %v2782_v32, %v2782_v32 }
 0xa9b   :  { %v2825_v10 = vmul.f32 %v2785_v9, %v2785_v9  ;;  %v2772_v12 = vpop.permute.xlu0 %2771 }
 0xa9c   :  { %v2784_v52 = vadd.f32 %v2772_v12, %v2760_v11  ;;  %v2778_v1 = vpop.permute.xlu1 %2777  ;;  %v2832_v28 = vsel %vm575_vm1, %v2822_v33, 0.0  ;;  %v5952_v11 = vadd.f32 %v5867_v25, %v5037_v8 }
 0xa9d   :  { %v2787_v61 = vadd.f32 %v2778_v1, %v2763_v39  ;;  %2833 = vadd.xlane.f32.xlu0 %v2832_v28  ;;  %v2841_v58 = vsel %vm575_vm1, %v2825_v10, 0.0  ;;  %v4160_v1 = vld [vmem:[%s6706_s5] ss:$0 sm:$0xff] }
 0xa9e   :  { %v2824_v35 = vmul.f32 %v2784_v52, %v2784_v52  ;;  %2842 = vadd.xlane.f32.xlu1 %v2841_v58  ;;  %v2877_v10 = vmul.f32 %v4160_v1, %v5937_v34  ;;  %v2879_v39 = vmul.f32 %v4160_v1, %v5947_v26  ;;  %v2881_v25 = vmul.f32 %v4160_v1, %v5958_v23 }
 0xa9f   :  { %v2827_v50 = vmul.f32 %v2787_v61, %v2787_v61  ;;  %v2776_v14 = vpop.permute.xlu0 %2775  ;;  %v2880_v6 = vmul.f32 %v4160_v1, %v5964_v51  ;;  %v2883_v27 = vmul.f32 %v4160_v1, %v5970_v42  ;;  %v2882_v22 = vmul.f32 %v4160_v1, %v5976_v18 }
 0xaa0   :  { %v2786_v45 = vadd.f32 %v2776_v14, %v2762_v16  ;;  %v2838_v32 = vsel %vm575_vm1, %v2824_v35, 0.0  ;;  %v2885_v24 = vsel %vm575_vm1, %v2877_v10, 0.0  ;;  %v2891_v8 = vsel %vm575_vm1, %v2879_v39, 0.0  ;;  %v6944_v10 = vld [vmem:[#allocation36_spill] sm:$0xff] }
 0xaa1   :  { %2839 = vadd.xlane.f32.xlu0 %v2838_v32  ;;  %v2847_v12 = vsel %vm575_vm1, %v2827_v50, 0.0  ;;  %v2897_v46 = vsel %vm575_vm1, %v2881_v25, 0.0  ;;  %v2894_v9 = vsel %vm575_vm1, %v2880_v6, 0.0  ;;  %v2903_v52 = vsel %vm575_vm1, %v2883_v27, 0.0  ;;  %v6942_v32 = vld [vmem:[#allocation38_spill] sm:$0xff]  ;;  %v6950_v25 = vld [vmem:[#allocation43_spill] sm:$0xff] }
 0xaa2   :  { %v2826_v33 = vmul.f32 %v2786_v45, %v2786_v45  ;;  %2848 = vadd.xlane.f32.xlu1 %v2847_v12  ;;  %v2900_v21 = vsel %vm575_vm1, %v2882_v22, 0.0  ;;  %v2884_v55 = vmul.f32 %v4160_v1, %v5984_v2  ;;  %v2941_v61 = vmul.f32 %v5937_v34, %v4773_v49  ;;  %v6941_v45 = vld [vmem:[#allocation3_spill] sm:$0xff]  ;;  %v6951_v6 = vld [vmem:[#allocation6_spill] sm:$0xff]  ;;  %v6953_v22 = vld [vmem:[#allocation9_spill] sm:$0xff] }
 0xaa3   :  { %v2780_v31 = vpop.permute.xlu0 %2779  ;;  %v2945_v58 = vmul.f32 %v5958_v23, %v4773_v49  ;;  %v2942_v35 = vmul.f32 %v5952_v11, %v4773_v49  ;;  %v2947_v50 = vmul.f32 %v5970_v42, %v4773_v49  ;;  %v2946_v14 = vmul.f32 %v5976_v18, %v4773_v49 }
 0xaa4   :  { %v2788_v13 = vadd.f32 %v2780_v31, %v2764_v60  ;;  %v2844_v16 = vsel %vm575_vm1, %v2826_v33, 0.0  ;;  %v2878_v60 = vmul.f32 %v4160_v1, %v5952_v11  ;;  %v2906_v28 = vsel %vm575_vm1, %v2884_v55, 0.0  ;;  %v6943_v1 = vld [vmem:[#allocation5_spill] sm:$0xff]  ;;  %v6955_v55 = vld [vmem:[#allocation10_spill] sm:$0xff] }
 0xaa5   :  { %2845 = vadd.xlane.f32.xlu0 %v2844_v16  ;;  %v662_v12 = vadd.f32 %v6942_v32, %v6941_v45  ;;  %v663_v33 = vadd.f32 %v6944_v10, %v6943_v1  ;;  %v3037_v31 = vmul.f32 %v5937_v34, %v4766_v59  ;;  %v6945_v16 = vld [vmem:[#allocation2_spill] sm:$0xff]  ;;  %v3041_v32 = vmul.f32 %v5958_v23, %v4766_v59  ;;  %v6961_v10 = vld [vmem:[#allocation12_spill] sm:$0xff] }
 0xaa6   :  { %v2828_v7 = vmul.f32 %v2788_v13, %v2788_v13  ;;  %2886 = vadd.xlane.f32.xlu1 %v2885_v24  ;;  %v2888_v20 = vsel %vm575_vm1, %v2878_v60, 0.0  ;;  %v2948_v13 = vmul.f32 %v5984_v2, %v4773_v49  ;;  %v6946_v24 = vld [vmem:[#allocation41_spill] sm:$0xff]  ;;  %v3039_v49 = vmul.f32 %v5947_v26, %v4766_v59 }
 0xaa7   :  { %v664_v39 = vadd.f32 %v6946_v24, %v6945_v16  ;;  %3902 = vtanh.f32 %v662_v12  ;;  %v3040_v12 = vmul.f32 %v5964_v51, %v4766_v59  ;;  %v6964_v24 = vld [vmem:[#allocation54_spill] sm:$0xff] }
 0xaa8   :  { %v2850_v17 = vsel %vm575_vm1, %v2828_v7, 0.0  ;;  %v6947_v7 = vld [vmem:[#allocation4_spill] sm:$0xff]  ;;  %3904 = vtanh.f32 %v663_v33 }
 0xaa9   :  { %2851 = vadd.xlane.f32.xlu0 %v2850_v17  ;;  %v6948_v17 = vld [vmem:[#allocation40_spill] sm:$0xff]  ;;  %3906 = vtanh.f32 %v664_v39 }
 0xaaa   :  { %2892 = vadd.xlane.f32.xlu1 %v2891_v8  ;;  %v665_v60 = vadd.f32 %v6948_v17, %v6947_v7  ;;  %v6949_v8 = vld [vmem:[#allocation7_spill] sm:$0xff]  ;;  %v6962_v33 = vld [vmem:[#allocation52_spill] sm:$0xff]  ;;  %v6965_v17 = vld [vmem:[#allocation13_spill] sm:$0xff] }
 0xaac   :  { %3908 = vtanh.f32 %v665_v60  ;;  %v6966_v60 = vld [vmem:[#allocation55_spill] sm:$0xff] }
 0xaad   :  { %2889 = vadd.xlane.f32.xlu0 %v2888_v20  ;;  %v666_v20 = vadd.f32 %v6950_v25, %v6949_v8  ;;  %v763_v25 = vadd.f32 %v6966_v60, %v6965_v17  ;;  %v6975_v60 = vld [vmem:[#allocation11_spill] sm:$0xff] }
 0xaae   :  { %2898 = vadd.xlane.f32.xlu1 %v2897_v46  ;;  %v6952_v46 = vld [vmem:[#allocation46_spill] sm:$0xff] }
 0xaaf   :  { %v667_v27 = vadd.f32 %v6952_v46, %v6951_v6  ;;  %3910 = vtanh.f32 %v666_v20  ;;  %v6967_v20 = vld [vmem:[#allocation21_spill] sm:$0xff]  ;;  %v6968_v46 = vld [vmem:[#allocation56_spill] sm:$0xff] }
 0xab1   :  { %2895 = vadd.xlane.f32.xlu0 %v2894_v9  ;;  %v3038_v9 = vmul.f32 %v5952_v11, %v4766_v59  ;;  %3912 = vtanh.f32 %v667_v27  ;;  %v862_v27 = vadd.f32 %v6968_v46, %v6967_v20  ;;  %v6976_v46 = vld [vmem:[#allocation71_spill] sm:$0xff] }
 0xab2   :  { %2904 = vadd.xlane.f32.xlu1 %v2903_v52  ;;  %v6954_v52 = vld [vmem:[#allocation49_spill] sm:$0xff] }
 0xab5   :  { %2901 = vadd.xlane.f32.xlu0 %v2900_v21  ;;  %v668_v21 = vadd.f32 %v6954_v52, %v6953_v22  ;;  %v6061_v52 = vpop.eup %3902 }
 0xab7   :  { %3914 = vtanh.f32 %v668_v21  ;;  %v6969_v21 = vld [vmem:[#allocation18_spill] sm:$0xff] }
 0xab9   :  { %2907 = vadd.xlane.f32.xlu0 %v2906_v28  ;;  %v6956_v28 = vld [vmem:[#allocation50_spill] sm:$0xff] }
 0xac3   :  { %2957 = vrot.lane.b32.xlu1 %v2941_v61, %s4163_s24  ;;  %v762_v61 = vadd.f32 %v6956_v28, %v6955_v55  ;;  %v6970_v28 = vld [vmem:[#allocation66_spill] sm:$0xff] }
 0xac5   :  { %3916 = vtanh.f32 %v762_v61  ;;  %v861_v61 = vadd.f32 %v6970_v28, %v6969_v21  ;;  %v761_v28 = vadd.f32 %v6976_v46, %v6975_v60  ;;  %v6981_v46 = vld [vmem:[#allocation25_spill] sm:$0xff] }
 0xac7   :  { %2961 = vrot.lane.b32.xlu1 %v2943_v30, %s4163_s24  ;;  %v6957_v30 = vld [vmem:[#allocation19_spill] sm:$0xff] }
 0xacb   :  { %2963 = vrot.lane.b32.xlu1 %v2944_v3, %s4163_s24  ;;  %v6958_v3 = vld [vmem:[#allocation51_spill] sm:$0xff] }
 0xacf   :  { %2965 = vrot.lane.b32.xlu1 %v2945_v58, %s4163_s24  ;;  %2959 = vrot.lane.b32.xlu0 %v2942_v35, %s4163_s24  ;;  %v860_v58 = vadd.f32 %v6958_v3, %v6957_v30  ;;  %v6959_v35 = vld [vmem:[#allocation8_spill] sm:$0xff]  ;;  %v6065_v3 = vpop.eup %3904 }
 0xad1   :  { %3918 = vtanh.f32 %v860_v58  ;;  %v6971_v58 = vld [vmem:[#allocation14_spill] sm:$0xff] }
 0xad3   :  { %2969 = vrot.lane.b32.xlu1 %v2947_v50, %s4163_s24  ;;  %2967 = vrot.lane.b32.xlu0 %v2946_v14, %s4163_s24  ;;  %v6960_v50 = vld [vmem:[#allocation48_spill] sm:$0xff] }
 0xad4   :  { %v669_v14 = vadd.f32 %v6960_v50, %v6959_v35  ;;  %v6972_v50 = vld [vmem:[#allocation57_spill] sm:$0xff] }
 0xad6   :  { %3920 = vtanh.f32 %v669_v14  ;;  %v766_v14 = vadd.f32 %v6972_v50, %v6971_v58 }
 0xad7   :  { %3053 = vrot.lane.b32.xlu1 %v3037_v31, %s4161_s22  ;;  %2971 = vrot.lane.b32.xlu0 %v2948_v13, %s4163_s24  ;;  %v764_v31 = vadd.f32 %v6962_v33, %v6961_v10  ;;  %v6963_v13 = vld [vmem:[#allocation20_spill] sm:$0xff]  ;;  %v6974_v33 = vld [vmem:[#allocation58_spill] sm:$0xff] }
 0xad8   :  { %v863_v39 = vadd.f32 %v6964_v24, %v6963_v13 }
 0xad9   :  { %3922 = vtanh.f32 %v764_v31 }
 0xada   :  { %3924 = vtanh.f32 %v863_v39  ;;  %v3133_v39 = vmul.f32 %v5937_v34, %v4781_v40 }
 0xadb   :  { %3057 = vrot.lane.b32.xlu1 %v3039_v49, %s4161_s22  ;;  %3055 = vrot.lane.b32.xlu0 %v3038_v9, %s4161_s22  ;;  %v3043_v49 = vmul.f32 %v5970_v42, %v4766_v59  ;;  %v3042_v9 = vmul.f32 %v5976_v18, %v4766_v59  ;;  %3926 = vtanh.f32 %v763_v25  ;;  %v6978_v25 = vld [vmem:[#allocation59_spill] sm:$0xff] }
 0xadc   :  { %3928 = vtanh.f32 %v862_v27  ;;  %v6980_v27 = vld [vmem:[#allocation60_spill] sm:$0xff] }
 0xadd   :  { %3930 = vtanh.f32 %v861_v61  ;;  %v6983_v61 = vld [vmem:[#allocation29_spill] sm:$0xff] }
 0xade   :  { %3932 = vtanh.f32 %v766_v14  ;;  %v3135_v14 = vmul.f32 %v5947_v26, %v4781_v40  ;;  %v6989_v26 = vld [vmem:[#allocation32_spill] sm:$0xff] }
 0xadf   :  { %3061 = vrot.lane.b32.xlu1 %v3041_v32, %s4161_s22  ;;  %3059 = vrot.lane.b32.xlu0 %v3040_v12, %s4161_s22  ;;  %v6071_v32 = vpop.eup %3906  ;;  %v6973_v12 = vld [vmem:[#allocation23_spill] sm:$0xff] }
 0xae0   :  { %v864_v24 = vadd.f32 %v6974_v33, %v6973_v12  ;;  %v6075_v31 = vpop.eup %3908  ;;  %v6979_v33 = vld [vmem:[#allocation26_spill] sm:$0xff] }
 0xae1   :  { %v6083_v50 = vpop.eup %3910  ;;  %v960_v63 = vadd.f32 %v6980_v27, %v6979_v33  ;;  %v3134_v27 = vmul.f32 %v5952_v11, %v4781_v40  ;;  %v6990_v11 = vld [vmem:[#allocation65_spill] sm:$0xff]  ;;  %v6992_v33 = vld [vmem:[#allocation74_spill] sm:$0xff] }
 0xae2   :  { %v6087_v57 = vpop.eup %3912  ;;  %3934 = vtanh.f32 %v864_v24 }
 0xae3   :  { %3065 = vrot.lane.b32.xlu1 %v3043_v49, %s4161_s22  ;;  %3063 = vrot.lane.b32.xlu0 %v3042_v9, %s4161_s22  ;;  %v3044_v49 = vmul.f32 %v5984_v2, %v4766_v59  ;;  %v6977_v9 = vld [vmem:[#allocation16_spill] sm:$0xff]  ;;  %v3915_v34 = vpop.eup %3914  ;;  %v6982_v59 = vld [vmem:[#allocation61_spill] sm:$0xff]  ;;  %3936 = vtanh.f32 %v761_v28 }
 0xae4   :  { %v768_v37 = vadd.f32 %v6978_v25, %v6977_v9  ;;  %v866_v41 = vadd.f32 %v6982_v59, %v6981_v46  ;;  %v3917_v15 = vpop.eup %3916  ;;  %v961_v25 = vadd.f32 %v6984_v56, %v6983_v61  ;;  %v6987_v59 = vld [vmem:[#allocation30_spill] sm:$0xff]  ;;  %v6988_v28 = vld [vmem:[#allocation64_spill] sm:$0xff]  ;;  %v966_v61 = vadd.f32 %v6990_v11, %v6989_v26 }
 0xae5   :  { %v6101_v62 = vpop.eup %3918  ;;  %v964_v53 = vadd.f32 %v6988_v28, %v6987_v59  ;;  %v3136_v28 = vmul.f32 %v5964_v51, %v4781_v40  ;;  %v6995_v11 = vld [vmem:[#allocation76_spill] sm:$0xff] }
 0xae6   :  { %3938 = vtanh.f32 %v768_v37  ;;  %v6105_v19 = vpop.eup %3920  ;;  %v6991_v37 = vld [vmem:[#allocation22_spill] sm:$0xff] }
 0xae7   :  { %3149 = vrot.lane.b32.xlu1 %v3133_v39, %s4162_s23  ;;  %3067 = vrot.lane.b32.xlu0 %v3044_v49, %s4161_s22  ;;  %v6985_v39 = vld [vmem:[#allocation28_spill] sm:$0xff]  ;;  %v6986_v49 = vld [vmem:[#allocation63_spill] sm:$0xff]  ;;  %3940 = vtanh.f32 %v960_v63  ;;  %v3923_v56 = vpop.eup %3922  ;;  %v3137_v63 = vmul.f32 %v5958_v23, %v4781_v40 }
 0xae8   :  { %v962_v24 = vadd.f32 %v6986_v49, %v6985_v39  ;;  %3942 = vtanh.f32 %v866_v41  ;;  %v3925_v43 = vpop.eup %3924  ;;  %v865_v49 = vadd.f32 %v6992_v33, %v6991_v37  ;;  %v6994_v39 = vld [vmem:[#allocation15_spill] sm:$0xff]  ;;  %v6996_v23 = vld [vmem:[#allocation24_spill] sm:$0xff] }
 0xae9   :  { %3944 = vtanh.f32 %v961_v25  ;;  %v3927_v59 = vpop.eup %3926  ;;  %v765_v26 = vadd.f32 %v6995_v11, %v6994_v39  ;;  %v6997_v25 = vld [vmem:[#allocation78_spill] sm:$0xff] }
 0xaea   :  { %3946 = vtanh.f32 %v962_v24  ;;  %v3929_v41 = vpop.eup %3928  ;;  %v867_v29 = vadd.f32 %v6997_v25, %v6996_v23  ;;  %v6998_v24 = vld [vmem:[#allocation17_spill] sm:$0xff]  ;;  %v778_v23 = vmul.f32 0.25, %v3917_v15  ;;  %v6148_v15 = vmul.f32 0.25, %v6083_v50 }
 0xaeb   :  { %3153 = vrot.lane.b32.xlu1 %v3135_v14, %s4162_s23  ;;  %3151 = vrot.lane.b32.xlu0 %v3134_v27, %s4162_s23  ;;  %v6993_v14 = vld [vmem:[#allocation68_spill] sm:$0xff]  ;;  %3948 = vtanh.f32 %v964_v53  ;;  %v3931_v33 = vpop.eup %3930  ;;  %v767_v48 = vadd.f32 %v6999_v54, %v6998_v24  ;;  %v3139_v53 = vmul.f32 %v5970_v42, %v4781_v40  ;;  %v7002_v54 = vld [vmem:[#allocation31_spill] sm:$0xff] }
 0xaec   :  { %v1418_v27 = vadd.f32 %v6993_v14, %v6943_v1  ;;  %3950 = vtanh.f32 %v966_v61  ;;  %v3933_v51 = vpop.eup %3932  ;;  %v3138_v14 = vmul.f32 %v5976_v18, %v4781_v40  ;;  %v7000_v61 = vld [vmem:[#allocation27_spill] sm:$0xff]  ;;  %v963_v37 = vadd.f32 %v7003_v5, %v7002_v54  ;;  %v7006_v5 = vld [vmem:[#allocation73_spill] sm:$0xff] }
 0xaed   :  { %3952 = vtanh.f32 %v865_v49  ;;  %v6133_v11 = vpop.eup %3934  ;;  %v679_v49 = vmul.f32 0.25, %v6065_v3  ;;  %v680_v18 = vmul.f32 0.25, %v6071_v32  ;;  %v1420_v3 = vadd.f32 %v7006_v5, %v6947_v7 }
 0xaee   :  { %3954 = vtanh.f32 %v1418_v27  ;;  %v3937_v25 = vpop.eup %3936  ;;  %v7004_v27 = vld [vmem:[#allocation33_spill] sm:$0xff]  ;;  %v683_v32 = vmul.f32 0.25, %v6087_v57  ;;  %v779_v7 = vmul.f32 0.25, %v3927_v59 }
 0xaef   :  { %3157 = vrot.lane.b32.xlu1 %v3137_v63, %s4162_s23  ;;  %3155 = vrot.lane.b32.xlu0 %v3136_v28, %s4162_s23  ;;  %v678_v63 = vmul.f32 0.25, %v6061_v52  ;;  %v7001_v28 = vld [vmem:[#allocation83_spill] sm:$0xff]  ;;  %3956 = vtanh.f32 %v765_v26  ;;  %v681_v52 = vmul.f32 0.25, %v6075_v31  ;;  %v3140_v26 = vmul.f32 %v5984_v2, %v4781_v40  ;;  %v7009_v57 = vld [vmem:[#allocation89_spill] sm:$0xff] }
 0xaf0   :  { %v959_v1 = vadd.f32 %v7001_v28, %v7000_v61  ;;  %v3939_v42 = vpop.eup %3938  ;;  %3958 = vtanh.f32 %v867_v29  ;;  %v7005_v28 = vld [vmem:[#allocation87_spill] sm:$0xff]  ;;  %v6157_v31 = vmul.f32 0.25, %v3915_v34  ;;  %v7007_v29 = vld [vmem:[#allocation84_spill] sm:$0xff]  ;;  %v786_v50 = vadd.f32 %v778_v23, %v679_v49 }
 0xaf1   :  { %v965_v61 = vadd.f32 %v7005_v28, %v7004_v27  ;;  %v3941_v36 = vpop.eup %3940  ;;  %3960 = vtanh.f32 %v767_v48  ;;  %v780_v27 = vmul.f32 0.25, %v3923_v56  ;;  %v7008_v48 = vld [vmem:[#allocation85_spill] sm:$0xff]  ;;  %v876_v2 = vmul.f32 0.25, %v6101_v62  ;;  %v7010_v56 = vld [vmem:[#allocation91_spill] sm:$0xff]  ;;  %v7011_v62 = vld [vmem:[#allocation94_spill] sm:$0xff] }
 0xaf2   :  { %3962 = vtanh.f32 %v959_v1  ;;  %v1424_v5 = vadd.f32 %v7008_v48, %v6959_v35  ;;  %v1417_v1 = vadd.f32 %v7009_v57, %v6941_v45  ;;  %v685_v49 = vmul.f32 0.25, %v6105_v19 }
 0xaf3   :  { %3161 = vrot.lane.b32.xlu1 %v3139_v53, %s4162_s23  ;;  %3159 = vrot.lane.b32.xlu0 %v3138_v14, %s4162_s23  ;;  %v6154_v53 = vpop.eup %3942  ;;  %v1422_v14 = vadd.f32 %v7007_v29, %v6951_v6  ;;  %3964 = vtanh.f32 %v963_v37  ;;  %v879_v29 = vmul.f32 0.25, %v3925_v43  ;;  %v777_v6 = vmul.f32 0.25, %v3937_v25  ;;  %v7012_v43 = vld [vmem:[#allocation98_spill] sm:$0xff] }
 0xaf4   :  { %v3945_v28 = vpop.eup %3944  ;;  %3966 = vtanh.f32 %v965_v61  ;;  %v1419_v37 = vadd.f32 %v7010_v56, %v6945_v16  ;;  %v1421_v59 = vadd.f32 %v7011_v62, %v6949_v8  ;;  %v788_v48 = vadd.f32 %v780_v27, %v681_v52  ;;  %v7013_v56 = vld [vmem:[#allocation99_spill] sm:$0xff]  ;;  %v7014_v62 = vld [vmem:[#allocation100_spill] sm:$0xff] }
 0xaf5   :  { %v3947_v40 = vpop.eup %3946  ;;  %3968 = vtanh.f32 %v1420_v3  ;;  %v877_v57 = vmul.f32 0.25, %v3931_v33  ;;  %v1423_v25 = vadd.f32 %v7012_v43, %v6953_v22  ;;  %v787_v35 = vadd.f32 %v779_v7, %v680_v18 }
 0xaf6   :  { %v6167_v34 = vpop.eup %3948  ;;  %3970 = vtanh.f32 %v1422_v14  ;;  %v782_v45 = vmul.f32 0.25, %v3933_v51  ;;  %v1514_v16 = vadd.f32 %v7013_v56, %v6955_v55  ;;  %v785_v14 = vadd.f32 %v777_v6, %v678_v63 }
 0xaf7   :  { %3163 = vrot.lane.b32.xlu0 %v3140_v26, %s4162_s23  ;;  %v6171_v23 = vpop.eup %3950  ;;  %v878_v26 = vmul.f32 0.25, %v3929_v41  ;;  %3972 = vtanh.f32 %v1424_v5  ;;  %v887_v41 = vadd.f32 %v879_v29, %v788_v48  ;;  %v1513_v8 = vadd.f32 %v7014_v62, %v6975_v60  ;;  %v7015_v5 = vld [vmem:[#allocation101_spill] sm:$0xff] }
 0xaf8   :  { %v3953_v61 = vpop.eup %3952  ;;  %3974 = vtanh.f32 %v1417_v1  ;;  %v784_v27 = vmul.f32 0.25, %v3939_v42  ;;  %v1516_v43 = vadd.f32 %v7015_v5, %v6961_v10  ;;  %v885_v51 = vadd.f32 %v877_v57, %v786_v50  ;;  %v7016_v1 = vld [vmem:[#allocation102_spill] sm:$0xff]  ;;  %v7018_v50 = vld [vmem:[#allocation104_spill] sm:$0xff] }
 0xaf9   :  { %v3955_v3 = vpop.eup %3954  ;;  %3976 = vtanh.f32 %v1419_v37  ;;  %v886_v33 = vadd.f32 %v878_v26, %v787_v35  ;;  %v976_v18 = vmul.f32 0.25, %v3941_v36  ;;  %v1517_v56 = vadd.f32 %v7016_v1, %v6994_v39  ;;  %v7017_v37 = vld [vmem:[#allocation103_spill] sm:$0xff] }
 0xafa   :  { %v3957_v19 = vpop.eup %3956  ;;  %3978 = vtanh.f32 %v1421_v59  ;;  %v790_v6 = vadd.f32 %v782_v45, %v683_v32  ;;  %v977_v63 = vmul.f32 0.25, %v3945_v28  ;;  %v1515_v48 = vadd.f32 %v7017_v37, %v6965_v17  ;;  %v7019_v45 = vld [vmem:[#allocation105_spill] sm:$0xff] }
 0xafb   :  { %v3959_v52 = vpop.eup %3958  ;;  %3980 = vtanh.f32 %v1423_v25  ;;  %v880_v42 = vmul.f32 0.25, %v6133_v11  ;;  %v6189_v26 = vadd.f32 %v876_v2, %v785_v14  ;;  %v1518_v36 = vadd.f32 %v7018_v50, %v6971_v58  ;;  %v7020_v11 = vld [vmem:[#allocation106_spill] sm:$0xff] }
 0xafc   :  { %v3961_v7 = vpop.eup %3960  ;;  %3982 = vtanh.f32 %v1514_v16  ;;  %v792_v57 = vadd.f32 %v784_v27, %v685_v49  ;;  %v978_v25 = vmul.f32 0.25, %v3947_v40  ;;  %v1519_v32 = vadd.f32 %v7019_v45, %v6998_v24 }
 0xafd   :  { %v3963_v29 = vpop.eup %3962  ;;  %3984 = vtanh.f32 %v1513_v8  ;;  %v984_v28 = vadd.f32 %v976_v18, %v885_v51  ;;  %v882_v62 = vmul.f32 0.25, %v6154_v53  ;;  %v1520_v2 = vadd.f32 %v7020_v11, %v6977_v9 }
 0xafe   :  { %v3965_v35 = vpop.eup %3964  ;;  %3986 = vtanh.f32 %v1516_v43  ;;  %v6198_v8 = vadd.f32 %v977_v63, %v886_v33  ;;  %v881_v5 = vmul.f32 0.25, %v3953_v61  ;;  %v1609_v40 = vadd.f32 %v5496_v47, %v6957_v30 }
 0xaff   :  { %v3967_v59 = vpop.eup %3966  ;;  %3988 = vtanh.f32 %v1517_v56  ;;  %v781_v27 = vmul.f32 0.25, %v3957_v19  ;;  %v783_v43 = vmul.f32 0.25, %v3961_v7  ;;  %v1613_v51 = vadd.f32 %v5498_v38, %v6973_v12 }
 0xb00   :  { %v3969_v16 = vpop.eup %3968  ;;  %3990 = vtanh.f32 %v1515_v48  ;;  %v986_v18 = vadd.f32 %v978_v25, %v887_v41  ;;  %v883_v1 = vmul.f32 0.25, %v3959_v52  ;;  %v1610_v33 = vadd.f32 %v5500_v4, %v6969_v21 }
 0xb01   :  { %v3971_v14 = vpop.eup %3970  ;;  %3992 = vtanh.f32 %v1518_v36  ;;  %v980_v61 = vmul.f32 0.25, %v6167_v34  ;;  %v982_v63 = vmul.f32 0.25, %v6171_v23  ;;  %v1615_v47 = vadd.f32 %v5502_v44, %v6981_v46  ;;  %v7021_v34 = vld [vmem:[#allocation107_spill] sm:$0xff]  ;;  %v7022_v44 = vld [vmem:[#allocation22_spill] sm:$0xff] }
 0xb02   :  { %v3973_v49 = vpop.eup %3972  ;;  %3994 = vtanh.f32 %v1519_v32  ;;  %v889_v7 = vadd.f32 %v881_v5, %v790_v6  ;;  %v1434_v37 = vmul.f32 0.25, %v3955_v3  ;;  %v1611_v38 = vadd.f32 %v5504_v0, %v6967_v20  ;;  %v7023_v6 = vld [vmem:[#allocation108_spill] sm:$0xff] }
 0xb03   :  { %v3975_v53 = vpop.eup %3974  ;;  %3996 = vtanh.f32 %v1520_v2  ;;  %v789_v52 = vadd.f32 %v781_v27, %v6148_v15  ;;  %v791_v4 = vadd.f32 %v783_v43, %v6157_v31  ;;  %v1612_v23 = vadd.f32 %v7021_v34, %v6963_v13 }
 0xb04   :  { %v3977_v56 = vpop.eup %3976  ;;  %3998 = vtanh.f32 %v1609_v40  ;;  %v891_v50 = vadd.f32 %v883_v1, %v792_v57  ;;  %v975_v36 = vmul.f32 0.25, %v3963_v29  ;;  %v1614_v3 = vadd.f32 %v7023_v6, %v7022_v44  ;;  %v7024_v1 = vld [vmem:[#allocation24_spill] sm:$0xff] }
 0xb05   :  { %v3979_v19 = vpop.eup %3978  ;;  %4000 = vtanh.f32 %v1613_v51  ;;  %v979_v45 = vmul.f32 0.25, %v3965_v35  ;;  %v981_v32 = vmul.f32 0.25, %v3967_v59  ;;  %v1436_v0 = vmul.f32 0.25, %v3969_v16  ;;  %v7025_v35 = vld [vmem:[#allocation109_spill] sm:$0xff]  ;;  %v6221_v16 = vpop.xlane.xlu0 %2799  ;;  %v7030_v6 = vld [vmem:[#allocation120_spill] sm:$0xff] }
 0xb06   :  { %v3981_v41 = vpop.eup %3980  ;;  %4002 = vtanh.f32 %v1610_v33  ;;  %v1442_v15 = vadd.f32 %v1434_v37, %v984_v28  ;;  %v988_v2 = vadd.f32 %v980_v61, %v889_v7  ;;  %v1438_v31 = vmul.f32 0.25, %v3971_v14  ;;  %v7027_v7 = vld [vmem:[#allocation118_spill] sm:$0xff] }
 0xb07   :  { %v3983_v48 = vpop.eup %3982  ;;  %4004 = vtanh.f32 %v1615_v47  ;;  %v888_v40 = vadd.f32 %v880_v42, %v789_v52  ;;  %v890_v27 = vadd.f32 %v882_v62, %v791_v4  ;;  %v1440_v43 = vmul.f32 0.25, %v3973_v49  ;;  %v7026_v47 = vld [vmem:[#allocation27_spill] sm:$0xff]  ;;  %v6225_v62 = vpop.xlane.xlu1 %2797 }
 0xb08   :  { %v3985_v25 = vpop.eup %3984  ;;  %4006 = vtanh.f32 %v1611_v38  ;;  %v983_v57 = vadd.f32 %v975_v36, %v6189_v26  ;;  %v990_v51 = vadd.f32 %v982_v63, %v891_v50  ;;  %v1616_v59 = vadd.f32 %v7025_v35, %v7024_v1  ;;  %v7028_v63 = vld [vmem:[#allocation119_spill] sm:$0xff]  ;;  %v7029_v36 = vld [vmem:[#allocation26_spill] sm:$0xff] }
 0xb09   :  { %v3987_v11 = vpop.eup %3986  ;;  %4008 = vtanh.f32 %v1612_v23  ;;  %v987_v28 = vadd.f32 %v979_v45, %v888_v40  ;;  %v989_v61 = vadd.f32 %v981_v32, %v890_v27  ;;  %v1444_v14 = vadd.f32 %v1436_v0, %v986_v18  ;;  %v7031_v0 = vld [vmem:[#allocation33_spill] sm:$0xff]  ;;  %v7034_v35 = vld [vmem:[#allocation122_spill] sm:$0xff] }
 0xb0a   :  { %v3989_v5 = vpop.eup %3988  ;;  %4010 = vtanh.f32 %v1614_v3  ;;  %v1705_v42 = vadd.f32 %v7027_v7, %v7026_v47  ;;  %v1446_v37 = vadd.f32 %v1438_v31, %v988_v2  ;;  %v1433_v38 = vmul.f32 0.25, %v3975_v53  ;;  %v7032_v40 = vld [vmem:[#allocation121_spill] sm:$0xff] }
 0xb0b   :  { %v3991_v29 = vpop.eup %3990  ;;  %v1435_v26 = vmul.f32 0.25, %v3977_v56  ;;  %v1709_v52 = vadd.f32 %v7028_v63, %v7002_v54  ;;  %v1448_v34 = vadd.f32 %v1440_v43, %v990_v51  ;;  %v1437_v23 = vmul.f32 0.25, %v3979_v19  ;;  %v7033_v31 = vld [vmem:[#allocation29_spill] sm:$0xff]  ;;  %v7035_v51 = vld [vmem:[#allocation28_spill] sm:$0xff]  ;;  %v7036_v63 = vld [vmem:[#allocation123_spill] sm:$0xff]  ;;  %v6242_v1 = vpop.xlane.xlu1 %2805 }
 0xb0c   :  { %v3993_v33 = vpop.eup %3992  ;;  %v1439_v50 = vmul.f32 0.25, %v3981_v41  ;;  %v1706_v3 = vadd.f32 %v7030_v6, %v7029_v36  ;;  %v1530_v45 = vmul.f32 0.25, %v3983_v48  ;;  %v1529_v32 = vmul.f32 0.25, %v3985_v25  ;;  %v6238_v25 = vpop.xlane.xlu0 %2801 }
 0xb0d   :  { %v3995_v49 = vpop.eup %3994  ;;  %4012 = vtanh.f32 %v1616_v59  ;;  %v1711_v27 = vadd.f32 %v7032_v40, %v7031_v0  ;;  %v1532_v53 = vmul.f32 0.25, %v3987_v11  ;;  %v1533_v56 = vmul.f32 0.25, %v3989_v5  ;;  %v7037_v11 = vld [vmem:[#allocation30_spill] sm:$0xff]  ;;  %v7038_v5 = vld [vmem:[#allocation124_spill] sm:$0xff] }
 0xb0e   :  { %v3997_v4 = vpop.eup %3996  ;;  %4014 = vtanh.f32 %v1705_v42  ;;  %v1707_v7 = vadd.f32 %v7034_v35, %v7033_v31  ;;  %v1441_v19 = vadd.f32 %v1433_v38, %v983_v57  ;;  %v1443_v41 = vadd.f32 %v1435_v26, %v6198_v8 }
 0xb0f   :  { %v3999_v18 = vpop.eup %3998  ;;  %4016 = vtanh.f32 %v1709_v52  ;;  %v1708_v48 = vadd.f32 %v7036_v63, %v7035_v51  ;;  %v1445_v6 = vadd.f32 %v1437_v23, %v987_v28  ;;  %v1447_v40 = vadd.f32 %v1439_v50, %v989_v61 }
 0xb10   :  { %v4001_v2 = vpop.eup %4000  ;;  %4018 = vtanh.f32 %v1706_v3  ;;  %v1710_v42 = vadd.f32 %v7038_v5, %v7037_v11  ;;  %v1538_v0 = vadd.f32 %v1530_v45, %v1442_v15  ;;  %v1537_v57 = vadd.f32 %v1529_v32, %v1441_v19  ;;  %v7039_v3 = vld [vmem:[#allocation32_spill] sm:$0xff]  ;;  %v7040_v5 = vld [vmem:[#allocation125_spill] sm:$0xff]  ;;  %v7041_v32 = vld [vmem:[#allocation3_spill] sm:$0xff] }
 0xb11   :  { %v4003_v43 = vpop.eup %4002  ;;  %v1531_v38 = vmul.f32 0.25, %v3991_v29  ;;  %4020 = vtanh.f32 %v1711_v27  ;;  %v1540_v26 = vadd.f32 %v1532_v53, %v1444_v14  ;;  %v1541_v52 = vadd.f32 %v1533_v56, %v1445_v6  ;;  %v7042_v27 = vld [vmem:[#allocation132_spill] sm:$0xff]  ;;  %v6248_v53 = vpop.xlane.xlu0 %2803 }
 0xb12   :  { %v4005_v59 = vpop.eup %4004  ;;  %v1534_v63 = vmul.f32 0.25, %v3993_v33  ;;  %4022 = vtanh.f32 %v1707_v7  ;;  %v1535_v44 = vmul.f32 0.25, %v3995_v49  ;;  %v1536_v28 = vmul.f32 0.25, %v3997_v4  ;;  %v7043_v4 = vld [vmem:[#allocation2_spill] sm:$0xff] }
 0xb13   :  { %v4007_v35 = vpop.eup %4006  ;;  %v1625_v61 = vmul.f32 0.25, %v3999_v18  ;;  %4024 = vtanh.f32 %v1708_v48  ;;  %v1629_v23 = vmul.f32 0.25, %v4001_v2  ;;  %v1626_v50 = vmul.f32 0.25, %v4003_v43  ;;  %v7044_v18 = vld [vmem:[#allocation134_spill] sm:$0xff]  ;;  %v6252_v2 = vpop.xlane.xlu1 %2809 }
 0xb14   :  { %v4009_v8 = vpop.eup %4008  ;;  %4026 = vtanh.f32 %v1710_v42  ;;  %v1712_v11 = vadd.f32 %v7040_v5, %v7039_v3  ;;  %v1539_v15 = vadd.f32 %v1531_v38, %v1443_v41  ;;  %v1631_v45 = vmul.f32 0.25, %v4005_v59  ;;  %v7045_v41 = vld [vmem:[#allocation7_spill] sm:$0xff]  ;;  %v7046_v59 = vld [vmem:[#allocation136_spill] sm:$0xff] }
 0xb15   :  { %v4011_v51 = vpop.eup %4010  ;;  %v1627_v29 = vmul.f32 0.25, %v4007_v35  ;;  %v2163_v14 = vadd.f32 %v7042_v27, %v7041_v32  ;;  %v1542_v33 = vadd.f32 %v1534_v63, %v1446_v37  ;;  %v1628_v56 = vmul.f32 0.25, %v4009_v8  ;;  %v7047_v27 = vld [vmem:[#allocation5_spill] sm:$0xff] }
 0xb16   :  { %v1630_v49 = vmul.f32 0.25, %v4011_v51  ;;  %v2165_v7 = vadd.f32 %v7044_v18, %v7043_v4  ;;  %v1543_v19 = vadd.f32 %v1535_v44, %v1447_v40  ;;  %v1544_v48 = vadd.f32 %v1536_v28, %v1448_v34  ;;  %v7048_v37 = vld [vmem:[#allocation137_spill] sm:$0xff]  ;;  %v7049_v18 = vld [vmem:[#allocation138_spill] sm:$0xff]  ;;  %v7051_v28 = vld [vmem:[#allocation139_spill] sm:$0xff] }
 0xb17   :  { %v4013_v43 = vpop.eup %4012  ;;  %v1633_v6 = vadd.f32 %v1625_v61, %v1537_v57  ;;  %v2167_v42 = vadd.f32 %v7046_v59, %v7045_v41  ;;  %v1637_v38 = vadd.f32 %v1629_v23, %v1541_v52  ;;  %v1634_v5 = vadd.f32 %v1626_v50, %v1538_v0  ;;  %v7050_v57 = vld [vmem:[#allocation4_spill] sm:$0xff] }
 0xb18   :  { %v4015_v35 = vpop.eup %4014  ;;  %4028 = vtanh.f32 %v1712_v11  ;;  %v2164_v8 = vadd.f32 %v7048_v37, %v7047_v27  ;;  %v1639_v63 = vadd.f32 %v1631_v45, %v1543_v19  ;;  %v1635_v3 = vadd.f32 %v1627_v29, %v1539_v15  ;;  %v7052_v11 = vld [vmem:[#allocation6_spill] sm:$0xff]  ;;  %v7053_v23 = vld [vmem:[#allocation140_spill] sm:$0xff]  ;;  %v6267_v15 = vpop.xlane.xlu0 %2807 }
 0xb19   :  { %v4017_v51 = vpop.eup %4016  ;;  %4030 = vtanh.f32 %v2163_v14  ;;  %v2169_v4 = vadd.f32 %v7049_v18, %v6953_v22  ;;  %v1636_v34 = vadd.f32 %v1628_v56, %v1540_v26  ;;  %v1638_v40 = vadd.f32 %v1630_v49, %v1542_v33  ;;  %v7056_v56 = vld [vmem:[#allocation8_spill] sm:$0xff]  ;;  %v7057_v49 = vld [vmem:[#allocation141_spill] sm:$0xff] }
 0xb1a   :  { %v4019_v44 = vpop.eup %4018  ;;  %4032 = vtanh.f32 %v2165_v7  ;;  %v2166_v61 = vadd.f32 %v7051_v28, %v7050_v57  ;;  %v2168_v50 = vadd.f32 %v7053_v23, %v7052_v11  ;;  %v6265_v45 = vmul.f32 0.25, %v6225_v62  ;;  %v7060_v23 = vld [vmem:[#allocation152_spill] sm:$0xff] }
 0xb1b   :  { %v4021_v0 = vpop.eup %4020  ;;  %4034 = vtanh.f32 %v2167_v42  ;;  %v1632_v26 = vmul.f32 0.25, %v4013_v43  ;;  %v1721_v33 = vmul.f32 0.25, %v4015_v35  ;;  %v2170_v7 = vadd.f32 %v7057_v49, %v7056_v56  ;;  %v7058_v42 = vld [vmem:[#allocation150_spill] sm:$0xff]  ;;  %v7059_v43 = vld [vmem:[#allocation151_spill] sm:$0xff] }
 0xb1c   :  { %7054 = vst [vmem:[#allocation38_spill] sm:$0xff] %v6265_v45  ;;  %v4023_v14 = vpop.eup %4022  ;;  %4036 = vtanh.f32 %v2164_v8  ;;  %v1725_v59 = vmul.f32 0.25, %v4017_v51  ;;  %v2259_v37 = vadd.f32 %v7058_v42, %v6975_v60  ;;  %v1722_v28 = vmul.f32 0.25, %v4019_v44  ;;  %v7063_v44 = vld [vmem:[#allocation153_spill] sm:$0xff] }
 0xb1d   :  { %v4025_v19 = vpop.eup %4024  ;;  %4038 = vtanh.f32 %v2169_v4  ;;  %v2260_v35 = vadd.f32 %v7059_v43, %v6955_v55  ;;  %v2263_v49 = vadd.f32 %v7060_v23, %v6994_v39  ;;  %v6282_v4 = vmul.f32 0.25, %v6238_v25  ;;  %v7064_v43 = vld [vmem:[#allocation154_spill] sm:$0xff] }
 0xb1e   :  { %v4027_v18 = vpop.eup %4026  ;;  %4040 = vtanh.f32 %v2166_v61  ;;  %v1723_v42 = vmul.f32 0.25, %v4023_v14  ;;  %v1724_v60 = vmul.f32 0.25, %v4025_v19  ;;  %v2265_v62 = vadd.f32 %v7064_v43, %v6998_v24  ;;  %v7065_v14 = vld [vmem:[#allocation155_spill] sm:$0xff] }
 0xb1f   :  { %v2831_v52 = vpop.xlane.xlu1 %2830  ;;  %4042 = vtanh.f32 %v2168_v50  ;;  %7061 = vst [vmem:[#allocation41_spill] sm:$0xff] %v6282_v4  ;;  %v1726_v61 = vmul.f32 0.25, %v4027_v18  ;;  %v6290_v50 = vpop.xlane.xlu0 %2811  ;;  %v6296_v45 = vadd.f32 %v1725_v59, %v1637_v38  ;;  %v6298_v18 = vadd.f32 %v1722_v28, %v1634_v5  ;;  %v7068_v5 = vld [vmem:[#allocation157_spill] sm:$0xff] }
 0xb20   :  { %v6269_v29 = vmul.f32 0.0625, %v2831_v52  ;;  %v1727_v52 = vmul.f32 0.25, %v4021_v0  ;;  %4044 = vtanh.f32 %v2170_v7  ;;  %v2261_v0 = vadd.f32 %v7063_v44, %v6965_v17 }
 0xb21   :  { %4046 = vtanh.f32 %v2259_v37  ;;  %v2262_v7 = vadd.f32 %v7065_v14, %v6961_v10  ;;  %v7066_v37 = vld [vmem:[#allocation156_spill] sm:$0xff]  ;;  %v6304_v23 = vadd.f32 %v1723_v42, %v1635_v3  ;;  %v6310_v38 = vadd.f32 %v1726_v61, %v1638_v40 }
 0xb22   :  { %7055 = vst [vmem:[#allocation36_spill] sm:$0xff] %v6269_v29  ;;  %v4029_v25 = vpop.eup %4028  ;;  %v1640_v29 = vadd.f32 %v1632_v26, %v1544_v48  ;;  %4048 = vtanh.f32 %v2260_v35  ;;  %v2264_v44 = vadd.f32 %v7066_v37, %v6971_v58  ;;  %v6302_v24 = vadd.f32 %v1727_v52, %v1639_v63  ;;  %v7067_v48 = vld [vmem:[#allocation158_spill] sm:$0xff]  ;;  %v7069_v63 = vld [vmem:[#allocation159_spill] sm:$0xff] }
 0xb23   :  { %v2837_v8 = vpop.xlane.xlu1 %2836  ;;  %v4031_v19 = vpop.eup %4030  ;;  %4050 = vtanh.f32 %v2263_v49  ;;  %v2266_v59 = vadd.f32 %v7068_v5, %v6977_v9  ;;  %v2356_v3 = vadd.f32 %v7069_v63, %v6969_v21  ;;  %v6317_v52 = vmul.f32 0.25, %v6221_v16  ;;  %v7076_v5 = vld [vmem:[#allocation161_spill] sm:$0xff] }
 0xb24   :  { %v6284_v51 = vmul.f32 0.0625, %v2837_v8  ;;  %v1729_v8 = vadd.f32 %v1721_v33, %v1633_v6  ;;  %v4033_v43 = vpop.eup %4032  ;;  %4052 = vtanh.f32 %v2261_v0  ;;  %v2355_v6 = vadd.f32 %v7067_v48, %v6957_v30 }
 0xb25   :  { %v4035_v26 = vpop.eup %4034  ;;  %v6308_v33 = vadd.f32 %v1724_v60, %v1636_v34  ;;  %4054 = vtanh.f32 %v2265_v62  ;;  %7070 = vst [vmem:[#allocation43_spill] sm:$0xff] %v6317_v52  ;;  %v7072_v34 = vld [vmem:[#allocation53_spill] sm:$0xff]  ;;  %v6324_v62 = vmul.f32 0.25, %v6242_v1  ;;  %v1728_v14 = vmul.f32 0.25, %v4029_v25  ;;  %v7077_v25 = vld [vmem:[#allocation162_spill] sm:$0xff] }
 0xb26   :  { %7062 = vst [vmem:[#allocation40_spill] sm:$0xff] %v6284_v51  ;;  %v4037_v35 = vpop.eup %4036  ;;  %4056 = vtanh.f32 %v2262_v7  ;;  %v2451_v40 = vadd.f32 %v7072_v34, %v7026_v47  ;;  %v7075_v7 = vld [vmem:[#allocation160_spill] sm:$0xff]  ;;  %v6343_v34 = vmul.f32 0.25, %v6248_v53  ;;  %v6350_v1 = vmul.f32 0.25, %v6252_v2  ;;  %v7083_v53 = vld [vmem:[#allocation163_spill] sm:$0xff] }
 0xb27   :  { %v4039_v60 = vpop.eup %4038  ;;  %4058 = vtanh.f32 %v2264_v44  ;;  %7073 = vst [vmem:[#allocation9_spill] sm:$0xff] %v6324_v62  ;;  %v2359_v16 = vadd.f32 %v7075_v7, %v6973_v12  ;;  %v2179_v44 = vmul.f32 0.25, %v4031_v19  ;;  %v6356_v62 = vadd.f32 %v1728_v14, %v1640_v29  ;;  %v7084_v29 = vld [vmem:[#allocation166_spill] sm:$0xff] }
 0xb28   :  { %v4041_v61 = vpop.eup %4040  ;;  %4060 = vtanh.f32 %v2355_v6  ;;  %v2361_v6 = vadd.f32 %v7077_v25, %v6981_v46  ;;  %7078 = vst [vmem:[#allocation10_spill] sm:$0xff] %v6343_v34  ;;  %7081 = vst [vmem:[#allocation19_spill] sm:$0xff] %v6350_v1  ;;  %v2452_v14 = vadd.f32 %v7084_v29, %v7029_v36  ;;  %v7088_v29 = vld [vmem:[#allocation22_spill] sm:$0xff]  ;;  %v2185_v34 = vmul.f32 0.25, %v4039_v60  ;;  %v7094_v60 = vld [vmem:[#allocation33_spill] sm:$0xff] }
 0xb29   :  { %v6332_v48 = vpop.eup %4042  ;;  %4062 = vtanh.f32 %v2266_v59 }
 0xb2a   :  { %v2834_v28 = vpop.xlane.xlu0 %2833  ;;  %4064 = vtanh.f32 %v2356_v3 }
 0xb2b   :  { %v6319_v49 = vmul.f32 0.0625, %v2834_v28  ;;  %v2843_v42 = vpop.xlane.xlu1 %2842  ;;  %v2357_v28 = vadd.f32 %v7076_v5, %v6967_v20  ;;  %4066 = vtanh.f32 %v2451_v40  ;;  %v7080_v5 = vld [vmem:[#allocation168_spill] sm:$0xff] }
 0xb2c   :  { %v6326_v0 = vmul.f32 0.0625, %v2843_v42  ;;  %v6338_v42 = vpop.eup %4044  ;;  %v2453_v37 = vadd.f32 %v7080_v5, %v7033_v31  ;;  %4068 = vtanh.f32 %v2359_v16  ;;  %v2181_v5 = vmul.f32 0.25, %v4033_v43  ;;  %v7087_v43 = vld [vmem:[#allocation167_spill] sm:$0xff] }
 0xb2d   :  { %7071 = vst [vmem:[#allocation46_spill] sm:$0xff] %v6319_v49  ;;  %v4047_v59 = vpop.eup %4046  ;;  %v2187_v49 = vadd.f32 %v2179_v44, %v1729_v8  ;;  %4070 = vtanh.f32 %v2357_v28  ;;  %v6369_v16 = vmul.f32 0.25, %v6267_v15  ;;  %v2183_v8 = vmul.f32 0.25, %v4035_v26 }
 0xb2e   :  { %7074 = vst [vmem:[#allocation49_spill] sm:$0xff] %v6326_v0  ;;  %v2840_v63 = vpop.xlane.xlu0 %2839  ;;  %v6354_v3 = vpop.eup %4048  ;;  %4072 = vtanh.f32 %v2361_v6  ;;  %v2455_v44 = vadd.f32 %v7087_v43, %v7002_v54  ;;  %v2180_v6 = vmul.f32 0.25, %v4037_v35  ;;  %v2182_v26 = vmul.f32 0.25, %v4041_v61  ;;  %v7095_v61 = vld [vmem:[#allocation169_spill] sm:$0xff] }
 0xb2f   :  { %v6345_v7 = vmul.f32 0.0625, %v2840_v63  ;;  %v2849_v19 = vpop.xlane.xlu1 %2848  ;;  %v2358_v63 = vadd.f32 %v7083_v53, %v6963_v13  ;;  %v6362_v40 = vpop.eup %4050  ;;  %7085 = vst [vmem:[#allocation48_spill] sm:$0xff] %v6369_v16  ;;  %4074 = vtanh.f32 %v2453_v37  ;;  %v2275_v51 = vmul.f32 0.25, %v4047_v59 }
 0xb30   :  { %v6352_v0 = vmul.f32 0.0625, %v2849_v19  ;;  %v4053_v52 = vpop.eup %4052  ;;  %v6389_v35 = vmul.f32 0.25, %v6290_v50  ;;  %v2457_v59 = vadd.f32 %v7095_v61, %v7094_v60  ;;  %v2191_v16 = vadd.f32 %v2183_v8, %v6296_v45  ;;  %v7097_v45 = vld [vmem:[#allocation30_spill] sm:$0xff]  ;;  %v7098_v8 = vld [vmem:[#allocation171_spill] sm:$0xff] }
 0xb31   :  { %7079 = vst [vmem:[#allocation50_spill] sm:$0xff] %v6345_v7  ;;  %v6373_v7 = vpop.eup %4054  ;;  %4076 = vtanh.f32 %v2358_v63  ;;  %v2283_v61 = vadd.f32 %v2275_v51, %v2187_v49  ;;  %v2277_v50 = vmul.f32 0.25, %v4053_v52  ;;  %v2279_v52 = vmul.f32 0.25, %v6362_v40  ;;  %v7139_v60 = vld [vmem:[#allocation115_spill] sm:$0xff] }
 0xb32   :  { %7082 = vst [vmem:[#allocation51_spill] sm:$0xff] %v6352_v0  ;;  %v2846_v19 = vpop.xlane.xlu0 %2845  ;;  %v6378_v2 = vpop.eup %4056  ;;  %v7089_v0 = vld [vmem:[#allocation164_spill] sm:$0xff]  ;;  %7092 = vst [vmem:[#allocation52_spill] sm:$0xff] %v6389_v35 }
 0xb33   :  { %v6371_v53 = vmul.f32 0.0625, %v2846_v19  ;;  %v2887_v25 = vpop.xlane.xlu1 %2886  ;;  %v2360_v15 = vadd.f32 %v7089_v0, %v7088_v29  ;;  %v6384_v1 = vpop.eup %4058  ;;  %v2189_v19 = vadd.f32 %v2181_v5, %v6304_v23  ;;  %v6407_v23 = vadd.f32 %v2182_v26, %v6308_v33 }
 0xb34   :  { %v2909_v28 = vadd.f32 %v2887_v25, %v7041_v32  ;;  %v4061_v37 = vpop.eup %4060  ;;  %v7090_v32 = vld [vmem:[#allocation28_spill] sm:$0xff]  ;;  %v7091_v25 = vld [vmem:[#allocation170_spill] sm:$0xff] }
 0xb35   :  { %7086 = vst [vmem:[#allocation12_spill] sm:$0xff] %v6371_v53  ;;  %v2454_v4 = vadd.f32 %v7091_v25, %v7090_v32  ;;  %v6393_v54 = vpop.eup %4062  ;;  %v2188_v25 = vadd.f32 %v2180_v6, %v6298_v18  ;;  %v6404_v32 = vadd.f32 %v2185_v34, %v6302_v24  ;;  %v2371_v5 = vmul.f32 0.25, %v4061_v37  ;;  %v7100_v24 = vld [vmem:[#allocation165_spill] sm:$0xff] }
 0xb36   :  { %4078 = vtanh.f32 %v2909_v28  ;;  %v2852_v43 = vpop.xlane.xlu0 %2851  ;;  %v7096_v28 = vld [vmem:[#allocation2_spill] sm:$0xff]  ;;  %v2456_v18 = vadd.f32 %v7098_v8, %v7097_v45 }
 0xb37   :  { %4080 = vtanh.f32 %v2452_v14  ;;  %v6391_v63 = vmul.f32 0.0625, %v2852_v43  ;;  %v2893_v0 = vpop.xlane.xlu1 %2892  ;;  %v4065_v14 = vpop.eup %4064  ;;  %v2379_v37 = vadd.f32 %v2371_v5, %v2283_v61 }
 0xb38   :  { %4082 = vtanh.f32 %v2455_v44  ;;  %v2911_v53 = vadd.f32 %v2893_v0, %v7096_v28  ;;  %v4067_v43 = vpop.eup %4066  ;;  %v2372_v45 = vmul.f32 0.25, %v4065_v14 }
 0xb39   :  { %7093 = vst [vmem:[#allocation20_spill] sm:$0xff] %v6391_v63  ;;  %4084 = vtanh.f32 %v2360_v15  ;;  %v4069_v0 = vpop.eup %4068  ;;  %v7099_v63 = vld [vmem:[#allocation24_spill] sm:$0xff]  ;;  %v2467_v51 = vmul.f32 0.25, %v4067_v43  ;;  %v2285_v43 = vadd.f32 %v2277_v50, %v2189_v19 }
 0xb3a   :  { %4086 = vtanh.f32 %v2911_v53  ;;  %v2890_v44 = vpop.xlane.xlu0 %2889  ;;  %v4071_v28 = vpop.eup %4070  ;;  %v2362_v34 = vadd.f32 %v7100_v24, %v7099_v63  ;;  %v6416_v53 = vmul.f32 0.25, %v6332_v48  ;;  %v7140_v63 = vld [vmem:[#allocation11_spill] sm:$0xff] }
 0xb3b   :  { %4088 = vtanh.f32 %v2454_v4  ;;  %v2910_v6 = vadd.f32 %v2890_v44, %v7047_v27  ;;  %v2899_v15 = vpop.xlane.xlu1 %2898  ;;  %v4073_v26 = vpop.eup %4072  ;;  %v6419_v4 = vmul.f32 0.25, %v6338_v42  ;;  %v2276_v27 = vmul.f32 0.25, %v6354_v3 }
 0xb3c   :  { %4090 = vtanh.f32 %v2457_v59  ;;  %v2913_v33 = vadd.f32 %v2899_v15, %v7045_v41  ;;  %v4075_v49 = vpop.eup %4074  ;;  %v2373_v8 = vmul.f32 0.25, %v4071_v28  ;;  %v7101_v41 = vld [vmem:[#allocation32_spill] sm:$0xff]  ;;  %v2475_v5 = vadd.f32 %v2467_v51, %v2379_v37 }
 0xb3d   :  { %4092 = vtanh.f32 %v2910_v6  ;;  %v4077_v59 = vpop.eup %4076  ;;  %v7102_v15 = vld [vmem:[#allocation172_spill] sm:$0xff]  ;;  %v2281_v6 = vmul.f32 0.25, %v6373_v7  ;;  %v2469_v61 = vmul.f32 0.25, %v4075_v49  ;;  %v2287_v51 = vadd.f32 %v2279_v52, %v2191_v16 }
 0xb3e   :  { %4094 = vtanh.f32 %v2913_v33  ;;  %v2896_v44 = vpop.xlane.xlu0 %2895  ;;  %v2458_v48 = vadd.f32 %v7102_v15, %v7101_v41  ;;  %v2375_v15 = vmul.f32 0.25, %v4069_v0  ;;  %v2381_v41 = vadd.f32 %v2373_v8, %v2285_v43 }
 0xb3f   :  { %4096 = vtanh.f32 %v2456_v18  ;;  %v2912_v24 = vadd.f32 %v2896_v44, %v7050_v57  ;;  %v2905_v42 = vpop.xlane.xlu1 %2904  ;;  %v2278_v18 = vmul.f32 0.25, %v6378_v2  ;;  %v2289_v8 = vadd.f32 %v2281_v6, %v6404_v32 }
 0xb40   :  { %v4079_v35 = vpop.eup %4078  ;;  %4098 = vtanh.f32 %v2362_v34  ;;  %v2915_v3 = vadd.f32 %v2905_v42, %v6953_v22  ;;  %v2284_v34 = vadd.f32 %v2276_v27, %v2188_v25  ;;  %v2477_v14 = vadd.f32 %v2469_v61, %v2381_v41 }
 0xb41   :  { %v4081_v40 = vpop.eup %4080  ;;  %v2925_v33 = vmul.f32 0.25, %v4079_v35  ;;  %4100 = vtanh.f32 %v2912_v24  ;;  %v2383_v25 = vadd.f32 %v2375_v15, %v2287_v51  ;;  %v2377_v16 = vmul.f32 0.25, %v4073_v26 }
 0xb42   :  { %v4083_v28 = vpop.eup %4082  ;;  %4102 = vtanh.f32 %v2915_v3  ;;  %v2902_v57 = vpop.xlane.xlu0 %2901  ;;  %v2468_v35 = vmul.f32 0.25, %v4081_v40  ;;  %v2380_v42 = vadd.f32 %v2372_v45, %v2284_v34  ;;  %v2192_v26 = vadd.f32 %v6416_v53, %v6310_v38 }
 0xb43   :  { %v4085_v44 = vpop.eup %4084  ;;  %4104 = vtanh.f32 %v2458_v48  ;;  %v6429_v19 = vadd.f32 %v2925_v33, %v2475_v5  ;;  %v2914_v7 = vadd.f32 %v2902_v57, %v7052_v11  ;;  %v2958_v22 = vpop.permute.xlu1 %2957  ;;  %v2471_v2 = vmul.f32 0.25, %v4083_v28 }
 0xb44   :  { %v4087_v50 = vpop.eup %4086  ;;  %v2981_v49 = vsel %vm575_vm1, %v2958_v22, 0.0  ;;  %v2286_v48 = vadd.f32 %v2278_v18, %v6407_v23  ;;  %v2374_v11 = vmul.f32 0.25, %v4077_v59  ;;  %v2280_v5 = vmul.f32 0.25, %v6384_v1 }
 0xb45   :  { %7103 = vst [vmem:[#allocation54_spill] sm:$0xff] %v6429_v19  ;;  %v4089_v37 = vpop.eup %4088  ;;  %v2927_v0 = vmul.f32 0.25, %v4087_v50  ;;  %4106 = vtanh.f32 %v2914_v7  ;;  %2982 = vadd.xlane.f32.xlu1 %v2981_v49  ;;  %v2476_v61 = vadd.f32 %v2468_v35, %v2380_v42  ;;  %v2479_v6 = vadd.f32 %v2471_v2, %v2383_v25  ;;  %v7142_v19 = vld [vmem:[#allocation97_spill] sm:$0xff] }
 0xb46   :  { %v4091_v24 = vpop.eup %4090  ;;  %v2908_v43 = vpop.xlane.xlu0 %2907  ;;  %v2470_v33 = vmul.f32 0.25, %v4089_v37  ;;  %v2382_v18 = vadd.f32 %v2374_v11, %v2286_v48  ;;  %v2376_v15 = vmul.f32 0.25, %v4085_v44  ;;  %v2282_v1 = vmul.f32 0.25, %v6393_v54 }
 0xb47   :  { %v4093_v3 = vpop.eup %4092  ;;  %v6435_v27 = vadd.f32 %v2927_v0, %v2477_v14  ;;  %v2916_v52 = vadd.f32 %v2908_v43, %v7056_v56  ;;  %v2962_v40 = vpop.permute.xlu1 %2961  ;;  %v2473_v23 = vmul.f32 0.25, %v4091_v24  ;;  %v2385_v22 = vadd.f32 %v2377_v16, %v2289_v8 }
 0xb48   :  { %v4095_v41 = vpop.eup %4094  ;;  %v2926_v28 = vmul.f32 0.25, %v4093_v3  ;;  %v2288_v49 = vadd.f32 %v2280_v5, %v2192_v26  ;;  %v2478_v37 = vadd.f32 %v2470_v33, %v2382_v18  ;;  %v2194_v53 = vadd.f32 %v6419_v4, %v6356_v62 }
 0xb49   :  { %7104 = vst [vmem:[#allocation13_spill] sm:$0xff] %v6435_v27  ;;  %v4097_v32 = vpop.eup %4096  ;;  %v2929_v45 = vmul.f32 0.25, %v4095_v41  ;;  %4108 = vtanh.f32 %v2916_v52  ;;  %v2481_v44 = vadd.f32 %v2473_v23, %v2385_v22  ;;  %v2987_v3 = vsel %vm575_vm1, %v2962_v40, 0.0 }
 0xb4a   :  { %v4099_v59 = vpop.eup %4098  ;;  %v6441_v57 = vadd.f32 %v2926_v28, %v2476_v61  ;;  %v2960_v56 = vpop.permute.xlu0 %2959  ;;  %v2472_v2 = vmul.f32 0.25, %v4097_v32  ;;  %v2384_v24 = vadd.f32 %v2376_v15, %v2288_v49  ;;  %v2290_v11 = vadd.f32 %v2282_v1, %v2194_v53 }
 0xb4b   :  { %v4101_v7 = vpop.eup %4100  ;;  %v6444_v50 = vadd.f32 %v2929_v45, %v2479_v6  ;;  %v2984_v34 = vsel %vm575_vm1, %v2960_v56, 0.0  ;;  %v2964_v51 = vpop.permute.xlu1 %2963  ;;  %v2378_v54 = vmul.f32 0.25, %v4099_v59 }
 0xb4c   :  { %7105 = vst [vmem:[#allocation55_spill] sm:$0xff] %v6441_v57  ;;  %v4103_v35 = vpop.eup %4102  ;;  %v2928_v14 = vmul.f32 0.25, %v4101_v7  ;;  %2985 = vadd.xlane.f32.xlu0 %v2984_v34  ;;  %v2480_v16 = vadd.f32 %v2472_v2, %v2384_v24  ;;  %v2990_v28 = vsel %vm575_vm1, %v2964_v51, 0.0  ;;  %v7138_v57 = vld [vmem:[#allocation116_spill] sm:$0xff] }
 0xb4d   :  { %7106 = vst [vmem:[#allocation21_spill] sm:$0xff] %v6444_v50  ;;  %v4105_v38 = vpop.eup %4104  ;;  %v2931_v0 = vmul.f32 0.25, %v4103_v35  ;;  %v2386_v62 = vadd.f32 %v2378_v54, %v2290_v11  ;;  %v1367_v27 = vmul.f32 0.0625, %v7138_v57 }
 0xb4e   :  { %v6449_v8 = vadd.f32 %v2928_v14, %v2478_v37  ;;  %v2968_v48 = vpop.permute.xlu0 %2967  ;;  %v2474_v52 = vmul.f32 0.25, %v4105_v38 }
 0xb4f   :  { %v4107_v42 = vpop.eup %4106  ;;  %v6451_v43 = vadd.f32 %v2931_v0, %v2481_v44  ;;  %v2966_v25 = vpop.permute.xlu1 %2965  ;;  %v2996_v26 = vsel %vm575_vm1, %v2968_v48, 0.0 }
 0xb50   :  { %7107 = vst [vmem:[#allocation56_spill] sm:$0xff] %v6449_v8  ;;  %v2930_v41 = vmul.f32 0.25, %v4107_v42  ;;  %v2993_v5 = vsel %vm575_vm1, %v2966_v25, 0.0  ;;  %2988 = vadd.xlane.f32.xlu0 %v2987_v3  ;;  %v2482_v6 = vadd.f32 %v2474_v52, %v2386_v62  ;;  %v7135_v8 = vld [vmem:[#allocation96_spill] sm:$0xff] }
 0xb51   :  { %7108 = vst [vmem:[#allocation18_spill] sm:$0xff] %v6451_v43  ;;  %2994 = vadd.xlane.f32.xlu1 %v2993_v5  ;;  %v7133_v43 = vld [vmem:[#allocation112_spill] sm:$0xff] }
 0xb52   :  { %v6455_v4 = vadd.f32 %v2930_v41, %v2480_v16  ;;  %v2972_v61 = vpop.permute.xlu0 %2971 }
 0xb53   :  { %v4109_v33 = vpop.eup %4108  ;;  %v2970_v32 = vpop.permute.xlu1 %2969  ;;  %v3002_v7 = vsel %vm575_vm1, %v2972_v61, 0.0 }
 0xb54   :  { %7109 = vst [vmem:[#allocation66_spill] sm:$0xff] %v6455_v4  ;;  %v2932_v23 = vmul.f32 0.25, %v4109_v33  ;;  %v2999_v40 = vsel %vm575_vm1, %v2970_v32, 0.0  ;;  %2991 = vadd.xlane.f32.xlu0 %v2990_v28 }
 0xb55   :  { %3000 = vadd.xlane.f32.xlu1 %v2999_v40 }
 0xb56   :  { %v6459_v45 = vadd.f32 %v2932_v23, %v2482_v6  ;;  %v3056_v59 = vpop.permute.xlu0 %3055 }
 0xb57   :  { %v3054_v18 = vpop.permute.xlu1 %3053  ;;  %v3080_v51 = vsel %vm575_vm1, %v3056_v59, 0.0 }
 0xb58   :  { %7110 = vst [vmem:[#allocation14_spill] sm:$0xff] %v6459_v45  ;;  %v3077_v15 = vsel %vm575_vm1, %v3054_v18, 0.0  ;;  %2997 = vadd.xlane.f32.xlu0 %v2996_v26  ;;  %v7111_v18 = vld [vmem:[#allocation35_spill] sm:$0xff] }
 0xb59   :  { %3078 = vadd.xlane.f32.xlu1 %v3077_v15  ;;  %v559_v15 = vmul.f32 0.25, %v7111_v18 }
 0xb5a   :  { %v3060_v56 = vpop.permute.xlu0 %3059 }
 0xb5b   :  { %v3058_v1 = vpop.permute.xlu1 %3057  ;;  %v3086_v2 = vsel %vm575_vm1, %v3060_v56, 0.0  ;;  %v7112_v56 = vld [vmem:[#allocation72_spill] sm:$0xff] }
 0xb5c   :  { %v3083_v22 = vsel %vm575_vm1, %v3058_v1, 0.0  ;;  %3003 = vadd.xlane.f32.xlu0 %v3002_v7  ;;  %v600_v7 = vmul.f32 0.0625, %v7112_v56  ;;  %v7113_v1 = vld [vmem:[#allocation34_spill] sm:$0xff]  ;;  %v7126_v56 = vld [vmem:[#allocation75_spill] sm:$0xff] }
 0xb5d   :  { %3084 = vadd.xlane.f32.xlu1 %v3083_v22  ;;  %v560_v22 = vmul.f32 0.25, %v7113_v1  ;;  %v1326_v1 = vmul.f32 0.25, %v7126_v56 }
 0xb5e   :  { %v3064_v34 = vpop.permute.xlu0 %3063  ;;  %v608_v18 = vsub.f32 %v559_v15, %v600_v7  ;;  %v7134_v15 = vld [vmem:[#allocation111_spill] sm:$0xff] }
 0xb5f   :  { %v3062_v35 = vpop.permute.xlu1 %3061  ;;  %v3092_v44 = vsel %vm575_vm1, %v3064_v34, 0.0  ;;  %v7114_v34 = vld [vmem:[#allocation37_spill] sm:$0xff]  ;;  %v1362_v7 = vmul.f32 0.0625, %v7134_v15 }
 0xb60   :  { %v3089_v49 = vsel %vm575_vm1, %v3062_v35, 0.0  ;;  %3081 = vadd.xlane.f32.xlu0 %v3080_v51  ;;  %v6487_v51 = vmul.f32 0.25, %v7114_v34  ;;  %v7115_v35 = vld [vmem:[#allocation39_spill] sm:$0xff]  ;;  %v7127_v34 = vld [vmem:[#allocation90_spill] sm:$0xff] }
 0xb61   :  { %3090 = vadd.xlane.f32.xlu1 %v3089_v49  ;;  %v561_v49 = vmul.f32 0.25, %v7115_v35  ;;  %v601_v35 = vmul.f32 0.0625, %v7127_v34 }
 0xb62   :  { %v3068_v37 = vpop.permute.xlu0 %3067 }
 0xb63   :  { %v3066_v14 = vpop.permute.xlu1 %3065  ;;  %v3098_v54 = vsel %vm575_vm1, %v3068_v37, 0.0  ;;  %v7116_v37 = vld [vmem:[#allocation77_spill] sm:$0xff] }
 0xb64   :  { %v3095_v38 = vsel %vm575_vm1, %v3066_v14, 0.0  ;;  %3087 = vadd.xlane.f32.xlu0 %v3086_v2  ;;  %v602_v2 = vmul.f32 0.0625, %v7116_v37  ;;  %v7128_v37 = vld [vmem:[#allocation88_spill] sm:$0xff] }
 0xb65   :  { %3096 = vadd.xlane.f32.xlu1 %v3095_v38  ;;  %v7117_v38 = vld [vmem:[#allocation42_spill] sm:$0xff] }
 0xb66   :  { %v3152_v53 = vpop.permute.xlu0 %3151 }
 0xb67   :  { %v3150_v0 = vpop.permute.xlu1 %3149  ;;  %v3176_v3 = vsel %vm575_vm1, %v3152_v53, 0.0  ;;  %v563_v53 = vmul.f32 0.25, %v7117_v38  ;;  %v1321_v38 = vmul.f32 0.25, %v7128_v37  ;;  %v605_v37 = vmul.f32 0.0625, %v7135_v8 }
 0xb68   :  { %v3173_v24 = vsel %vm575_vm1, %v3150_v0, 0.0  ;;  %3093 = vadd.xlane.f32.xlu0 %v3092_v44  ;;  %v7118_v44 = vld [vmem:[#allocation44_spill] sm:$0xff] }
 0xb69   :  { %3174 = vadd.xlane.f32.xlu1 %v3173_v24  ;;  %v6495_v0 = vmul.f32 0.25, %v7118_v44  ;;  %v7119_v24 = vld [vmem:[#allocation45_spill] sm:$0xff]  ;;  %v610_v44 = vsub.f32 %v561_v49, %v602_v2  ;;  %v7136_v49 = vld [vmem:[#allocation114_spill] sm:$0xff] }
 0xb6a   :  { %v3156_v42 = vpop.permute.xlu0 %3155  ;;  %v1365_v2 = vmul.f32 0.0625, %v7136_v49 }
 0xb6b   :  { %v3154_v48 = vpop.permute.xlu1 %3153  ;;  %v3182_v41 = vsel %vm575_vm1, %v3156_v42, 0.0 }
 0xb6c   :  { %v3179_v11 = vsel %vm575_vm1, %v3154_v48, 0.0  ;;  %3099 = vadd.xlane.f32.xlu0 %v3098_v54  ;;  %v6498_v54 = vmul.f32 0.25, %v7119_v24  ;;  %v7120_v48 = vld [vmem:[#allocation80_spill] sm:$0xff]  ;;  %v7129_v24 = vld [vmem:[#allocation93_spill] sm:$0xff] }
 0xb6d   :  { %3180 = vadd.xlane.f32.xlu1 %v3179_v11  ;;  %v604_v42 = vmul.f32 0.0625, %v7120_v48  ;;  %v603_v48 = vmul.f32 0.0625, %v7129_v24  ;;  %v7137_v24 = vld [vmem:[#allocation113_spill] sm:$0xff] }
 0xb6e   :  { %v3160_v52 = vpop.permute.xlu0 %3159  ;;  %v1364_v50 = vmul.f32 0.0625, %v7137_v24 }
 0xb6f   :  { %v3158_v25 = vpop.permute.xlu1 %3157  ;;  %v3188_v61 = vsel %vm575_vm1, %v3160_v52, 0.0  ;;  %v611_v15 = vsub.f32 %v6487_v51, %v603_v48  ;;  %v7147_v48 = vld [vmem:[#allocation127_spill] sm:$0xff] }
 0xb70   :  { %v3185_v16 = vsel %vm575_vm1, %v3158_v25, 0.0  ;;  %3177 = vadd.xlane.f32.xlu0 %v3176_v3  ;;  %v7121_v3 = vld [vmem:[#allocation47_spill] sm:$0xff] }
 0xb71   :  { %3186 = vadd.xlane.f32.xlu1 %v3185_v16  ;;  %v6502_v25 = vmul.f32 0.25, %v7121_v3  ;;  %v7122_v16 = vld [vmem:[#allocation67_spill] sm:$0xff]  ;;  %v7130_v3 = vld [vmem:[#allocation110_spill] sm:$0xff] }
 0xb72   :  { %v3164_v33 = vpop.permute.xlu0 %3163  ;;  %v1322_v52 = vmul.f32 0.25, %v7122_v16  ;;  %v1361_v45 = vmul.f32 0.0625, %v7130_v3  ;;  %v7132_v16 = vld [vmem:[#allocation79_spill] sm:$0xff]  ;;  %v609_v3 = vsub.f32 %v560_v22, %v601_v35 }
 0xb73   :  { %v3162_v5 = vpop.permute.xlu1 %3161  ;;  %v3194_v28 = vsel %vm575_vm1, %v3164_v33, 0.0  ;;  %v7125_v33 = vld [vmem:[#allocation70_spill] sm:$0xff] }
 0xb74   :  { %v3191_v62 = vsel %vm575_vm1, %v3162_v5, 0.0  ;;  %3183 = vadd.xlane.f32.xlu0 %v3182_v41  ;;  %v7123_v41 = vld [vmem:[#allocation69_spill] sm:$0xff]  ;;  %v1370_v24 = vsub.f32 %v1322_v52, %v1362_v7 }
 0xb75   :  { %3192 = vadd.xlane.f32.xlu1 %v3191_v62  ;;  %v1324_v5 = vmul.f32 0.25, %v7123_v41  ;;  %v7124_v62 = vld [vmem:[#allocation82_spill] sm:$0xff]  ;;  %v6516_v41 = vmul.f32 0.25, %v7132_v16  ;;  %v1366_v16 = vmul.f32 0.0625, %v7139_v60  ;;  %v613_v60 = vsub.f32 %v6498_v54, %v605_v37 }
 0xb77   :  { %v1374_v51 = vsub.f32 %v1326_v1, %v1366_v16  ;;  %v7151_v16 = vld [vmem:[#allocation128_spill] sm:$0xff] }
 0xb78   :  { %3189 = vadd.xlane.f32.xlu0 %v3188_v61  ;;  %v606_v61 = vmul.f32 0.0625, %v7124_v62  ;;  %v612_v62 = vsub.f32 %v563_v53, %v604_v42  ;;  %v7141_v42 = vld [vmem:[#allocation92_spill] sm:$0xff] }
 0xb7a   :  { %v614_v34 = vsub.f32 %v6495_v0, %v606_v61  ;;  %v1369_v0 = vsub.f32 %v1321_v38, %v1361_v45  ;;  %v7143_v61 = vld [vmem:[#allocation95_spill] sm:$0xff] }
 0xb7b   :  { %v1327_v49 = vmul.f32 0.25, %v7143_v61  ;;  %v7154_v61 = vld [vmem:[#allocation130_spill] sm:$0xff] }
 0xb7c   :  { %3195 = vadd.xlane.f32.xlu0 %v3194_v28  ;;  %v1323_v28 = vmul.f32 0.25, %v7125_v33  ;;  %v1363_v33 = vmul.f32 0.0625, %v7133_v43  ;;  %v1325_v43 = vmul.f32 0.25, %v7141_v42  ;;  %v1377_v38 = vadd.f32 %v1369_v0, %v608_v18 }
 0xb7d   :  { %v1375_v42 = vsub.f32 %v1327_v49, %v1367_v27  ;;  %v6554_v18 = vadd.f32 %v1374_v51, %v613_v60  ;;  %v6576_v49 = vmul.f32 0.25, %v7154_v61  ;;  %v7156_v51 = vld [vmem:[#allocation133_spill] sm:$0xff] }
 0xb7e   :  { %v1371_v9 = vsub.f32 %v1323_v28, %v1363_v33  ;;  %v1373_v35 = vsub.f32 %v1325_v43, %v1365_v2  ;;  %v7144_v28 = vld [vmem:[#allocation117_spill] sm:$0xff]  ;;  %v7148_v33 = vld [vmem:[#allocation143_spill] sm:$0xff] }
 0xb7f   :  { %v6540_v52 = vmul.f32 0.0625, %v7144_v28  ;;  %v7152_v43 = vld [vmem:[#allocation145_spill] sm:$0xff] }
 0xb80   :  { %v6543_v54 = vadd.f32 %v1371_v9, %v610_v44 }
 0xbd2   :  { %v2983_v6 = vpop.xlane.xlu1 %2982 }
 0xbd3   :  { %v3005_v53 = vadd.f32 %v2983_v6, %v7140_v63  ;;  %v1372_v63 = vsub.f32 %v1324_v5, %v1364_v50  ;;  %v1378_v50 = vadd.f32 %v1370_v24, %v609_v3  ;;  %v6552_v5 = vadd.f32 %v1375_v42, %v614_v34  ;;  %v7149_v34 = vld [vmem:[#allocation144_spill] sm:$0xff] }
 0xbd4   :  { %v2109_v37 = vmul.f32 0.0625, %v7149_v34 }
 0xbd5   :  { %4110 = vtanh.f32 %v3005_v53  ;;  %v6569_v53 = vmul.f32 0.25, %v7151_v16 }
 0xbd9   :  { %v2986_v32 = vpop.xlane.xlu0 %2985 }
 0xbda   :  { %v3006_v22 = vadd.f32 %v2986_v32, %v6955_v55 }
 0xbdc   :  { %4112 = vtanh.f32 %v3006_v22 }
 0xbdd   :  { %v2989_v23 = vpop.xlane.xlu0 %2988 }
 0xbde   :  { %v2995_v40 = vpop.xlane.xlu1 %2994 }
 0xbdf   :  { %v3009_v55 = vadd.f32 %v2995_v40, %v6994_v39  ;;  %v1376_v39 = vsub.f32 %v6516_v41, %v6540_v52  ;;  %v7145_v40 = vld [vmem:[#allocation126_spill] sm:$0xff]  ;;  %v4111_v22 = vpop.eup %4110  ;;  %v7199_v41 = vld [vmem:[#allocation52_spill] sm:$0xff] }
 0xbe1   :  { %v6479_v59 = vpop.xlane.xlu0 %2991 }
 0xbe2   :  { %v6481_v26 = vpop.xlane.xlu1 %3000 }
 0xbe5   :  { %v6491_v14 = vpop.xlane.xlu0 %2997 }
 0xbe6   :  { %v3079_v11 = vpop.xlane.xlu1 %3078  ;;  %v3010_v0 = vadd.f32 %v6491_v14, %v6971_v58  ;;  %v4113_v42 = vpop.eup %4112 }
 0xbe7   :  { %v3101_v6 = vadd.f32 %v3079_v11, %v6957_v30  ;;  %v3008_v30 = vadd.f32 %v6479_v59, %v6961_v10  ;;  %v6547_v11 = vadd.f32 %v1373_v35, %v612_v62  ;;  %v2067_v10 = vmul.f32 0.25, %v7145_v40  ;;  %v7146_v59 = vld [vmem:[#allocation142_spill] sm:$0xff] }
 0xbe8   :  { %v2107_v1 = vmul.f32 0.0625, %v7146_v59  ;;  %v2068_v62 = vmul.f32 0.25, %v7147_v48 }
 0xbe9   :  { %v6513_v4 = vpop.xlane.xlu0 %3003  ;;  %4114 = vtanh.f32 %v3101_v6 }
 0xbea   :  { %7131 = vst [vmem:[#allocation57_spill] sm:$0xff] %v6513_v4  ;;  %v3085_v56 = vpop.xlane.xlu1 %3084  ;;  %v6530_v4 = vmul.f32 0.0625, %v7142_v19  ;;  %v3007_v19 = vadd.f32 %v2989_v23, %v6965_v17  ;;  %v6549_v17 = vadd.f32 %v1372_v63, %v611_v15  ;;  %v2110_v15 = vmul.f32 0.0625, %v7152_v43 }
 0xbeb   :  { %v3103_v23 = vadd.f32 %v3085_v56, %v6967_v20  ;;  %v2108_v20 = vmul.f32 0.0625, %v7148_v33  ;;  %v2115_v24 = vsub.f32 %v2067_v10, %v2107_v1  ;;  %v7159_v33 = vld [vmem:[#allocation16_spill] sm:$0xff] }
 0xbec   :  { %v615_v45 = vsub.f32 %v6502_v25, %v6530_v4  ;;  %4116 = vtanh.f32 %v3007_v19  ;;  %v6583_v19 = vmul.f32 0.25, %v7156_v51 }
 0xbed   :  { %v3082_v8 = vpop.xlane.xlu0 %3081  ;;  %4118 = vtanh.f32 %v3009_v55  ;;  %v2116_v60 = vsub.f32 %v2068_v62, %v2108_v20  ;;  %v7157_v55 = vld [vmem:[#allocation146_spill] sm:$0xff] }
 0xbee   :  { %v3091_v57 = vpop.xlane.xlu1 %3090  ;;  %v3102_v9 = vadd.f32 %v3082_v8, %v6969_v21  ;;  %4120 = vtanh.f32 %v3008_v30  ;;  %v7150_v21 = vld [vmem:[#allocation17_spill] sm:$0xff]  ;;  %v2111_v30 = vmul.f32 0.0625, %v7157_v55  ;;  %v3022_v55 = vmul.f32 0.25, %v4113_v42 }
 0xbef   :  { %v3105_v7 = vadd.f32 %v3091_v57, %v6973_v12  ;;  %v3011_v2 = vadd.f32 %v6481_v26, %v7150_v21  ;;  %4122 = vtanh.f32 %v3103_v23  ;;  %v7153_v8 = vld [vmem:[#allocation129_spill] sm:$0xff]  ;;  %v7155_v57 = vld [vmem:[#allocation131_spill] sm:$0xff] }
 0xbf0   :  { %4124 = vtanh.f32 %v3102_v9  ;;  %v2069_v12 = vmul.f32 0.25, %v7153_v8  ;;  %v7158_v9 = vld [vmem:[#allocation135_spill] sm:$0xff] }
 0xbf1   :  { %v3088_v32 = vpop.xlane.xlu0 %3087  ;;  %v6587_v40 = vmul.f32 0.25, %v7158_v9  ;;  %v7160_v20 = vld [vmem:[#allocation57_spill] sm:$0xff] }
 0xbf2   :  { %v3097_v27 = vpop.xlane.xlu1 %3096  ;;  %v3104_v35 = vadd.f32 %v3088_v32, %v6963_v13  ;;  %v2117_v6 = vsub.f32 %v2069_v12, %v2109_v37  ;;  %v2123_v13 = vadd.f32 %v2115_v24, %v1377_v38  ;;  %v3021_v32 = vmul.f32 0.25, %v4111_v22  ;;  %v7161_v38 = vld [vmem:[#allocation31_spill] sm:$0xff]  ;;  %v7166_v12 = vld [vmem:[#allocation28_spill] sm:$0xff]  ;;  %v7167_v22 = vld [vmem:[#allocation38_spill] sm:$0xff] }
 0xbf3   :  { %v3107_v58 = vadd.f32 %v3097_v27, %v6981_v46  ;;  %v4115_v23 = vpop.eup %4114  ;;  %v6589_v46 = vadd.f32 %v2116_v60, %v1378_v50  ;;  %v2119_v50 = vsub.f32 %v6569_v53, %v2111_v30  ;;  %v7171_v9 = vld [vmem:[#allocation13_spill] sm:$0xff] }
 0xbf4   :  { %v2125_v62 = vadd.f32 %v2117_v6, %v6543_v54  ;;  %v3117_v21 = vmul.f32 0.25, %v4115_v23 }
 0xbf5   :  { %v3094_v44 = vpop.xlane.xlu0 %3093 }
 0xbf6   :  { %v3175_v56 = vpop.xlane.xlu1 %3174  ;;  %v4117_v59 = vpop.eup %4116 }
 0xbf7   :  { %v3197_v3 = vadd.f32 %v3175_v56, %v7026_v47  ;;  %v2070_v47 = vmul.f32 0.25, %v7155_v57  ;;  %v4119_v48 = vpop.eup %4118  ;;  %v7168_v57 = vld [vmem:[#allocation36_spill] sm:$0xff] }
 0xbf8   :  { %v4121_v34 = vpop.eup %4120 }
 0xbf9   :  { %4126 = vtanh.f32 %v3197_v3  ;;  %v3100_v26 = vpop.xlane.xlu0 %3099  ;;  %v2118_v28 = vsub.f32 %v2070_v47, %v2110_v15  ;;  %v7164_v3 = vld [vmem:[#allocation54_spill] sm:$0xff]  ;;  %v7169_v47 = vsub.f32 %v7167_v22, %v7168_v57 }
 0xbfa   :  { %4128 = vtanh.f32 %v3105_v7  ;;  %v3181_v63 = vpop.xlane.xlu1 %3180  ;;  %v3012_v7 = vadd.f32 %v7160_v20, %v7159_v33  ;;  %v3029_v16 = vadd.f32 %v3021_v32, %v7164_v3 }
 0xbfb   :  { %4130 = vtanh.f32 %v3011_v2  ;;  %v3199_v14 = vadd.f32 %v3181_v63, %v7033_v31  ;;  %v3106_v31 = vadd.f32 %v3094_v44, %v7088_v29  ;;  %v6598_v37 = vadd.f32 %v2118_v28, %v6549_v17  ;;  %v4123_v29 = vpop.eup %4122  ;;  %v7163_v2 = vld [vmem:[#allocation148_spill] sm:$0xff] }
 0xbfc   :  { %4132 = vtanh.f32 %v3010_v0  ;;  %v6605_v54 = vmul.f32 0.0625, %v7163_v2  ;;  %v4125_v15 = vpop.eup %4124  ;;  %v3023_v0 = vmul.f32 0.25, %v4117_v59  ;;  %v7165_v17 = vld [vmem:[#allocation24_spill] sm:$0xff]  ;;  %v2869_v60 = vadd.f32 %v7169_v47, %v2123_v13  ;;  %v7172_v13 = vld [vmem:[#allocation30_spill] sm:$0xff]  ;;  %v7174_v2 = vld [vmem:[#allocation21_spill] sm:$0xff] }
 0xbfd   :  { %4134 = vtanh.f32 %v3199_v14  ;;  %v3178_v10 = vpop.xlane.xlu0 %3177  ;;  %v3108_v8 = vadd.f32 %v3100_v26, %v7165_v17  ;;  %v3119_v14 = vmul.f32 0.25, %v4123_v29  ;;  %v3025_v26 = vmul.f32 0.25, %v4119_v48  ;;  %v7173_v29 = vld [vmem:[#allocation55_spill] sm:$0xff] }
 0xbfe   :  { %4136 = vtanh.f32 %v3104_v35  ;;  %v3198_v27 = vadd.f32 %v3178_v10, %v7029_v36  ;;  %v3187_v1 = vpop.xlane.xlu1 %3186  ;;  %v7162_v36 = vld [vmem:[#allocation147_spill] sm:$0xff]  ;;  %v7170_v35 = vld [vmem:[#allocation33_spill] sm:$0xff]  ;;  %v3031_v32 = vadd.f32 %v3023_v0, %v7171_v9  ;;  %v3118_v33 = vmul.f32 0.25, %v4125_v15 }
 0xbff   :  { %4138 = vtanh.f32 %v3107_v58  ;;  %v3201_v56 = vadd.f32 %v3187_v1, %v7161_v38  ;;  %v6602_v44 = vmul.f32 0.0625, %v7162_v36  ;;  %v3125_v58 = vadd.f32 %v3117_v21, %v3029_v16  ;;  %v7176_v16 = vld [vmem:[#allocation40_spill] sm:$0xff]  ;;  %v7184_v9 = vld [vmem:[#allocation9_spill] sm:$0xff] }
 0xc00   :  { %4140 = vtanh.f32 %v3198_v27  ;;  %v2127_v27 = vadd.f32 %v2119_v50, %v6547_v11  ;;  %v3127_v48 = vadd.f32 %v3119_v14, %v3031_v32  ;;  %v2121_v21 = vsub.f32 %v6576_v49, %v6605_v54  ;;  %v7185_v32 = vld [vmem:[#allocation49_spill] sm:$0xff] }
 0xc01   :  { %4142 = vtanh.f32 %v3201_v56  ;;  %v3184_v43 = vpop.xlane.xlu0 %3183  ;;  %v2120_v1 = vsub.f32 %v6583_v19, %v6602_v44  ;;  %v3030_v36 = vadd.f32 %v3022_v55, %v7173_v29  ;;  %v3033_v3 = vadd.f32 %v3025_v26, %v7174_v2  ;;  %v7175_v44 = vld [vmem:[#allocation41_spill] sm:$0xff]  ;;  %v7189_v2 = vld [vmem:[#allocation50_spill] sm:$0xff] }
 0xc02   :  { %4144 = vtanh.f32 %v3106_v31  ;;  %v3200_v53 = vadd.f32 %v3184_v43, %v7166_v12  ;;  %v3193_v61 = vpop.xlane.xlu1 %3192  ;;  %v3024_v11 = vmul.f32 0.25, %v4121_v34  ;;  %v7177_v43 = vsub.f32 %v7175_v44, %v7176_v16  ;;  %v7183_v26 = vld [vmem:[#allocation149_spill] sm:$0xff] }
 0xc03   :  { %v4127_v24 = vpop.eup %4126  ;;  %4146 = vtanh.f32 %v3012_v7  ;;  %v3203_v63 = vadd.f32 %v3193_v61, %v7170_v35  ;;  %v3126_v12 = vadd.f32 %v3118_v33, %v3030_v36  ;;  %v7179_v35 = vld [vmem:[#allocation43_spill] sm:$0xff]  ;;  %v7188_v36 = vld [vmem:[#allocation10_spill] sm:$0xff]  ;;  %v2128_v16 = vadd.f32 %v2120_v1, %v6554_v18  ;;  %v7196_v1 = vld [vmem:[#allocation12_spill] sm:$0xff] }
 0xc04   :  { %v4129_v6 = vpop.eup %4128  ;;  %v3213_v51 = vmul.f32 0.25, %v4127_v24  ;;  %4148 = vtanh.f32 %v3200_v53  ;;  %v2871_v15 = vadd.f32 %v7177_v43, %v2125_v62  ;;  %v1384_v18 = vadd.f32 %v1376_v39, %v615_v45  ;;  %v7200_v45 = vld [vmem:[#allocation20_spill] sm:$0xff] }
 0xc05   :  { %v4131_v28 = vpop.eup %4130  ;;  %4150 = vtanh.f32 %v3203_v63  ;;  %v3190_v30 = vpop.xlane.xlu0 %3189  ;;  %v3121_v20 = vmul.f32 0.25, %v4129_v6  ;;  %v7180_v63 = vld [vmem:[#allocation46_spill] sm:$0xff]  ;;  %v7201_v52 = vsub.f32 %v7199_v41, %v7200_v45 }
 0xc06   :  { %v4133_v23 = vpop.eup %4132  ;;  %v3221_v10 = vadd.f32 %v3213_v51, %v3125_v58  ;;  %4152 = vtanh.f32 %v3108_v8  ;;  %v3202_v59 = vadd.f32 %v3190_v30, %v7172_v13  ;;  %v3027_v0 = vmul.f32 0.25, %v4131_v28  ;;  %v7178_v8 = vld [vmem:[#allocation32_spill] sm:$0xff] }
 0xc07   :  { %v4135_v31 = vpop.eup %4134  ;;  %v3129_v53 = vadd.f32 %v3121_v20, %v3033_v3  ;;  %v7181_v62 = vsub.f32 %v7179_v35, %v7180_v63  ;;  %v7182_v58 = vld [vmem:[#allocation56_spill] sm:$0xff]  ;;  %v3026_v51 = vmul.f32 0.25, %v4133_v23  ;;  %v2114_v30 = vmul.f32 0.0625, %v7183_v26 }
 0xc08   :  { %v4137_v42 = vpop.eup %4136  ;;  %v3230_v7 = vsel %vm3229_vm2, %v3221_v10, %v2869_v60  ;;  %v3215_v38 = vmul.f32 0.25, %v4135_v31  ;;  %4154 = vtanh.f32 %v3202_v59  ;;  %v3032_v14 = vadd.f32 %v3024_v11, %v7182_v58  ;;  %v7187_v59 = vld [vmem:[#allocation18_spill] sm:$0xff] }
 0xc09   :  { %v4139_v56 = vpop.eup %4138  ;;  %3239 = vst.msk [vmem:[%s6708_s7] sm:$0xff] %vm3238_vm3, %v3230_v7  ;;  %v3196_v19 = vpop.xlane.xlu0 %3195  ;;  %v3120_v61 = vmul.f32 0.25, %v4137_v42  ;;  %v2870_v6 = vadd.f32 %v7181_v62, %v6589_v46  ;;  %v7186_v10 = vsub.f32 %v7184_v9, %v7185_v32  ;;  %v3035_v31 = vadd.f32 %v3027_v0, %v7187_v59  ;;  %v7193_v0 = vld [vmem:[#allocation51_spill] sm:$0xff] }
 0xc0a   :  { %v4141_v50 = vpop.eup %4140  ;;  %v3223_v17 = vadd.f32 %v3215_v38, %v3127_v48  ;;  %v3204_v49 = vadd.f32 %v3196_v19, %v7178_v8  ;;  %v3123_v22 = vmul.f32 0.25, %v4139_v56  ;;  %v2129_v38 = vadd.f32 %v2121_v21, %v6552_v5  ;;  %v7191_v19 = vld [vmem:[#allocation66_spill] sm:$0xff] }
 0xc0b   :  { %v4143_v54 = vpop.eup %4142  ;;  %v3214_v34 = vmul.f32 0.25, %v4141_v50  ;;  %v2873_v13 = vadd.f32 %v7186_v10, %v2127_v27  ;;  %v3128_v20 = vadd.f32 %v3120_v61, %v3032_v14  ;;  %v7190_v3 = vsub.f32 %v7188_v36, %v7189_v2 }
 0xc0c   :  { %v4145_v24 = vpop.eup %4144  ;;  %v3232_v57 = vsel %vm3229_vm2, %v3223_v17, %v2871_v15  ;;  %v3217_v47 = vmul.f32 0.25, %v4143_v54  ;;  %4156 = vtanh.f32 %v3204_v49  ;;  %v3131_v56 = vadd.f32 %v3123_v22, %v3035_v31  ;;  %v7192_v15 = vld [vmem:[#allocation19_spill] sm:$0xff]  ;;  %v7198_v22 = vld [vmem:[#allocation14_spill] sm:$0xff] }
 0xc0d   :  { %v4147_v60 = vpop.eup %4146  ;;  %3241 = vst.msk [vmem:[%s6708_s7 + $0x10] sm:$0xff] %vm3238_vm3, %v3232_v57  ;;  %v3222_v28 = vadd.f32 %v3214_v34, %v3126_v12  ;;  %v3122_v42 = vmul.f32 0.25, %v4145_v24  ;;  %v2872_v11 = vadd.f32 %v7190_v3, %v6598_v37  ;;  %v3034_v50 = vadd.f32 %v3026_v51, %v7191_v19 }
 0xc0e   :  { %v4149_v55 = vpop.eup %4148  ;;  %v3225_v33 = vadd.f32 %v3217_v47, %v3129_v53  ;;  %v3028_v44 = vmul.f32 0.25, %v4147_v60  ;;  %v2122_v43 = vsub.f32 %v6587_v40, %v2114_v30  ;;  %v7194_v17 = vsub.f32 %v7192_v15, %v7193_v0  ;;  %v7195_v40 = vld [vmem:[#allocation48_spill] sm:$0xff] }
 0xc0f   :  { %v4151_v46 = vpop.eup %4150  ;;  %v3231_v23 = vsel %vm3229_vm2, %v3222_v28, %v2870_v6  ;;  %v3216_v48 = vmul.f32 0.25, %v4149_v55  ;;  %v3130_v37 = vadd.f32 %v3122_v42, %v3034_v50  ;;  %v7197_v34 = vsub.f32 %v7195_v40, %v7196_v1 }
 0xc10   :  { %v4153_v7 = vpop.eup %4152  ;;  %3240 = vst.msk [vmem:[%s6708_s7 + $0x8] sm:$0xff] %vm3238_vm3, %v3231_v23  ;;  %v3234_v27 = vsel %vm3229_vm2, %v3225_v33, %v2873_v13  ;;  %v3219_v29 = vmul.f32 0.25, %v4151_v46  ;;  %v2875_v8 = vadd.f32 %v7194_v17, %v2129_v38  ;;  %v3036_v57 = vadd.f32 %v3028_v44, %v7198_v22 }
 0xc11   :  { %3243 = vst.msk [vmem:[%s6708_s7 + $0x20] sm:$0xff] %vm3238_vm3, %v3234_v27  ;;  %v3224_v5 = vadd.f32 %v3216_v48, %v3128_v20  ;;  %v3124_v54 = vmul.f32 0.25, %v4153_v7  ;;  %v2874_v24 = vadd.f32 %v7197_v34, %v2128_v16  ;;  %v2130_v35 = vadd.f32 %v2122_v43, %v1384_v18 }
 0xc12   :  { %v4155_v21 = vpop.eup %4154  ;;  %v3227_v49 = vadd.f32 %v3219_v29, %v3131_v56 }
 0xc13   :  { %v3233_v12 = vsel %vm3229_vm2, %v3224_v5, %v2872_v11  ;;  %v3218_v53 = vmul.f32 0.25, %v4155_v21  ;;  %v3132_v63 = vadd.f32 %v3124_v54, %v3036_v57  ;;  %v2876_v39 = vadd.f32 %v7201_v52, %v2130_v35 }
 0xc14   :  { %3242 = vst.msk [vmem:[%s6708_s7 + $0x18] sm:$0xff] %vm3238_vm3, %v3233_v12  ;;  %v3236_v61 = vsel %vm3229_vm2, %v3227_v49, %v2875_v8 }
 0xc15   :  { %3245 = vst.msk [vmem:[%s6708_s7 + $0x30] sm:$0xff] %vm3238_vm3, %v3236_v61  ;;  %v3226_v47 = vadd.f32 %v3218_v53, %v3130_v37 }
 0xc16   :  { %v4157_v60 = vpop.eup %4156 }
 0xc17   :  { %v3235_v4 = vsel %vm3229_vm2, %v3226_v47, %v2874_v24  ;;  %v3220_v25 = vmul.f32 0.25, %v4157_v60 }
 0xc18   :  { %3244 = vst.msk [vmem:[%s6708_s7 + $0x28] sm:$0xff] %vm3238_vm3, %v3235_v4 }
 0xc19   :  { %v3228_v62 = vadd.f32 %v3220_v25, %v3132_v63 }
 0xc1b   :  { %v3237_v6 = vsel %vm3229_vm2, %v3228_v62, %v2876_v39 }
 0xc1c   :  { %3246 = vst.msk [vmem:[%s6708_s7 + $0x38] sm:$0xff] %vm3238_vm3, %v3237_v6 }

</bundles_post_ra>
